<compile_context>
chip_gen: v7x
topology: tpu7x:2x2x1
jax: 0.10.0
libtpu: 0.0.40
codegen_flags: <defaults>
</compile_context>

<pallas_src>
import functools

import jax
import jax.numpy as jnp
from jax.experimental import pallas as pl
from jax.experimental.pallas import tpu as pltpu

_LN_EPS = 1e-5
_INV_SQRT2 = 0.7071067811865476


def _round_up(x, m):
    return ((x + m - 1) // m) * m


def _pick_tile(n, target):
    """Largest multiple of 8 that divides n and is <= target; falls back to full n."""
    best = None
    for t in range(8, min(n, target) + 1, 8):
        if n % t == 0:
            best = t
    return best if best is not None else n


@functools.lru_cache(maxsize=None)
def _vmem_limit_bytes():
    """Generation-aware VMEM limit (~5/8 of physical, capped)."""
    cap = 128 * 1024 * 1024
    try:
        info = pltpu.get_tpu_info()
        cap = int(getattr(info, "vmem_capacity_bytes", cap) or cap)
    except Exception:
        pass
    return max(32 * 1024 * 1024, min(cap * 5 // 8, 100 * 1024 * 1024))


# ----------------------------------------------------------------------------- kernels

def _kv_kernel(x_ref, g_ref, b_ref, w_ref, bias_ref, o_ref):
    """Fused norm1 -> kv projection.  Row-tiled; bf16 output (HBM traffic halved)."""
    x = x_ref[...].astype(jnp.float32)
    mean = jnp.mean(x, axis=-1, keepdims=True)
    var = jnp.mean((x - mean) ** 2, axis=-1, keepdims=True)
    xn = (x - mean) * jax.lax.rsqrt(var + _LN_EPS) * g_ref[...] + b_ref[...]
    kv = jnp.dot(xn.astype(jnp.bfloat16), w_ref[...],
                 preferred_element_type=jnp.float32) + bias_ref[...]
    o_ref[...] = kv.astype(o_ref.dtype)


def _attn_kernel(x_ref, qe_ref, kv_ref, qw_ref, qb_ref, pw_ref, pb_ref, bias_ref,
                 o_ref, q_sc, av_sc, *, num_heads):
    """q projection (softmax scale pre-folded) -> per-head masked neighborhood attention
    (additive RPB / -1e9 bias, blocked along the query axis) -> single depth-C output
    projection -> first residual.  One grid step == (batch b, query tile t)."""
    C = x_ref.shape[-1]
    hd = C // num_heads

    # q projection once per tile; scale already folded into qw/qb by the wrapper.
    q_sc[...] = (jnp.dot(qe_ref[0].astype(jnp.bfloat16), qw_ref[...],
                         preferred_element_type=jnp.float32)
                 + qb_ref[...]).astype(q_sc.dtype)

    # Static head loop.  All per-head operands are STATIC ref slices (no value-level lane
    # relayouts) and all cross-iteration state lives in scratch refs, so each head's
    # (Tq, N) score/prob temporaries die within their own iteration.
    for h in range(num_heads):
        lo = h * hd
        qh = q_sc[:, lo:lo + hd]                               # (Tq, hd) bf16
        kh = kv_ref[0, :, lo:lo + hd]                          # (N,  hd) bf16
        vh = kv_ref[0, :, C + lo:C + lo + hd]                  # (N,  hd) bf16
        s = jax.lax.dot_general(qh, kh, (((1,), (1,)), ((), ())),
                                preferred_element_type=jnp.float32)
        s = s + bias_ref[h]                                    # RPB / -1e9 neighborhood bias
        m = jnp.max(s, axis=-1, keepdims=True)
        p = jnp.exp(s - m)
        inv = pl.reciprocal(jnp.sum(p, axis=-1, keepdims=True), approx=True)
        av = jnp.dot(p.astype(jnp.bfloat16), vh, preferred_element_type=jnp.float32)
        av_sc[:, lo:lo + hd] = (av * inv).astype(av_sc.dtype)  # head h's column slice

    # Single merged depth-C output projection (full systolic depth) + first residual.
    out = jnp.dot(av_sc[...], pw_ref[...], preferred_element_type=jnp.float32) + pb_ref[...]
    o_ref[0] = (x_ref[0].astype(jnp.float32) + out).astype(o_ref.dtype)


def _mlp_kernel(x_ref, g_ref, b_ref, w1_ref, b1_ref, w2_ref, b2_ref, m_ref, o_ref):
    """Fused norm2 -> fc1 -> GELU(erf, matches nn.GELU) -> fc2 -> residual -> x_mask."""
    x = x_ref[...].astype(jnp.float32)
    mean = jnp.mean(x, axis=-1, keepdims=True)
    var = jnp.mean((x - mean) ** 2, axis=-1, keepdims=True)
    xn = (x - mean) * jax.lax.rsqrt(var + _LN_EPS) * g_ref[...] + b_ref[...]
    h = jnp.dot(xn.astype(jnp.bfloat16), w1_ref[...],
                preferred_element_type=jnp.float32) + b1_ref[...]
    h = 0.5 * h * (1.0 + jax.lax.erf(h * _INV_SQRT2))
    y = jnp.dot(h.astype(jnp.bfloat16), w2_ref[...],
                preferred_element_type=jnp.float32) + b2_ref[...]
    o_ref[...] = ((x + y) * m_ref[...]).astype(o_ref.dtype)


# ----------------------------------------------------------------------------- wrappers

def kv_block(x2, params, *, tm=512):
    M, C = x2.shape
    tm = min(tm, _round_up(M, 8))
    Mp = _round_up(M, tm)
    if Mp != M:
        x2 = jnp.pad(x2, ((0, Mp - M), (0, 0)))
    out = pl.pallas_call(
        _kv_kernel,
        out_shape=jax.ShapeDtypeStruct((Mp, 2 * C), jnp.bfloat16),
        grid=(Mp // tm,),
        in_specs=[
            pl.BlockSpec((tm, C), lambda i: (i, 0)),               # x tile
            pl.BlockSpec((1, C), lambda i: (0, 0)),                # norm1 gamma
            pl.BlockSpec((1, C), lambda i: (0, 0)),                # norm1 beta
            pl.BlockSpec((C, 2 * C), lambda i: (0, 0)),            # kv weight (bf16, resident)
            pl.BlockSpec((1, 2 * C), lambda i: (0, 0)),            # kv bias
        ],
        out_specs=pl.BlockSpec((tm, 2 * C), lambda i: (i, 0)),
        compiler_params=pltpu.CompilerParams(
            dimension_semantics=("parallel",),
            vmem_limit_bytes=_vmem_limit_bytes()),
    )(x2, params["norm1_g"].reshape(1, C), params["norm1_b"].reshape(1, C),
      params["kv_w"].astype(jnp.bfloat16), params["kv_b"].reshape(1, 2 * C))
    return out[:M]


def attn_block(x3, q3, kv3, nat_bias, params, *, num_heads, tq=512):
    B, N, C = x3.shape
    assert C % num_heads == 0
    scale = (C // num_heads) ** -0.5
    Tq = _pick_tile(N, tq)
    n_qt = N // Tq

    # Fold the softmax scale into the q projection (removes per-head VPU multiplies).
    qw = (params["q_w"] * scale).astype(jnp.bfloat16)
    qb = (params["q_b"] * scale).reshape(1, C).astype(jnp.float32)

    kern = functools.partial(_attn_kernel, num_heads=num_heads)
    return pl.pallas_call(
        kern,
        # bf16 carrier for the residual stream between the attention and MLP kernels.
        out_shape=jax.ShapeDtypeStruct((B, N, C), jnp.bfloat16),
        grid=(B, n_qt),
        in_specs=[
            pl.BlockSpec((1, Tq, C), lambda b, t: (b, t, 0)),          # x (shortcut) tile
            pl.BlockSpec((1, Tq, C), lambda b, t: (b, t, 0)),          # q_extra tile
            pl.BlockSpec((1, N, 2 * C), lambda b, t: (b, 0, 0)),       # kv slab, resident over t
            pl.BlockSpec((C, C), lambda b, t: (0, 0)),                 # q weight (scaled, bf16)
            pl.BlockSpec((1, C), lambda b, t: (0, 0)),                 # q bias (scaled)
            pl.BlockSpec((C, C), lambda b, t: (0, 0)),                 # proj weight (bf16)
            pl.BlockSpec((1, C), lambda b, t: (0, 0)),                 # proj bias
            pl.BlockSpec((num_heads, Tq, N), lambda b, t: (0, t, 0)),  # bias, BLOCKED over queries
        ],
        out_specs=pl.BlockSpec((1, Tq, C), lambda b, t: (b, t, 0)),
        scratch_shapes=[pltpu.VMEM((Tq, C), jnp.bfloat16),             # q scratch
                        pltpu.VMEM((Tq, C), jnp.bfloat16)],            # per-head av scratch
        compiler_params=pltpu.CompilerParams(
            dimension_semantics=("parallel", "parallel"),
            vmem_limit_bytes=_vmem_limit_bytes()),
    )(x3, q3, kv3, qw, qb,
      params["proj_w"].astype(jnp.bfloat16), params["proj_b"].reshape(1, C),
      nat_bias)


def mlp_block(x1, mask, params, out_dtype, *, tm=512):
    M, C = x1.shape
    hidden = params["fc1_w"].shape[1]
    Cm = mask.shape[1]
    tm = min(tm, _round_up(M, 8))
    Mp = _round_up(M, tm)
    if Mp != M:                       # pad row axis so the grid tiles evenly
        x1 = jnp.pad(x1, ((0, Mp - M), (0, 0)))
        mask = jnp.pad(mask, ((0, Mp - M), (0, 0)))
    out = pl.pallas_call(
        _mlp_kernel,
        out_shape=jax.ShapeDtypeStruct((Mp, C), out_dtype),
        grid=(Mp // tm,),
        in_specs=[
            pl.BlockSpec((tm, C), lambda i: (i, 0)),               # x1 tile (bf16)
            pl.BlockSpec((1, C), lambda i: (0, 0)),                # norm2 gamma
            pl.BlockSpec((1, C), lambda i: (0, 0)),                # norm2 beta
            pl.BlockSpec((C, hidden), lambda i: (0, 0)),           # fc1 w (bf16, resident)
            pl.BlockSpec((1, hidden), lambda i: (0, 0)),           # fc1 b
            pl.BlockSpec((hidden, C), lambda i: (0, 0)),           # fc2 w (bf16, resident)
            pl.BlockSpec((1, C), lambda i: (0, 0)),                # fc2 b
            pl.BlockSpec((tm, Cm), lambda i: (i, 0)),              # mask tile
        ],
        out_specs=pl.BlockSpec((tm, C), lambda i: (i, 0)),
        compiler_params=pltpu.CompilerParams(
            dimension_semantics=("parallel",),
            vmem_limit_bytes=_vmem_limit_bytes()),
    )(x1,
      params["norm2_g"].reshape(1, C), params["norm2_b"].reshape(1, C),
      params["fc1_w"].astype(jnp.bfloat16), params["fc1_b"].reshape(1, hidden),
      params["fc2_w"].astype(jnp.bfloat16), params["fc2_b"].reshape(1, C),
      mask)
    return out[:M]


# ------------------------------------------------------------------ neighborhood bias (glue)

def build_nat_bias(rpb, H, W, ksize):
    """Dense (num_heads, H*W, H*W) additive bias implementing NATTEN's clamped k x k
    neighborhood + relative positional bias; out-of-window entries = -1e9.
    Built ONCE outside the jitted forward and passed in as a constant input."""
    if ksize > H or ksize > W:
        raise ValueError("kernel_size must be <= both spatial dims (NATTEN requirement)")
    ns = ksize // 2
    neg = jnp.float32(-1e9)

    def win_start(idx, L):
        return jnp.clip(idx - ns, 0, L - ksize)

    def pb_start(idx, L):
        return (ns
                + jnp.where(idx < ns, ns - idx, 0)
                + jnp.where(idx + ns >= L, L - idx - 1 - ns, 0))

    qi = jnp.arange(H); qj = jnp.arange(W)
    si, pi = win_start(qi, H), pb_start(qi, H)                       # (H,)
    sj, pj = win_start(qj, W), pb_start(qj, W)                       # (W,)

    ki = jnp.arange(H)[None, :]
    kj = jnp.arange(W)[None, :]
    in_i = (ki >= si[:, None]) & (ki < si[:, None] + ksize)          # (H, H)
    in_j = (kj >= sj[:, None]) & (kj < sj[:, None] + ksize)          # (W, W)
    bi = jnp.clip(pi[:, None] + (ki - si[:, None]), 0, 2 * ksize - 2)
    bj = jnp.clip(pj[:, None] + (kj - sj[:, None]), 0, 2 * ksize - 2)

    g = rpb[:, bi[:, None, :, None], bj[None, :, None, :]]           # (nh, H, W, H, W)
    valid = in_i[:, None, :, None] & in_j[None, :, None, :]          # (H, W, H, W)
    bias = jnp.where(valid[None], g, neg)
    return bias.reshape(rpb.shape[0], H * W, H * W).astype(jnp.float32)


# ----------------------------------------------------------------------------- forward

def nat_cross_layer_forward(params, x, q_extra, nat_bias, x_mask=None, *, num_heads):
    B, H, W, C = x.shape
    N = H * W
    x3 = x.reshape(B, N, C)
    q3 = q_extra.reshape(B, N, C)

    # norm1 + kv projection, computed once per token (bf16 activation).
    kv3 = kv_block(x3.reshape(B * N, C), params).reshape(B, N, 2 * C)

    # Query-tiled neighborhood cross-attention (includes first residual); bf16 carrier.
    x1 = attn_block(x3, q3, kv3, nat_bias, params, num_heads=num_heads)   # (B, N, C) bf16

    # MLP branch (includes second residual and x_mask multiply), final output in x.dtype.
    x1f = x1.reshape(B * N, C)
    if x_mask is None:
        mask = jnp.ones((B * N, 1), jnp.float32)
    else:
        mask = x_mask.reshape(B * N, x_mask.shape[-1]).astype(jnp.float32)
    out = mlp_block(x1f, mask, params, x.dtype)
    return out.reshape(B, H, W, C)


# ----------------------------------------------------------------------------- params

def init_params(key, dim, num_heads, kernel_size, mlp_ratio):
    hidden = int(dim * mlp_ratio)
    ks = jax.random.split(key, 8)
    std = 0.02
    return {
        "norm1_g": jnp.ones((dim,), jnp.float32),
        "norm1_b": jnp.zeros((dim,), jnp.float32),
        "norm2_g": jnp.ones((dim,), jnp.float32),
        "norm2_b": jnp.zeros((dim,), jnp.float32),
        "q_w":   std * jax.random.normal(ks[0], (dim, dim), jnp.float32),
        "q_b":   jnp.zeros((dim,), jnp.float32),
        "kv_w":  std * jax.random.normal(ks[1], (dim, 2 * dim), jnp.float32),
        "kv_b":  jnp.zeros((2 * dim,), jnp.float32),
        "proj_w": std * jax.random.normal(ks[2], (dim, dim), jnp.float32),
        "proj_b": jnp.zeros((dim,), jnp.float32),
        "rpb":   std * jax.random.normal(ks[3], (num_heads, 2 * kernel_size - 1,
                                                 2 * kernel_size - 1), jnp.float32),
        "fc1_w": std * jax.random.normal(ks[4], (dim, hidden), jnp.float32),
        "fc1_b": jnp.zeros((hidden,), jnp.float32),
        "fc2_w": std * jax.random.normal(ks[5], (hidden, dim), jnp.float32),
        "fc2_b": jnp.zeros((dim,), jnp.float32),
    }


# ----------------------------------------------------------------------------- main

if __name__ == "__main__":
    B, H, W = 2, 8, 8
    dim, num_heads, kernel_size, mlp_ratio = 32, 4, 7, 4.0

    key = jax.random.PRNGKey(0)
    k_p, k_x, k_q, k_m = jax.random.split(key, 4)

    params = init_params(k_p, dim, num_heads, kernel_size, mlp_ratio)
    x = jax.random.normal(k_x, (B, H, W, dim), jnp.float32)
    q_extra = jax.random.normal(k_q, (B, H, W, dim), jnp.float32)
    x_mask = (jax.random.uniform(k_m, (B, H, W, 1)) > 0.3).astype(jnp.float32)

    # Hoisted out of the per-forward path: depends only on rpb / (H, W, kernel_size).
    nat_bias = build_nat_bias(params["rpb"], H, W, kernel_size)

    fwd = jax.jit(functools.partial(nat_cross_layer_forward, num_heads=num_heads))
    out = fwd(params, x, q_extra, nat_bias, x_mask)
    out = jax.block_until_ready(out)

    assert out.shape == (B, H, W, dim)
    assert bool(jnp.all(jnp.isfinite(out)))
    print("KERNEL_OK")
</pallas_src>

<mosaic_0001>
module attributes {stable_mosaic.version = 11 : i64} {
  func.func @_kv_kernel(%arg0: i32, %arg1: memref<128x32xf32, #tpu.memory_space<vmem>>, %arg2: memref<1x32xf32, #tpu.memory_space<vmem>>, %arg3: memref<1x32xf32, #tpu.memory_space<vmem>>, %arg4: memref<32x64xbf16, #tpu.memory_space<vmem>>, %arg5: memref<1x64xf32, #tpu.memory_space<vmem>>, %arg6: memref<128x64xbf16, #tpu.memory_space<vmem>>) attributes {dimension_semantics = [#tpu.dimension_semantics<parallel>], iteration_bounds = array<i64: 1>, scalar_prefetch = 0 : i64, scratch_operands = 0 : i64, tpu.core_type = #tpu.core_type<tc>, window_params = [{transform_indices = @transform_0, window_bounds = array<i64: 128, 32>}, {pipeline_mode = #tpu.pipeline_mode<synchronous>, transform_indices = @transform_1, window_bounds = array<i64: 1, 32>}, {pipeline_mode = #tpu.pipeline_mode<synchronous>, transform_indices = @transform_2, window_bounds = array<i64: 1, 32>}, {pipeline_mode = #tpu.pipeline_mode<synchronous>, transform_indices = @transform_3, window_bounds = array<i64: 32, 64>}, {pipeline_mode = #tpu.pipeline_mode<synchronous>, transform_indices = @transform_4, window_bounds = array<i64: 1, 64>}, {transform_indices = @transform_5, window_bounds = array<i64: 128, 64>}]} {
    %c0 = arith.constant 0 : index
    %c0_0 = arith.constant 0 : index
    %0 = vector.load %arg1[%c0, %c0_0] : memref<128x32xf32, #tpu.memory_space<vmem>>, vector<128x32xf32>
    %cst = arith.constant dense<0.000000e+00> : vector<128xf32>
    %1 = vector.multi_reduction <add>, %0, %cst [1] : vector<128x32xf32> to vector<128xf32>
    %2 = vector.shape_cast %1 : vector<128xf32> to vector<128x1xf32>
    %cst_1 = arith.constant 3.200000e+01 : f32
    %3 = vector.broadcast %cst_1 : f32 to vector<128x1xf32>
    %4 = arith.divf %2, %3 : vector<128x1xf32>
    %5 = vector.broadcast %4 : vector<128x1xf32> to vector<128x32xf32>
    %6 = arith.subf %0, %5 : vector<128x32xf32>
    %7 = arith.mulf %6, %6 : vector<128x32xf32>
    %cst_2 = arith.constant dense<0.000000e+00> : vector<128xf32>
    %8 = vector.multi_reduction <add>, %7, %cst_2 [1] : vector<128x32xf32> to vector<128xf32>
    %9 = vector.shape_cast %8 : vector<128xf32> to vector<128x1xf32>
    %cst_3 = arith.constant 3.200000e+01 : f32
    %10 = vector.broadcast %cst_3 : f32 to vector<128x1xf32>
    %11 = arith.divf %9, %10 : vector<128x1xf32>
    %12 = vector.broadcast %4 : vector<128x1xf32> to vector<128x32xf32>
    %13 = arith.subf %0, %12 : vector<128x32xf32>
    %cst_4 = arith.constant 9.99999974E-6 : f32
    %14 = vector.broadcast %cst_4 : f32 to vector<128x1xf32>
    %15 = arith.addf %11, %14 : vector<128x1xf32>
    %16 = math.rsqrt %15 : vector<128x1xf32>
    %17 = vector.broadcast %16 : vector<128x1xf32> to vector<128x32xf32>
    %18 = arith.mulf %13, %17 : vector<128x32xf32>
    %c0_5 = arith.constant 0 : index
    %c0_6 = arith.constant 0 : index
    %19 = vector.load %arg2[%c0_5, %c0_6] : memref<1x32xf32, #tpu.memory_space<vmem>>, vector<1x32xf32>
    %20 = vector.broadcast %19 : vector<1x32xf32> to vector<128x32xf32>
    %21 = arith.mulf %18, %20 : vector<128x32xf32>
    %c0_7 = arith.constant 0 : index
    %c0_8 = arith.constant 0 : index
    %22 = vector.load %arg3[%c0_7, %c0_8] : memref<1x32xf32, #tpu.memory_space<vmem>>, vector<1x32xf32>
    %23 = vector.broadcast %22 : vector<1x32xf32> to vector<128x32xf32>
    %24 = arith.addf %21, %23 : vector<128x32xf32>
    %25 = arith.truncf %24 : vector<128x32xf32> to vector<128x32xbf16>
    %c0_9 = arith.constant 0 : index
    %c0_10 = arith.constant 0 : index
    %26 = vector.load %arg4[%c0_9, %c0_10] : memref<32x64xbf16, #tpu.memory_space<vmem>>, vector<32x64xbf16>
    %cst_11 = arith.constant dense<0.000000e+00> : vector<128x64xf32>
    %27 = tpu.matmul %25, %26, %cst_11 {dimension_numbers = #tpu.dot_dimension_numbers<[1], [0], [0], [1], [0, 0, 1, 1], [], []>} : vector<128x32xbf16>, vector<32x64xbf16>, vector<128x64xf32> -> vector<128x64xf32>
    %c0_12 = arith.constant 0 : index
    %c0_13 = arith.constant 0 : index
    %28 = vector.load %arg5[%c0_12, %c0_13] : memref<1x64xf32, #tpu.memory_space<vmem>>, vector<1x64xf32>
    %29 = vector.broadcast %28 : vector<1x64xf32> to vector<128x64xf32>
    %30 = arith.addf %27, %29 : vector<128x64xf32>
    %31 = arith.truncf %30 : vector<128x64xf32> to vector<128x64xbf16>
    %c0_14 = arith.constant 0 : index
    %c0_15 = arith.constant 0 : index
    %32 = vector.load %arg6[%c0_14, %c0_15] : memref<128x64xbf16, #tpu.memory_space<vmem>>, vector<128x64xbf16>
    tpu.vector_store %arg6[%c0_14, %c0_15], %31 {strides = array<i32>} : memref<128x64xbf16, #tpu.memory_space<vmem>>, vector<128x64xbf16>,
    return
  }
  func.func @transform_0(%arg0: i32) -> (i32, i32) {
    %c0_i32 = arith.constant 0 : i32
    %c0_i32_0 = arith.constant 0 : i32
    return %arg0, %c0_i32 : i32, i32
  }
  func.func @transform_1(%arg0: i32) -> (i32, i32) {
    %c0_i32 = arith.constant 0 : i32
    %c0_i32_0 = arith.constant 0 : i32
    %c0_i32_1 = arith.constant 0 : i32
    return %c0_i32, %c0_i32_0 : i32, i32
  }
  func.func @transform_2(%arg0: i32) -> (i32, i32) {
    %c0_i32 = arith.constant 0 : i32
    %c0_i32_0 = arith.constant 0 : i32
    %c0_i32_1 = arith.constant 0 : i32
    return %c0_i32, %c0_i32_0 : i32, i32
  }
  func.func @transform_3(%arg0: i32) -> (i32, i32) {
    %c0_i32 = arith.constant 0 : i32
    %c0_i32_0 = arith.constant 0 : i32
    %c0_i32_1 = arith.constant 0 : i32
    return %c0_i32, %c0_i32_0 : i32, i32
  }
  func.func @transform_4(%arg0: i32) -> (i32, i32) {
    %c0_i32 = arith.constant 0 : i32
    %c0_i32_0 = arith.constant 0 : i32
    %c0_i32_1 = arith.constant 0 : i32
    return %c0_i32, %c0_i32_0 : i32, i32
  }
  func.func @transform_5(%arg0: i32) -> (i32, i32) {
    %c0_i32 = arith.constant 0 : i32
    %c0_i32_0 = arith.constant 0 : i32
    return %arg0, %c0_i32 : i32, i32
  }
}

module attributes {stable_mosaic.version = 11 : i64} {
  func.func @_attn_kernel(%arg0: i32, %arg1: i32, %arg2: memref<1x64x32xf32, #tpu.memory_space<vmem>>, %arg3: memref<1x64x32xf32, #tpu.memory_space<vmem>>, %arg4: memref<1x64x64xbf16, #tpu.memory_space<vmem>>, %arg5: memref<32x32xbf16, #tpu.memory_space<vmem>>, %arg6: memref<1x32xf32, #tpu.memory_space<vmem>>, %arg7: memref<32x32xbf16, #tpu.memory_space<vmem>>, %arg8: memref<1x32xf32, #tpu.memory_space<vmem>>, %arg9: memref<4x64x64xf32, #tpu.memory_space<vmem>>, %arg10: memref<1x64x32xbf16, #tpu.memory_space<vmem>>, %arg11: memref<64x32xbf16, #tpu.memory_space<vmem>>, %arg12: memref<64x32xbf16, #tpu.memory_space<vmem>>) attributes {dimension_semantics = [#tpu.dimension_semantics<parallel>, #tpu.dimension_semantics<parallel>], iteration_bounds = array<i64: 2, 1>, scalar_prefetch = 0 : i64, scratch_operands = 2 : i64, tpu.core_type = #tpu.core_type<tc>, window_params = [{transform_indices = @transform_0, window_bounds = array<i64: 1, 64, 32>}, {transform_indices = @transform_1, window_bounds = array<i64: 1, 64, 32>}, {transform_indices = @transform_2, window_bounds = array<i64: 1, 64, 64>}, {pipeline_mode = #tpu.pipeline_mode<synchronous>, transform_indices = @transform_3, window_bounds = array<i64: 32, 32>}, {pipeline_mode = #tpu.pipeline_mode<synchronous>, transform_indices = @transform_4, window_bounds = array<i64: 1, 32>}, {pipeline_mode = #tpu.pipeline_mode<synchronous>, transform_indices = @transform_5, window_bounds = array<i64: 32, 32>}, {pipeline_mode = #tpu.pipeline_mode<synchronous>, transform_indices = @transform_6, window_bounds = array<i64: 1, 32>}, {transform_indices = @transform_7, window_bounds = array<i64: 4, 64, 64>}, {transform_indices = @transform_8, window_bounds = array<i64: 1, 64, 32>}]} {
    %c0 = arith.constant 0 : index
    %c0_0 = arith.constant 0 : index
    %c0_1 = arith.constant 0 : index
    %0 = vector.load %arg3[%c0, %c0_0, %c0_1] : memref<1x64x32xf32, #tpu.memory_space<vmem>>, vector<1x64x32xf32>
    %1 = vector.shape_cast %0 : vector<1x64x32xf32> to vector<64x32xf32>
    %2 = arith.truncf %1 : vector<64x32xf32> to vector<64x32xbf16>
    %c0_2 = arith.constant 0 : index
    %c0_3 = arith.constant 0 : index
    %3 = vector.load %arg5[%c0_2, %c0_3] : memref<32x32xbf16, #tpu.memory_space<vmem>>, vector<32x32xbf16>
    %cst = arith.constant dense<0.000000e+00> : vector<64x32xf32>
    %4 = tpu.matmul %2, %3, %cst {dimension_numbers = #tpu.dot_dimension_numbers<[1], [0], [0], [1], [0, 0, 1, 1], [], []>} : vector<64x32xbf16>, vector<32x32xbf16>, vector<64x32xf32> -> vector<64x32xf32>
    %c0_4 = arith.constant 0 : index
    %c0_5 = arith.constant 0 : index
    %5 = vector.load %arg6[%c0_4, %c0_5] : memref<1x32xf32, #tpu.memory_space<vmem>>, vector<1x32xf32>
    %6 = vector.broadcast %5 : vector<1x32xf32> to vector<64x32xf32>
    %7 = arith.addf %4, %6 : vector<64x32xf32>
    %8 = arith.truncf %7 : vector<64x32xf32> to vector<64x32xbf16>
    %c0_6 = arith.constant 0 : index
    %c0_7 = arith.constant 0 : index
    %9 = vector.load %arg11[%c0_6, %c0_7] : memref<64x32xbf16, #tpu.memory_space<vmem>>, vector<64x32xbf16>
    tpu.vector_store %arg11[%c0_6, %c0_7], %8 {strides = array<i32>} : memref<64x32xbf16, #tpu.memory_space<vmem>>, vector<64x32xbf16>,
    %c0_8 = arith.constant 0 : index
    %c0_9 = arith.constant 0 : index
    %10 = vector.load %arg11[%c0_8, %c0_9] : memref<64x32xbf16, #tpu.memory_space<vmem>>, vector<64x8xbf16>
    %c0_10 = arith.constant 0 : index
    %c0_11 = arith.constant 0 : index
    %c0_12 = arith.constant 0 : index
    %11 = vector.load %arg4[%c0_10, %c0_11, %c0_12] : memref<1x64x64xbf16, #tpu.memory_space<vmem>>, vector<1x64x8xbf16>
    %12 = vector.shape_cast %11 : vector<1x64x8xbf16> to vector<64x8xbf16>
    %c0_13 = arith.constant 0 : index
    %c0_14 = arith.constant 0 : index
    %c32 = arith.constant 32 : index
    %13 = vector.load %arg4[%c0_13, %c0_14, %c32] : memref<1x64x64xbf16, #tpu.memory_space<vmem>>, vector<1x64x8xbf16>
    %14 = vector.shape_cast %13 : vector<1x64x8xbf16> to vector<64x8xbf16>
    %cst_15 = arith.constant dense<0.000000e+00> : vector<64x64xf32>
    %15 = tpu.matmul %10, %12, %cst_15 {dimension_numbers = #tpu.dot_dimension_numbers<[1], [1], [0], [0], [0, 0, 1, 0], [], []>} : vector<64x8xbf16>, vector<64x8xbf16>, vector<64x64xf32> -> vector<64x64xf32>
    %c0_16 = arith.constant 0 : index
    %c0_17 = arith.constant 0 : index
    %c0_18 = arith.constant 0 : index
    %16 = vector.load %arg9[%c0_16, %c0_17, %c0_18] : memref<4x64x64xf32, #tpu.memory_space<vmem>>, vector<1x64x64xf32>
    %17 = vector.shape_cast %16 : vector<1x64x64xf32> to vector<64x64xf32>
    %18 = arith.addf %15, %17 : vector<64x64xf32>
    %cst_19 = arith.constant dense<0xFF800000> : vector<64xf32>
    %19 = vector.multi_reduction <maximumf>, %18, %cst_19 [1] : vector<64x64xf32> to vector<64xf32>
    %20 = vector.shape_cast %19 : vector<64xf32> to vector<64x1xf32>
    %21 = vector.broadcast %20 : vector<64x1xf32> to vector<64x64xf32>
    %22 = arith.subf %18, %21 : vector<64x64xf32>
    %23 = math.exp %22 : vector<64x64xf32>
    %cst_20 = arith.constant dense<0.000000e+00> : vector<64xf32>
    %24 = vector.multi_reduction <add>, %23, %cst_20 [1] : vector<64x64xf32> to vector<64xf32>
    %25 = vector.shape_cast %24 : vector<64xf32> to vector<64x1xf32>
    %26 = tpu.reciprocal %25 {approx = true} : vector<64x1xf32> -> vector<64x1xf32>
    %27 = arith.truncf %23 : vector<64x64xf32> to vector<64x64xbf16>
    %cst_21 = arith.constant dense<0.000000e+00> : vector<64x8xf32>
    %28 = tpu.matmul %27, %14, %cst_21 {dimension_numbers = #tpu.dot_dimension_numbers<[1], [0], [0], [1], [0, 0, 1, 1], [], []>} : vector<64x64xbf16>, vector<64x8xbf16>, vector<64x8xf32> -> vector<64x8xf32>
    %29 = vector.broadcast %26 : vector<64x1xf32> to vector<64x8xf32>
    %30 = arith.mulf %28, %29 : vector<64x8xf32>
    %31 = arith.truncf %30 : vector<64x8xf32> to vector<64x8xbf16>
    %c0_22 = arith.constant 0 : index
    %c0_23 = arith.constant 0 : index
    %32 = vector.load %arg12[%c0_22, %c0_23] : memref<64x32xbf16, #tpu.memory_space<vmem>>, vector<64x8xbf16>
    tpu.vector_store %arg12[%c0_22, %c0_23], %31 {strides = array<i32>} : memref<64x32xbf16, #tpu.memory_space<vmem>>, vector<64x8xbf16>,
    %c0_24 = arith.constant 0 : index
    %c8 = arith.constant 8 : index
    %33 = vector.load %arg11[%c0_24, %c8] : memref<64x32xbf16, #tpu.memory_space<vmem>>, vector<64x8xbf16>
    %c0_25 = arith.constant 0 : index
    %c0_26 = arith.constant 0 : index
    %c8_27 = arith.constant 8 : index
    %34 = vector.load %arg4[%c0_25, %c0_26, %c8_27] : memref<1x64x64xbf16, #tpu.memory_space<vmem>>, vector<1x64x8xbf16>
    %35 = vector.shape_cast %34 : vector<1x64x8xbf16> to vector<64x8xbf16>
    %c0_28 = arith.constant 0 : index
    %c0_29 = arith.constant 0 : index
    %c40 = arith.constant 40 : index
    %36 = vector.load %arg4[%c0_28, %c0_29, %c40] : memref<1x64x64xbf16, #tpu.memory_space<vmem>>, vector<1x64x8xbf16>
    %37 = vector.shape_cast %36 : vector<1x64x8xbf16> to vector<64x8xbf16>
    %cst_30 = arith.constant dense<0.000000e+00> : vector<64x64xf32>
    %38 = tpu.matmul %33, %35, %cst_30 {dimension_numbers = #tpu.dot_dimension_numbers<[1], [1], [0], [0], [0, 0, 1, 0], [], []>} : vector<64x8xbf16>, vector<64x8xbf16>, vector<64x64xf32> -> vector<64x64xf32>
    %c1 = arith.constant 1 : index
    %c0_31 = arith.constant 0 : index
    %c0_32 = arith.constant 0 : index
    %39 = vector.load %arg9[%c1, %c0_31, %c0_32] : memref<4x64x64xf32, #tpu.memory_space<vmem>>, vector<1x64x64xf32>
    %40 = vector.shape_cast %39 : vector<1x64x64xf32> to vector<64x64xf32>
    %41 = arith.addf %38, %40 : vector<64x64xf32>
    %cst_33 = arith.constant dense<0xFF800000> : vector<64xf32>
    %42 = vector.multi_reduction <maximumf>, %41, %cst_33 [1] : vector<64x64xf32> to vector<64xf32>
    %43 = vector.shape_cast %42 : vector<64xf32> to vector<64x1xf32>
    %44 = vector.broadcast %43 : vector<64x1xf32> to vector<64x64xf32>
    %45 = arith.subf %41, %44 : vector<64x64xf32>
    %46 = math.exp %45 : vector<64x64xf32>
    %cst_34 = arith.constant dense<0.000000e+00> : vector<64xf32>
    %47 = vector.multi_reduction <add>, %46, %cst_34 [1] : vector<64x64xf32> to vector<64xf32>
    %48 = vector.shape_cast %47 : vector<64xf32> to vector<64x1xf32>
    %49 = tpu.reciprocal %48 {approx = true} : vector<64x1xf32> -> vector<64x1xf32>
    %50 = arith.truncf %46 : vector<64x64xf32> to vector<64x64xbf16>
    %cst_35 = arith.constant dense<0.000000e+00> : vector<64x8xf32>
    %51 = tpu.matmul %50, %37, %cst_35 {dimension_numbers = #tpu.dot_dimension_numbers<[1], [0], [0], [1], [0, 0, 1, 1], [], []>} : vector<64x64xbf16>, vector<64x8xbf16>, vector<64x8xf32> -> vector<64x8xf32>
    %52 = vector.broadcast %49 : vector<64x1xf32> to vector<64x8xf32>
    %53 = arith.mulf %51, %52 : vector<64x8xf32>
    %54 = arith.truncf %53 : vector<64x8xf32> to vector<64x8xbf16>
    %c0_36 = arith.constant 0 : index
    %c8_37 = arith.constant 8 : index
    %55 = vector.load %arg12[%c0_36, %c8_37] : memref<64x32xbf16, #tpu.memory_space<vmem>>, vector<64x8xbf16>
    tpu.vector_store %arg12[%c0_36, %c8_37], %54 {strides = array<i32>} : memref<64x32xbf16, #tpu.memory_space<vmem>>, vector<64x8xbf16>,
    %c0_38 = arith.constant 0 : index
    %c16 = arith.constant 16 : index
    %56 = vector.load %arg11[%c0_38, %c16] : memref<64x32xbf16, #tpu.memory_space<vmem>>, vector<64x8xbf16>
    %c0_39 = arith.constant 0 : index
    %c0_40 = arith.constant 0 : index
    %c16_41 = arith.constant 16 : index
    %57 = vector.load %arg4[%c0_39, %c0_40, %c16_41] : memref<1x64x64xbf16, #tpu.memory_space<vmem>>, vector<1x64x8xbf16>
    %58 = vector.shape_cast %57 : vector<1x64x8xbf16> to vector<64x8xbf16>
    %c0_42 = arith.constant 0 : index
    %c0_43 = arith.constant 0 : index
    %c48 = arith.constant 48 : index
    %59 = vector.load %arg4[%c0_42, %c0_43, %c48] : memref<1x64x64xbf16, #tpu.memory_space<vmem>>, vector<1x64x8xbf16>
    %60 = vector.shape_cast %59 : vector<1x64x8xbf16> to vector<64x8xbf16>
    %cst_44 = arith.constant dense<0.000000e+00> : vector<64x64xf32>
    %61 = tpu.matmul %56, %58, %cst_44 {dimension_numbers = #tpu.dot_dimension_numbers<[1], [1], [0], [0], [0, 0, 1, 0], [], []>} : vector<64x8xbf16>, vector<64x8xbf16>, vector<64x64xf32> -> vector<64x64xf32>
    %c2 = arith.constant 2 : index
    %c0_45 = arith.constant 0 : index
    %c0_46 = arith.constant 0 : index
    %62 = vector.load %arg9[%c2, %c0_45, %c0_46] : memref<4x64x64xf32, #tpu.memory_space<vmem>>, vector<1x64x64xf32>
    %63 = vector.shape_cast %62 : vector<1x64x64xf32> to vector<64x64xf32>
    %64 = arith.addf %61, %63 : vector<64x64xf32>
    %cst_47 = arith.constant dense<0xFF800000> : vector<64xf32>
    %65 = vector.multi_reduction <maximumf>, %64, %cst_47 [1] : vector<64x64xf32> to vector<64xf32>
    %66 = vector.shape_cast %65 : vector<64xf32> to vector<64x1xf32>
    %67 = vector.broadcast %66 : vector<64x1xf32> to vector<64x64xf32>
    %68 = arith.subf %64, %67 : vector<64x64xf32>
    %69 = math.exp %68 : vector<64x64xf32>
    %cst_48 = arith.constant dense<0.000000e+00> : vector<64xf32>
    %70 = vector.multi_reduction <add>, %69, %cst_48 [1] : vector<64x64xf32> to vector<64xf32>
    %71 = vector.shape_cast %70 : vector<64xf32> to vector<64x1xf32>
    %72 = tpu.reciprocal %71 {approx = true} : vector<64x1xf32> -> vector<64x1xf32>
    %73 = arith.truncf %69 : vector<64x64xf32> to vector<64x64xbf16>
    %cst_49 = arith.constant dense<0.000000e+00> : vector<64x8xf32>
    %74 = tpu.matmul %73, %60, %cst_49 {dimension_numbers = #tpu.dot_dimension_numbers<[1], [0], [0], [1], [0, 0, 1, 1], [], []>} : vector<64x64xbf16>, vector<64x8xbf16>, vector<64x8xf32> -> vector<64x8xf32>
    %75 = vector.broadcast %72 : vector<64x1xf32> to vector<64x8xf32>
    %76 = arith.mulf %74, %75 : vector<64x8xf32>
    %77 = arith.truncf %76 : vector<64x8xf32> to vector<64x8xbf16>
    %c0_50 = arith.constant 0 : index
    %c16_51 = arith.constant 16 : index
    %78 = vector.load %arg12[%c0_50, %c16_51] : memref<64x32xbf16, #tpu.memory_space<vmem>>, vector<64x8xbf16>
    tpu.vector_store %arg12[%c0_50, %c16_51], %77 {strides = array<i32>} : memref<64x32xbf16, #tpu.memory_space<vmem>>, vector<64x8xbf16>,
    %c0_52 = arith.constant 0 : index
    %c24 = arith.constant 24 : index
    %79 = vector.load %arg11[%c0_52, %c24] : memref<64x32xbf16, #tpu.memory_space<vmem>>, vector<64x8xbf16>
    %c0_53 = arith.constant 0 : index
    %c0_54 = arith.constant 0 : index
    %c24_55 = arith.constant 24 : index
    %80 = vector.load %arg4[%c0_53, %c0_54, %c24_55] : memref<1x64x64xbf16, #tpu.memory_space<vmem>>, vector<1x64x8xbf16>
    %81 = vector.shape_cast %80 : vector<1x64x8xbf16> to vector<64x8xbf16>
    %c0_56 = arith.constant 0 : index
    %c0_57 = arith.constant 0 : index
    %c56 = arith.constant 56 : index
    %82 = vector.load %arg4[%c0_56, %c0_57, %c56] : memref<1x64x64xbf16, #tpu.memory_space<vmem>>, vector<1x64x8xbf16>
    %83 = vector.shape_cast %82 : vector<1x64x8xbf16> to vector<64x8xbf16>
    %cst_58 = arith.constant dense<0.000000e+00> : vector<64x64xf32>
    %84 = tpu.matmul %79, %81, %cst_58 {dimension_numbers = #tpu.dot_dimension_numbers<[1], [1], [0], [0], [0, 0, 1, 0], [], []>} : vector<64x8xbf16>, vector<64x8xbf16>, vector<64x64xf32> -> vector<64x64xf32>
    %c3 = arith.constant 3 : index
    %c0_59 = arith.constant 0 : index
    %c0_60 = arith.constant 0 : index
    %85 = vector.load %arg9[%c3, %c0_59, %c0_60] : memref<4x64x64xf32, #tpu.memory_space<vmem>>, vector<1x64x64xf32>
    %86 = vector.shape_cast %85 : vector<1x64x64xf32> to vector<64x64xf32>
    %87 = arith.addf %84, %86 : vector<64x64xf32>
    %cst_61 = arith.constant dense<0xFF800000> : vector<64xf32>
    %88 = vector.multi_reduction <maximumf>, %87, %cst_61 [1] : vector<64x64xf32> to vector<64xf32>
    %89 = vector.shape_cast %88 : vector<64xf32> to vector<64x1xf32>
    %90 = vector.broadcast %89 : vector<64x1xf32> to vector<64x64xf32>
    %91 = arith.subf %87, %90 : vector<64x64xf32>
    %92 = math.exp %91 : vector<64x64xf32>
    %cst_62 = arith.constant dense<0.000000e+00> : vector<64xf32>
    %93 = vector.multi_reduction <add>, %92, %cst_62 [1] : vector<64x64xf32> to vector<64xf32>
    %94 = vector.shape_cast %93 : vector<64xf32> to vector<64x1xf32>
    %95 = tpu.reciprocal %94 {approx = true} : vector<64x1xf32> -> vector<64x1xf32>
    %96 = arith.truncf %92 : vector<64x64xf32> to vector<64x64xbf16>
    %cst_63 = arith.constant dense<0.000000e+00> : vector<64x8xf32>
    %97 = tpu.matmul %96, %83, %cst_63 {dimension_numbers = #tpu.dot_dimension_numbers<[1], [0], [0], [1], [0, 0, 1, 1], [], []>} : vector<64x64xbf16>, vector<64x8xbf16>, vector<64x8xf32> -> vector<64x8xf32>
    %98 = vector.broadcast %95 : vector<64x1xf32> to vector<64x8xf32>
    %99 = arith.mulf %97, %98 : vector<64x8xf32>
    %100 = arith.truncf %99 : vector<64x8xf32> to vector<64x8xbf16>
    %c0_64 = arith.constant 0 : index
    %c24_65 = arith.constant 24 : index
    %101 = vector.load %arg12[%c0_64, %c24_65] : memref<64x32xbf16, #tpu.memory_space<vmem>>, vector<64x8xbf16>
    tpu.vector_store %arg12[%c0_64, %c24_65], %100 {strides = array<i32>} : memref<64x32xbf16, #tpu.memory_space<vmem>>, vector<64x8xbf16>,
    %c0_66 = arith.constant 0 : index
    %c0_67 = arith.constant 0 : index
    %102 = vector.load %arg12[%c0_66, %c0_67] : memref<64x32xbf16, #tpu.memory_space<vmem>>, vector<64x32xbf16>
    %c0_68 = arith.constant 0 : index
    %c0_69 = arith.constant 0 : index
    %103 = vector.load %arg7[%c0_68, %c0_69] : memref<32x32xbf16, #tpu.memory_space<vmem>>, vector<32x32xbf16>
    %cst_70 = arith.constant dense<0.000000e+00> : vector<64x32xf32>
    %104 = tpu.matmul %102, %103, %cst_70 {dimension_numbers = #tpu.dot_dimension_numbers<[1], [0], [0], [1], [0, 0, 1, 1], [], []>} : vector<64x32xbf16>, vector<32x32xbf16>, vector<64x32xf32> -> vector<64x32xf32>
    %c0_71 = arith.constant 0 : index
    %c0_72 = arith.constant 0 : index
    %105 = vector.load %arg8[%c0_71, %c0_72] : memref<1x32xf32, #tpu.memory_space<vmem>>, vector<1x32xf32>
    %106 = vector.broadcast %105 : vector<1x32xf32> to vector<64x32xf32>
    %107 = arith.addf %104, %106 : vector<64x32xf32>
    %c0_73 = arith.constant 0 : index
    %c0_74 = arith.constant 0 : index
    %c0_75 = arith.constant 0 : index
    %108 = vector.load %arg2[%c0_73, %c0_74, %c0_75] : memref<1x64x32xf32, #tpu.memory_space<vmem>>, vector<1x64x32xf32>
    %109 = vector.shape_cast %108 : vector<1x64x32xf32> to vector<64x32xf32>
    %110 = arith.addf %109, %107 : vector<64x32xf32>
    %111 = arith.truncf %110 : vector<64x32xf32> to vector<64x32xbf16>
    %c0_76 = arith.constant 0 : index
    %c0_77 = arith.constant 0 : index
    %c0_78 = arith.constant 0 : index
    %112 = vector.load %arg10[%c0_76, %c0_77, %c0_78] : memref<1x64x32xbf16, #tpu.memory_space<vmem>>, vector<1x64x32xbf16>
    %113 = vector.shape_cast %112 : vector<1x64x32xbf16> to vector<64x32xbf16>
    %114 = vector.shape_cast %111 : vector<64x32xbf16> to vector<1x64x32xbf16>
    tpu.vector_store %arg10[%c0_76, %c0_77, %c0_78], %114 {strides = array<i32>} : memref<1x64x32xbf16, #tpu.memory_space<vmem>>, vector<1x64x32xbf16>,
    return
  }
  func.func @transform_0(%arg0: i32, %arg1: i32) -> (i32, i32, i32) {
    %c0_i32 = arith.constant 0 : i32
    %c0_i32_0 = arith.constant 0 : i32
    return %arg0, %arg1, %c0_i32 : i32, i32, i32
  }
  func.func @transform_1(%arg0: i32, %arg1: i32) -> (i32, i32, i32) {
    %c0_i32 = arith.constant 0 : i32
    %c0_i32_0 = arith.constant 0 : i32
    return %arg0, %arg1, %c0_i32 : i32, i32, i32
  }
  func.func @transform_2(%arg0: i32, %arg1: i32) -> (i32, i32, i32) {
    %c0_i32 = arith.constant 0 : i32
    %c0_i32_0 = arith.constant 0 : i32
    %c0_i32_1 = arith.constant 0 : i32
    return %arg0, %c0_i32, %c0_i32_0 : i32, i32, i32
  }
  func.func @transform_3(%arg0: i32, %arg1: i32) -> (i32, i32) {
    %c0_i32 = arith.constant 0 : i32
    %c0_i32_0 = arith.constant 0 : i32
    %c0_i32_1 = arith.constant 0 : i32
    return %c0_i32, %c0_i32_0 : i32, i32
  }
  func.func @transform_4(%arg0: i32, %arg1: i32) -> (i32, i32) {
    %c0_i32 = arith.constant 0 : i32
    %c0_i32_0 = arith.constant 0 : i32
    %c0_i32_1 = arith.constant 0 : i32
    return %c0_i32, %c0_i32_0 : i32, i32
  }
  func.func @transform_5(%arg0: i32, %arg1: i32) -> (i32, i32) {
    %c0_i32 = arith.constant 0 : i32
    %c0_i32_0 = arith.constant 0 : i32
    %c0_i32_1 = arith.constant 0 : i32
    return %c0_i32, %c0_i32_0 : i32, i32
  }
  func.func @transform_6(%arg0: i32, %arg1: i32) -> (i32, i32) {
    %c0_i32 = arith.constant 0 : i32
    %c0_i32_0 = arith.constant 0 : i32
    %c0_i32_1 = arith.constant 0 : i32
    return %c0_i32, %c0_i32_0 : i32, i32
  }
  func.func @transform_7(%arg0: i32, %arg1: i32) -> (i32, i32, i32) {
    %c0_i32 = arith.constant 0 : i32
    %c0_i32_0 = arith.constant 0 : i32
    %c0_i32_1 = arith.constant 0 : i32
    return %c0_i32, %arg1, %c0_i32_0 : i32, i32, i32
  }
  func.func @transform_8(%arg0: i32, %arg1: i32) -> (i32, i32, i32) {
    %c0_i32 = arith.constant 0 : i32
    %c0_i32_0 = arith.constant 0 : i32
    return %arg0, %arg1, %c0_i32 : i32, i32, i32
  }
}

module attributes {stable_mosaic.version = 11 : i64} {
  func.func @_mlp_kernel(%arg0: i32, %arg1: memref<128x32xbf16, #tpu.memory_space<vmem>>, %arg2: memref<1x32xf32, #tpu.memory_space<vmem>>, %arg3: memref<1x32xf32, #tpu.memory_space<vmem>>, %arg4: memref<32x128xbf16, #tpu.memory_space<vmem>>, %arg5: memref<1x128xf32, #tpu.memory_space<vmem>>, %arg6: memref<128x32xbf16, #tpu.memory_space<vmem>>, %arg7: memref<1x32xf32, #tpu.memory_space<vmem>>, %arg8: memref<128x1xf32, #tpu.memory_space<vmem>>, %arg9: memref<128x32xf32, #tpu.memory_space<vmem>>) attributes {dimension_semantics = [#tpu.dimension_semantics<parallel>], iteration_bounds = array<i64: 1>, scalar_prefetch = 0 : i64, scratch_operands = 0 : i64, tpu.core_type = #tpu.core_type<tc>, window_params = [{transform_indices = @transform_0, window_bounds = array<i64: 128, 32>}, {pipeline_mode = #tpu.pipeline_mode<synchronous>, transform_indices = @transform_1, window_bounds = array<i64: 1, 32>}, {pipeline_mode = #tpu.pipeline_mode<synchronous>, transform_indices = @transform_2, window_bounds = array<i64: 1, 32>}, {pipeline_mode = #tpu.pipeline_mode<synchronous>, transform_indices = @transform_3, window_bounds = array<i64: 32, 128>}, {pipeline_mode = #tpu.pipeline_mode<synchronous>, transform_indices = @transform_4, window_bounds = array<i64: 1, 128>}, {pipeline_mode = #tpu.pipeline_mode<synchronous>, transform_indices = @transform_5, window_bounds = array<i64: 128, 32>}, {pipeline_mode = #tpu.pipeline_mode<synchronous>, transform_indices = @transform_6, window_bounds = array<i64: 1, 32>}, {transform_indices = @transform_7, window_bounds = array<i64: 128, 1>}, {transform_indices = @transform_8, window_bounds = array<i64: 128, 32>}]} {
    %c0 = arith.constant 0 : index
    %c0_0 = arith.constant 0 : index
    %0 = vector.load %arg1[%c0, %c0_0] : memref<128x32xbf16, #tpu.memory_space<vmem>>, vector<128x32xbf16>
    %1 = arith.extf %0 : vector<128x32xbf16> to vector<128x32xf32>
    %cst = arith.constant dense<0.000000e+00> : vector<128xf32>
    %2 = vector.multi_reduction <add>, %1, %cst [1] : vector<128x32xf32> to vector<128xf32>
    %3 = vector.shape_cast %2 : vector<128xf32> to vector<128x1xf32>
    %cst_1 = arith.constant 3.200000e+01 : f32
    %4 = vector.broadcast %cst_1 : f32 to vector<128x1xf32>
    %5 = arith.divf %3, %4 : vector<128x1xf32>
    %6 = vector.broadcast %5 : vector<128x1xf32> to vector<128x32xf32>
    %7 = arith.subf %1, %6 : vector<128x32xf32>
    %8 = arith.mulf %7, %7 : vector<128x32xf32>
    %cst_2 = arith.constant dense<0.000000e+00> : vector<128xf32>
    %9 = vector.multi_reduction <add>, %8, %cst_2 [1] : vector<128x32xf32> to vector<128xf32>
    %10 = vector.shape_cast %9 : vector<128xf32> to vector<128x1xf32>
    %cst_3 = arith.constant 3.200000e+01 : f32
    %11 = vector.broadcast %cst_3 : f32 to vector<128x1xf32>
    %12 = arith.divf %10, %11 : vector<128x1xf32>
    %13 = vector.broadcast %5 : vector<128x1xf32> to vector<128x32xf32>
    %14 = arith.subf %1, %13 : vector<128x32xf32>
    %cst_4 = arith.constant 9.99999974E-6 : f32
    %15 = vector.broadcast %cst_4 : f32 to vector<128x1xf32>
    %16 = arith.addf %12, %15 : vector<128x1xf32>
    %17 = math.rsqrt %16 : vector<128x1xf32>
    %18 = vector.broadcast %17 : vector<128x1xf32> to vector<128x32xf32>
    %19 = arith.mulf %14, %18 : vector<128x32xf32>
    %c0_5 = arith.constant 0 : index
    %c0_6 = arith.constant 0 : index
    %20 = vector.load %arg2[%c0_5, %c0_6] : memref<1x32xf32, #tpu.memory_space<vmem>>, vector<1x32xf32>
    %21 = vector.broadcast %20 : vector<1x32xf32> to vector<128x32xf32>
    %22 = arith.mulf %19, %21 : vector<128x32xf32>
    %c0_7 = arith.constant 0 : index
    %c0_8 = arith.constant 0 : index
    %23 = vector.load %arg3[%c0_7, %c0_8] : memref<1x32xf32, #tpu.memory_space<vmem>>, vector<1x32xf32>
    %24 = vector.broadcast %23 : vector<1x32xf32> to vector<128x32xf32>
    %25 = arith.addf %22, %24 : vector<128x32xf32>
    %26 = arith.truncf %25 : vector<128x32xf32> to vector<128x32xbf16>
    %c0_9 = arith.constant 0 : index
    %c0_10 = arith.constant 0 : index
    %27 = vector.load %arg4[%c0_9, %c0_10] : memref<32x128xbf16, #tpu.memory_space<vmem>>, vector<32x128xbf16>
    %cst_11 = arith.constant dense<0.000000e+00> : vector<128x128xf32>
    %28 = tpu.matmul %26, %27, %cst_11 {dimension_numbers = #tpu.dot_dimension_numbers<[1], [0], [0], [1], [0, 0, 1, 1], [], []>} : vector<128x32xbf16>, vector<32x128xbf16>, vector<128x128xf32> -> vector<128x128xf32>
    %c0_12 = arith.constant 0 : index
    %c0_13 = arith.constant 0 : index
    %29 = vector.load %arg5[%c0_12, %c0_13] : memref<1x128xf32, #tpu.memory_space<vmem>>, vector<1x128xf32>
    %30 = vector.broadcast %29 : vector<1x128xf32> to vector<128x128xf32>
    %31 = arith.addf %28, %30 : vector<128x128xf32>
    %cst_14 = arith.constant 5.000000e-01 : f32
    %32 = vector.broadcast %cst_14 : f32 to vector<128x128xf32>
    %33 = arith.mulf %32, %31 : vector<128x128xf32>
    %cst_15 = arith.constant 0.707106769 : f32
    %34 = vector.broadcast %cst_15 : f32 to vector<128x128xf32>
    %35 = arith.mulf %31, %34 : vector<128x128xf32>
    %36 = math.erf %35 : vector<128x128xf32>
    %cst_16 = arith.constant 1.000000e+00 : f32
    %37 = vector.broadcast %cst_16 : f32 to vector<128x128xf32>
    %38 = arith.addf %37, %36 : vector<128x128xf32>
    %39 = arith.mulf %33, %38 : vector<128x128xf32>
    %40 = arith.truncf %39 : vector<128x128xf32> to vector<128x128xbf16>
    %c0_17 = arith.constant 0 : index
    %c0_18 = arith.constant 0 : index
    %41 = vector.load %arg6[%c0_17, %c0_18] : memref<128x32xbf16, #tpu.memory_space<vmem>>, vector<128x32xbf16>
    %cst_19 = arith.constant dense<0.000000e+00> : vector<128x32xf32>
    %42 = tpu.matmul %40, %41, %cst_19 {dimension_numbers = #tpu.dot_dimension_numbers<[1], [0], [0], [1], [0, 0, 1, 1], [], []>} : vector<128x128xbf16>, vector<128x32xbf16>, vector<128x32xf32> -> vector<128x32xf32>
    %c0_20 = arith.constant 0 : index
    %c0_21 = arith.constant 0 : index
    %43 = vector.load %arg7[%c0_20, %c0_21] : memref<1x32xf32, #tpu.memory_space<vmem>>, vector<1x32xf32>
    %44 = vector.broadcast %43 : vector<1x32xf32> to vector<128x32xf32>
    %45 = arith.addf %42, %44 : vector<128x32xf32>
    %46 = arith.addf %1, %45 : vector<128x32xf32>
    %c0_22 = arith.constant 0 : index
    %c0_23 = arith.constant 0 : index
    %47 = vector.load %arg8[%c0_22, %c0_23] : memref<128x1xf32, #tpu.memory_space<vmem>>, vector<128x1xf32>
    %48 = vector.broadcast %47 : vector<128x1xf32> to vector<128x32xf32>
    %49 = arith.mulf %46, %48 : vector<128x32xf32>
    %c0_24 = arith.constant 0 : index
    %c0_25 = arith.constant 0 : index
    %50 = vector.load %arg9[%c0_24, %c0_25] : memref<128x32xf32, #tpu.memory_space<vmem>>, vector<128x32xf32>
    tpu.vector_store %arg9[%c0_24, %c0_25], %49 {strides = array<i32>} : memref<128x32xf32, #tpu.memory_space<vmem>>, vector<128x32xf32>,
    return
  }
  func.func @transform_0(%arg0: i32) -> (i32, i32) {
    %c0_i32 = arith.constant 0 : i32
    %c0_i32_0 = arith.constant 0 : i32
    return %arg0, %c0_i32 : i32, i32
  }
  func.func @transform_1(%arg0: i32) -> (i32, i32) {
    %c0_i32 = arith.constant 0 : i32
    %c0_i32_0 = arith.constant 0 : i32
    %c0_i32_1 = arith.constant 0 : i32
    return %c0_i32, %c0_i32_0 : i32, i32
  }
  func.func @transform_2(%arg0: i32) -> (i32, i32) {
    %c0_i32 = arith.constant 0 : i32
    %c0_i32_0 = arith.constant 0 : i32
    %c0_i32_1 = arith.constant 0 : i32
    return %c0_i32, %c0_i32_0 : i32, i32
  }
  func.func @transform_3(%arg0: i32) -> (i32, i32) {
    %c0_i32 = arith.constant 0 : i32
    %c0_i32_0 = arith.constant 0 : i32
    %c0_i32_1 = arith.constant 0 : i32
    return %c0_i32, %c0_i32_0 : i32, i32
  }
  func.func @transform_4(%arg0: i32) -> (i32, i32) {
    %c0_i32 = arith.constant 0 : i32
    %c0_i32_0 = arith.constant 0 : i32
    %c0_i32_1 = arith.constant 0 : i32
    return %c0_i32, %c0_i32_0 : i32, i32
  }
  func.func @transform_5(%arg0: i32) -> (i32, i32) {
    %c0_i32 = arith.constant 0 : i32
    %c0_i32_0 = arith.constant 0 : i32
    %c0_i32_1 = arith.constant 0 : i32
    return %c0_i32, %c0_i32_0 : i32, i32
  }
  func.func @transform_6(%arg0: i32) -> (i32, i32) {
    %c0_i32 = arith.constant 0 : i32
    %c0_i32_0 = arith.constant 0 : i32
    %c0_i32_1 = arith.constant 0 : i32
    return %c0_i32, %c0_i32_0 : i32, i32
  }
  func.func @transform_7(%arg0: i32) -> (i32, i32) {
    %c0_i32 = arith.constant 0 : i32
    %c0_i32_0 = arith.constant 0 : i32
    return %arg0, %c0_i32 : i32, i32
  }
  func.func @transform_8(%arg0: i32) -> (i32, i32) {
    %c0_i32 = arith.constant 0 : i32
    %c0_i32_0 = arith.constant 0 : i32
    return %arg0, %c0_i32 : i32, i32
  }
}

</mosaic_0001>

<bundles_post_ra>
// kernel: nat_cross_layer_forward.3
= control target key start
LH: loop header
LB: loop body
LE: loop exit
PB: predicated region body
PF: predicated region fallthrough
CT: control target
= control target key end

     0   :  { %10 = vsyncpa [#allocation3], 0  ;;  %s1208_s0 = inlined_call_operand.hbm [shape: f32[128,32], index: 0, kind: input, shape index: {}]   ;;  %s1209_s1 = inlined_call_operand.hbm [shape: f32[1,32], index: 1, kind: input, shape index: {}]   ;;  %s1210_s2 = inlined_call_operand.hbm [shape: f32[1,32], index: 2, kind: input, shape index: {}]   ;;  %s1211_s3 = inlined_call_operand.hbm [shape: bf16[32,64], index: 3, kind: input, shape index: {}]   ;;  %s1212_s4 = inlined_call_operand.hbm [shape: f32[1,64], index: 4, kind: input, shape index: {}]   ;;  %s1213_s5 = inlined_call_operand.hbm [shape: bf16[128,64], index: 5, kind: output, shape index: {}]  }
   0x1   :  { %11 = vsyncpa [#allocation6], 0 }
   0x2   :  { %12 = vsyncpa [#allocation9], 0 }
   0x3   :  { %13 = vsyncpa [#allocation4], 0  ;;  %s871_s18 = smov [#allocation5]   ;;  %s872_s20 = smov [#allocation8]  }
   0x4   :  { %s32_s19 = sshll.u32 %s871_s18, 4  ;;  %s51_s21 = sshll.u32 %s872_s20, 4  ;;  %s33_s19 = int_to_ptr.vmem [resolvable:$true] %s32_s19  ;;  %s911_s21 = int_to_ptr.vmem [resolvable:$true] %s51_s21 }
   0x5   :  { %s731_s24 = scalar_lea.hbm %s1209_s1, 16 }
   0x6   :  { %p732_p0 = scmp.ne.s32.totalorder %s1209_s1, %s731_s24  ;;  %p735_p1 = scmp.lt.u32.totalorder %s731_s24, %s1209_s1 }
   0x8   :  { %p737_p2 = pnand %p735_p1, %p732_p0 }
   0xa   :  { %740 = shalt.err (!%p737_p2)
}
   0xb   :  { %s741_s29 = scalar_lea.vmem %s33_s19, 16  ;;  %s745_s30 = scalar_lea.vmem %s33_s19, 32 }
   0xc   :  { %p742_p3 = scmp.ne.s32.totalorder %s33_s19, %s741_s29  ;;  %p746_p4 = scmp.lt.s32.totalorder %s33_s19, %s33_s19 }
   0xd   :  { %p747_p5 = scmp.lt.s32.totalorder %s745_s30, %s741_s29 }
   0xf   :  { %p748_p6 = por %p747_p5, %p746_p4 }
  0x11   :  { %p749_p7 = pnand %p748_p6, %p742_p3 }
  0x13   :  { %752 = shalt.err (!%p749_p7)
}
  0x14   :  { %35 = dma.hbm_to_vmem [thread:$0]  %s1209_s1, 16, %s33_s19, [#allocation6]  }
  0x15   :  { %s753_s10 = scalar_lea.hbm %s1211_s3, 256 }
  0x16   :  { %p754_p8 = scmp.ne.s32.totalorder %s1211_s3, %s753_s10  ;;  %p757_p9 = scmp.lt.u32.totalorder %s753_s10, %s1211_s3 }
  0x18   :  { %p759_p10 = pnand %p757_p9, %p754_p8 }
  0x1a   :  { %762 = shalt.err (!%p759_p10)
}
  0x1b   :  { %s763_s15 = scalar_lea.vmem %s911_s21, 256  ;;  %p768_p12 = scmp.lt.s32.totalorder %s911_s21, %s911_s21 }
  0x1c   :  { %p764_p11 = scmp.ne.s32.totalorder %s911_s21, %s763_s15  ;;  %p769_p13 = scmp.lt.s32.totalorder %s763_s15, %s763_s15 }
  0x1e   :  { %p770_p0 = por %p769_p13, %p768_p12 }
  0x20   :  { %p771_p1 = pnand %p770_p0, %p764_p11 }
  0x22   :  { %774 = shalt.err (!%p771_p1)
}
  0x23   :  { %s873_s1 = smov 64   ;;  %s874_s16 = smov 4  }
  0x24   :  { %57 = dma.hbm_to_vmem [thread:$0]  %s1211_s3, 256, %s911_s21, [#allocation9], %s873_s1, %s873_s1, %s874_s16  }
  0x25   :  { %s875_s19 = smov [#allocation2]   ;;  %s775_s24 = scalar_lea.hbm %s1208_s0, 2048 }
  0x26   :  { %s19_s20 = sshll.u32 %s875_s19, 4  ;;  %p776_p2 = scmp.ne.s32.totalorder %s1208_s0, %s775_s24  ;;  %s20_s20 = int_to_ptr.vmem [resolvable:$true] %s19_s20 }
  0x27   :  { %p779_p3 = scmp.lt.u32.totalorder %s775_s24, %s1208_s0 }
  0x29   :  { %p781_p4 = pnand %p779_p3, %p776_p2 }
  0x2b   :  { %784 = shalt.err (!%p781_p4)
}
  0x2c   :  { %s785_s29 = scalar_lea.vmem %s20_s20, 2048  ;;  %p790_p6 = scmp.lt.s32.totalorder %s20_s20, %s20_s20 }
  0x2d   :  { %p786_p5 = scmp.ne.s32.totalorder %s20_s20, %s785_s29  ;;  %p791_p7 = scmp.lt.s32.totalorder %s785_s29, %s785_s29 }
  0x2f   :  { %p792_p8 = por %p791_p7, %p790_p6 }
  0x31   :  { %p793_p9 = pnand %p792_p8, %p786_p5 }
  0x33   :  { %796 = shalt.err (!%p793_p9)
}
  0x34   :  { %s876_s3 = smov 128   ;;  %s877_s21 = smov 8  }
  0x35   :  { %25 = dma.hbm_to_vmem [thread:$0]  %s1208_s0, 2048, %s20_s20, [#allocation3], %s876_s3, %s876_s3, %s877_s21  }
  0x36   :  { %s878_s7 = smov [#allocation7]   ;;  %s879_s9 = smov [#allocation10]  }
  0x37   :  { %s42_s8 = sshll.u32 %s878_s7, 4  ;;  %s64_s10 = sshll.u32 %s879_s9, 4  ;;  %s43_s8 = int_to_ptr.vmem [resolvable:$true] %s42_s8  ;;  %s65_s10 = int_to_ptr.vmem [resolvable:$true] %s64_s10 }
  0x38   :  { %s797_s13 = scalar_lea.hbm %s1210_s2, 16 }
  0x39   :  { %p798_p10 = scmp.ne.s32.totalorder %s1210_s2, %s797_s13  ;;  %p801_p11 = scmp.lt.u32.totalorder %s797_s13, %s1210_s2 }
  0x3b   :  { %p803_p12 = pnand %p801_p11, %p798_p10 }
  0x3d   :  { %806 = shalt.err (!%p803_p12)
}
  0x3e   :  { %s807_s0 = scalar_lea.vmem %s43_s8, 16  ;;  %s811_s19 = scalar_lea.vmem %s43_s8, 32 }
  0x3f   :  { %p808_p13 = scmp.ne.s32.totalorder %s43_s8, %s807_s0  ;;  %p812_p0 = scmp.lt.s32.totalorder %s43_s8, %s43_s8 }
  0x40   :  { %p813_p1 = scmp.lt.s32.totalorder %s811_s19, %s807_s0 }
  0x42   :  { %p814_p2 = por %p813_p1, %p812_p0 }
  0x44   :  { %p815_p3 = pnand %p814_p2, %p808_p13 }
  0x46   :  { %818 = shalt.err (!%p815_p3)
}
  0x47   :  { %45 = dma.hbm_to_vmem [thread:$0]  %s1210_s2, 16, %s43_s8, [#allocation6]  }
  0x48   :  { %s819_s25 = scalar_lea.hbm %s1212_s4, 16 }
  0x49   :  { %p820_p4 = scmp.ne.s32.totalorder %s1212_s4, %s819_s25  ;;  %p823_p5 = scmp.lt.u32.totalorder %s819_s25, %s1212_s4 }
  0x4b   :  { %p825_p6 = pnand %p823_p5, %p820_p4 }
  0x4d   :  { %828 = shalt.err (!%p825_p6)
}
  0x4e   :  { %s829_s3 = scalar_lea.vmem %s65_s10, 16  ;;  %s833_s21 = scalar_lea.vmem %s65_s10, 32 }
  0x4f   :  { %p830_p7 = scmp.ne.s32.totalorder %s65_s10, %s829_s3  ;;  %p834_p8 = scmp.lt.s32.totalorder %s65_s10, %s65_s10 }
  0x50   :  { %p835_p9 = scmp.lt.s32.totalorder %s833_s21, %s829_s3 }
  0x52   :  { %p836_p10 = por %p835_p9, %p834_p8 }
  0x54   :  { %p837_p11 = pnand %p836_p10, %p830_p7 }
  0x56   :  { %840 = shalt.err (!%p837_p11)
}
  0x57   :  { %67 = dma.hbm_to_vmem [thread:$0]  %s1212_s4, 16, %s65_s10, [#allocation9]  }
  0x58   :  { %863 = dma.done.wait [#allocation3], 2048  }
  0x59   :  { %864 = vsyncadd [#allocation3], 4294965248 }
  0x5a   :  { %865 = dma.done.wait [#allocation6], 32  }
  0x5b   :  { %866 = vsyncadd [#allocation6], 4294967264 }
  0x5c   :  { %867 = dma.done.wait [#allocation9], 272  }
  0x5d   :  { %868 = vsyncadd [#allocation9], 4294967024  ;;  %vm100_vm0 = vcmask 261120   ;;  %v84_v0 = vld [vmem:[#allocation2] sm:$0xff]  ;;  %v85_v2 = vld [vmem:[#allocation2 + $0x8] sm:$0xff]  ;;  %vm572_vm1 = vcmask 519168  }
  0x5e   :  { %v92_v1 = vld [vmem:[#allocation2 + $0x40] sm:$0xff]  ;;  %v101_v3 = vsel %vm100_vm0, %v84_v0, 0.0  ;;  %v93_v5 = vld [vmem:[#allocation2 + $0x48] sm:$0xff]  ;;  %v104_v6 = vsel %vm100_vm0, %v85_v2, 0.0  ;;  %v86_v8 = vld [vmem:[#allocation2 + $0x10] sm:$0xff]  ;;  %s880_s4 = smov [#allocation11]  }
  0x5f   :  { %v125_v4 = vsel %vm100_vm0, %v92_v1, 0.0  ;;  %102 = vadd.xlane.f32.xlu0 %v101_v3  ;;  %v128_v7 = vsel %vm100_vm0, %v93_v5, 0.0  ;;  %v87_v9 = vld [vmem:[#allocation2 + $0x18] sm:$0xff]  ;;  %v107_v10 = vsel %vm100_vm0, %v86_v8, 0.0  ;;  %v987_v12 = vld [vmem:[#allocation2 + $0x50] sm:$0xff]  ;;  %v995_v16 = vld [vmem:[#allocation2 + $0x20] sm:$0xff] }
  0x60   :  { %126 = vadd.xlane.f32.xlu1 %v125_v4  ;;  %v110_v11 = vsel %vm100_vm0, %v87_v9, 0.0  ;;  %v989_v13 = vld [vmem:[#allocation2 + $0x58] sm:$0xff]  ;;  %v131_v14 = vsel %vm100_vm0, %v987_v12, 0.0  ;;  %v997_v17 = vld [vmem:[#allocation2 + $0x28] sm:$0xff]  ;;  %v113_v18 = vsel %vm100_vm0, %v995_v16, 0.0  ;;  %v1003_v20 = vld [vmem:[#allocation2 + $0x60] sm:$0xff] }
  0x61   :  { %v134_v15 = vsel %vm100_vm0, %v989_v13, 0.0  ;;  %v116_v19 = vsel %vm100_vm0, %v997_v17, 0.0  ;;  %v1005_v21 = vld [vmem:[#allocation2 + $0x68] sm:$0xff]  ;;  %v137_v22 = vsel %vm100_vm0, %v1003_v20, 0.0  ;;  %v1011_v24 = vld [vmem:[#allocation2 + $0x30] sm:$0xff]  ;;  %v1013_v25 = vld [vmem:[#allocation2 + $0x38] sm:$0xff] }
  0x62   :  { %v140_v23 = vsel %vm100_vm0, %v1005_v21, 0.0  ;;  %v119_v26 = vsel %vm100_vm0, %v1011_v24, 0.0  ;;  %v122_v27 = vsel %vm100_vm0, %v1013_v25, 0.0  ;;  %v1019_v28 = vld [vmem:[#allocation2 + $0x70] sm:$0xff]  ;;  %v1021_v29 = vld [vmem:[#allocation2 + $0x78] sm:$0xff]  ;;  %s594_s6 = sshll.u32 %s880_s4, 4  ;;  %s595_s6 = int_to_ptr.vmem [resolvable:$true] %s594_s6 }
  0x63   :  { %105 = vadd.xlane.f32.xlu0 %v104_v6  ;;  %v143_v30 = vsel %vm100_vm0, %v1019_v28, 0.0  ;;  %v146_v31 = vsel %vm100_vm0, %v1021_v29, 0.0  ;;  %s841_s7 = scalar_lea.vmem %s595_s6, 1024  ;;  %p846_p13 = scmp.lt.s32.totalorder %s595_s6, %s595_s6 }
  0x64   :  { %129 = vadd.xlane.f32.xlu1 %v128_v7  ;;  %p842_p12 = scmp.ne.s32.totalorder %s595_s6, %s841_s7  ;;  %p847_p0 = scmp.lt.s32.totalorder %s841_s7, %s841_s7 }
  0x66   :  { %p848_p1 = por %p847_p0, %p846_p13 }
  0x67   :  { %108 = vadd.xlane.f32.xlu0 %v107_v10 }
  0x68   :  { %111 = vadd.xlane.f32.xlu1 %v110_v11  ;;  %p849_p2 = pnand %p848_p1, %p842_p12 }
  0x6b   :  { %132 = vadd.xlane.f32.xlu0 %v131_v14 }
  0x6c   :  { %135 = vadd.xlane.f32.xlu1 %v134_v15 }
  0x6f   :  { %114 = vadd.xlane.f32.xlu0 %v113_v18 }
  0x70   :  { %117 = vadd.xlane.f32.xlu1 %v116_v19 }
  0x73   :  { %138 = vadd.xlane.f32.xlu0 %v137_v22 }
  0x74   :  { %141 = vadd.xlane.f32.xlu1 %v140_v23 }
  0x77   :  { %120 = vadd.xlane.f32.xlu0 %v119_v26 }
  0x78   :  { %123 = vadd.xlane.f32.xlu1 %v122_v27 }
  0x7b   :  { %144 = vadd.xlane.f32.xlu0 %v143_v30 }
  0x7c   :  { %147 = vadd.xlane.f32.xlu1 %v146_v31 }
  0xec   :  { %v103_v32 = vpop.xlane.xlu0 %102 }
  0xed   :  { %v127_v33 = vpop.xlane.xlu1 %126  ;;  %v150_v34 = vmul.f32 0.03125, %v103_v32 }
  0xee   :  { %v158_v35 = vmul.f32 0.03125, %v127_v33 }
  0xef   :  { %v1027_v36 = vsub.f32 %v84_v0, %v150_v34 }
  0xf0   :  { %v1029_v37 = vsub.f32 %v92_v1, %v158_v35  ;;  %v106_v38 = vpop.xlane.xlu0 %105 }
  0xf1   :  { %v130_v39 = vpop.xlane.xlu1 %129  ;;  %v151_v40 = vmul.f32 0.03125, %v106_v38  ;;  %v182_v42 = vmul.f32 %v1027_v36, %v1027_v36 }
  0xf2   :  { %v159_v41 = vmul.f32 0.03125, %v130_v39  ;;  %v190_v43 = vmul.f32 %v1029_v37, %v1029_v37 }
  0xf3   :  { %v1035_v44 = vsub.f32 %v85_v2, %v151_v40  ;;  %v198_v46 = vsel %vm100_vm0, %v182_v42, 0.0 }
  0xf4   :  { %v1037_v45 = vsub.f32 %v93_v5, %v159_v41  ;;  %199 = vadd.xlane.f32.xlu0 %v198_v46  ;;  %v109_v47 = vpop.xlane.xlu0 %108  ;;  %v222_v49 = vsel %vm100_vm0, %v190_v43, 0.0 }
  0xf5   :  { %v112_v48 = vpop.xlane.xlu1 %111  ;;  %v152_v50 = vmul.f32 0.03125, %v109_v47  ;;  %v183_v52 = vmul.f32 %v1035_v44, %v1035_v44 }
  0xf6   :  { %v153_v51 = vmul.f32 0.03125, %v112_v48  ;;  %v191_v53 = vmul.f32 %v1037_v45, %v1037_v45 }
  0xf7   :  { %v1045_v54 = vsub.f32 %v86_v8, %v152_v50  ;;  %v201_v56 = vsel %vm100_vm0, %v183_v52, 0.0 }
  0xf8   :  { %v1047_v55 = vsub.f32 %v87_v9, %v153_v51  ;;  %223 = vadd.xlane.f32.xlu0 %v222_v49  ;;  %202 = vadd.xlane.f32.xlu1 %v201_v56  ;;  %v133_v57 = vpop.xlane.xlu0 %132  ;;  %v225_v59 = vsel %vm100_vm0, %v191_v53, 0.0  ;;  %v698_v53 = vld [vmem:[#allocation8 + $0x8] sm:$0xff]  }
  0xf9   :  { %v136_v58 = vpop.xlane.xlu1 %135  ;;  %v160_v60 = vmul.f32 0.03125, %v133_v57  ;;  %v184_v62 = vmul.f32 %v1045_v54, %v1045_v54 }
  0xfa   :  { %v161_v61 = vmul.f32 0.03125, %v136_v58  ;;  %v185_v63 = vmul.f32 %v1047_v55, %v1047_v55 }
  0xfb   :  { %v1056_v0 = vsub.f32 %v987_v12, %v160_v60  ;;  %v204_v2 = vsel %vm100_vm0, %v184_v62, 0.0 }
  0xfc   :  { %v1059_v1 = vsub.f32 %v989_v13, %v161_v61  ;;  %226 = vadd.xlane.f32.xlu1 %v225_v59  ;;  %205 = vadd.xlane.f32.xlu0 %v204_v2  ;;  %v115_v3 = vpop.xlane.xlu0 %114  ;;  %v207_v5 = vsel %vm100_vm0, %v185_v63, 0.0 }
  0xfd   :  { %v118_v4 = vpop.xlane.xlu1 %117  ;;  %v154_v6 = vmul.f32 0.03125, %v115_v3  ;;  %v192_v8 = vmul.f32 %v1056_v0, %v1056_v0 }
  0xfe   :  { %v155_v7 = vmul.f32 0.03125, %v118_v4  ;;  %v193_v9 = vmul.f32 %v1059_v1, %v1059_v1 }
  0xff   :  { %v1068_v10 = vsub.f32 %v995_v16, %v154_v6  ;;  %v228_v12 = vsel %vm100_vm0, %v192_v8, 0.0 }
 0x100   :  { %v1071_v11 = vsub.f32 %v997_v17, %v155_v7  ;;  %208 = vadd.xlane.f32.xlu1 %v207_v5  ;;  %229 = vadd.xlane.f32.xlu0 %v228_v12  ;;  %v139_v13 = vpop.xlane.xlu0 %138  ;;  %v231_v15 = vsel %vm100_vm0, %v193_v9, 0.0 }
 0x101   :  { %v142_v14 = vpop.xlane.xlu1 %141  ;;  %v162_v18 = vmul.f32 0.03125, %v139_v13  ;;  %v186_v22 = vmul.f32 %v1068_v10, %v1068_v10 }
 0x102   :  { %v163_v19 = vmul.f32 0.03125, %v142_v14  ;;  %v187_v16 = vmul.f32 %v1071_v11, %v1071_v11 }
 0x103   :  { %v1080_v23 = vsub.f32 %v1003_v20, %v162_v18  ;;  %v210_v26 = vsel %vm100_vm0, %v186_v22, 0.0 }
 0x104   :  { %v1083_v17 = vsub.f32 %v1005_v21, %v163_v19  ;;  %232 = vadd.xlane.f32.xlu1 %v231_v15  ;;  %211 = vadd.xlane.f32.xlu0 %v210_v26  ;;  %v121_v27 = vpop.xlane.xlu0 %120  ;;  %v213_v31 = vsel %vm100_vm0, %v187_v16, 0.0 }
 0x105   :  { %v124_v30 = vpop.xlane.xlu1 %123  ;;  %v156_v32 = vmul.f32 0.03125, %v121_v27  ;;  %v194_v34 = vmul.f32 %v1080_v23, %v1080_v23 }
 0x106   :  { %v157_v33 = vmul.f32 0.03125, %v124_v30  ;;  %v195_v20 = vmul.f32 %v1083_v17, %v1083_v17 }
 0x107   :  { %v1092_v35 = vsub.f32 %v1011_v24, %v156_v32  ;;  %v234_v38 = vsel %vm100_vm0, %v194_v34, 0.0 }
 0x108   :  { %v1095_v21 = vsub.f32 %v1013_v25, %v157_v33  ;;  %214 = vadd.xlane.f32.xlu1 %v213_v31  ;;  %235 = vadd.xlane.f32.xlu0 %v234_v38  ;;  %v145_v39 = vpop.xlane.xlu0 %144  ;;  %v237_v41 = vsel %vm100_vm0, %v195_v20, 0.0  ;;  %v1118_v31 = vld [vmem:[#allocation5] ss:$0 sm:$0xff] }
 0x109   :  { %v148_v40 = vpop.xlane.xlu1 %147  ;;  %v164_v42 = vmul.f32 0.03125, %v145_v39  ;;  %v188_v46 = vmul.f32 %v1092_v35, %v1092_v35 }
 0x10a   :  { %v165_v43 = vmul.f32 0.03125, %v148_v40  ;;  %v189_v24 = vmul.f32 %v1095_v21, %v1095_v21 }
 0x10b   :  { %v1104_v47 = vsub.f32 %v1019_v28, %v164_v42  ;;  %v216_v48 = vsel %vm100_vm0, %v188_v46, 0.0 }
 0x10c   :  { %v1107_v25 = vsub.f32 %v1021_v29, %v165_v43  ;;  %238 = vadd.xlane.f32.xlu1 %v237_v41  ;;  %217 = vadd.xlane.f32.xlu0 %v216_v48  ;;  %v219_v49 = vsel %vm100_vm0, %v189_v24, 0.0  ;;  %v697_v29 = vld [vmem:[#allocation8] sm:$0xff]  }
 0x10d   :  { %v196_v50 = vmul.f32 %v1104_v47, %v1104_v47  ;;  %663 = vmatprep.subr.bf16.mxu0 %v697_v29  ;;  %683 = vmatprep.subr.bf16.mxu1 %v697_v29 }
 0x10e   :  { %v197_v51 = vmul.f32 %v1107_v25, %v1107_v25  ;;  %664 = vmatpush3.bf16.msra.mxu0 %v697_v29  ;;  %685 = vmatpush3.bf16.msra.mxu1 %v697_v29 }
 0x10f   :  { %v240_v52 = vsel %vm100_vm0, %v196_v50, 0.0  ;;  %665 = vmatprep.subr.bf16.mxu0 %v698_v53  ;;  %684 = vmatprep.subr.bf16.mxu1 %v698_v53 }
 0x110   :  { %220 = vadd.xlane.f32.xlu1 %v219_v49  ;;  %241 = vadd.xlane.f32.xlu0 %v240_v52  ;;  %v243_v28 = vsel %vm100_vm0, %v197_v51, 0.0 }
 0x112   :  { %666 = vmatpush3.bf16.msra.mxu0 %v698_v53  ;;  %686 = vmatpush3.bf16.msra.mxu1 %v698_v53 }
 0x114   :  { %244 = vadd.xlane.f32.xlu1 %v243_v28 }
 0x181   :  { %v200_v56 = vpop.xlane.xlu0 %199 }
 0x182   :  { %v246_v57 = vmul.f32 0.03125, %v200_v56 }
 0x184   :  { %v262_v58 = vadd.f32 1e-05, %v246_v57 }
 0x185   :  { %v203_v59 = vpop.xlane.xlu1 %202  ;;  %v224_v60 = vpop.xlane.xlu0 %223 }
 0x186   :  { %699 = vrsqrt.f32 %v262_v58  ;;  %v247_v61 = vmul.f32 0.03125, %v203_v59  ;;  %v254_v62 = vmul.f32 0.03125, %v224_v60 }
 0x188   :  { %v263_v63 = vadd.f32 1e-05, %v247_v61  ;;  %v270_v2 = vadd.f32 1e-05, %v254_v62 }
 0x189   :  { %v227_v3 = vpop.xlane.xlu1 %226  ;;  %v206_v4 = vpop.xlane.xlu0 %205 }
 0x18a   :  { %701 = vrsqrt.f32 %v263_v63  ;;  %v255_v5 = vmul.f32 0.03125, %v227_v3  ;;  %v248_v6 = vmul.f32 0.03125, %v206_v4 }
 0x18b   :  { %703 = vrsqrt.f32 %v270_v2 }
 0x18c   :  { %v271_v7 = vadd.f32 1e-05, %v255_v5  ;;  %v264_v8 = vadd.f32 1e-05, %v248_v6 }
 0x18d   :  { %v209_v9 = vpop.xlane.xlu1 %208  ;;  %v230_v12 = vpop.xlane.xlu0 %229 }
 0x18e   :  { %705 = vrsqrt.f32 %v271_v7  ;;  %v249_v13 = vmul.f32 0.03125, %v209_v9  ;;  %v256_v14 = vmul.f32 0.03125, %v230_v12 }
 0x18f   :  { %707 = vrsqrt.f32 %v264_v8 }
 0x190   :  { %v700_v15 = vpop.eup %699  ;;  %v265_v18 = vadd.f32 1e-05, %v249_v13  ;;  %v272_v19 = vadd.f32 1e-05, %v256_v14 }
 0x191   :  { %v233_v22 = vpop.xlane.xlu1 %232  ;;  %v212_v16 = vpop.xlane.xlu0 %211  ;;  %v294_v26 = vmul.f32 %v700_v15, %v1027_v36  ;;  %v1122_v36 = vld [vmem:[#allocation7] ss:$0 sm:$0xff] }
 0x192   :  { %709 = vrsqrt.f32 %v265_v18  ;;  %v257_v27 = vmul.f32 0.03125, %v233_v22  ;;  %v250_v30 = vmul.f32 0.03125, %v212_v16 }
 0x193   :  { %711 = vrsqrt.f32 %v272_v19  ;;  %v317_v41 = vmul.f32 %v1118_v31, %v294_v26 }
 0x194   :  { %v702_v32 = vpop.eup %701  ;;  %v273_v33 = vadd.f32 1e-05, %v257_v27  ;;  %v266_v34 = vadd.f32 1e-05, %v250_v30 }
 0x195   :  { %v704_v20 = vpop.eup %703  ;;  %v215_v38 = vpop.xlane.xlu1 %214  ;;  %v295_v40 = vmul.f32 %v702_v32, %v1035_v44  ;;  %v340_v44 = vadd.f32 %v1122_v36, %v317_v41 }
 0x196   :  { %v236_v39 = vpop.xlane.xlu0 %235  ;;  %713 = vrsqrt.f32 %v273_v33  ;;  %v251_v42 = vmul.f32 0.03125, %v215_v38  ;;  %v302_v46 = vmul.f32 %v704_v20, %v1029_v37 }
 0x197   :  { %v258_v43 = vmul.f32 0.03125, %v236_v39  ;;  %715 = vrsqrt.f32 %v266_v34  ;;  %v318_v24 = vmul.f32 %v1118_v31, %v295_v40 }
 0x198   :  { %v706_v48 = vpop.eup %705  ;;  %v267_v49 = vadd.f32 1e-05, %v251_v42  ;;  %v325_v56 = vmul.f32 %v1118_v31, %v302_v46 }
 0x199   :  { %v274_v50 = vadd.f32 1e-05, %v258_v43  ;;  %v708_v51 = vpop.eup %707  ;;  %v239_v52 = vpop.xlane.xlu1 %238  ;;  %v341_v29 = vadd.f32 %v1122_v36, %v318_v24  ;;  %v303_v53 = vmul.f32 %v706_v48, %v1037_v45 }
 0x19a   :  { %v218_v28 = vpop.xlane.xlu0 %217  ;;  %v296_v57 = vmul.f32 %v708_v51, %v1045_v54  ;;  %717 = vrsqrt.f32 %v267_v49  ;;  %v259_v37 = vmul.f32 0.03125, %v239_v52  ;;  %v348_v5 = vadd.f32 %v1122_v36, %v325_v56 }
 0x19b   :  { %v252_v58 = vmul.f32 0.03125, %v218_v28  ;;  %719 = vrsqrt.f32 %v274_v50  ;;  %v356_v59 = vpack.c.bf16 %v341_v29, %v340_v44  ;;  %v326_v60 = vmul.f32 %v1118_v31, %v303_v53 }
 0x19c   :  { %v710_v61 = vpop.eup %709  ;;  %v275_v62 = vadd.f32 1e-05, %v259_v37  ;;  %v319_v6 = vmul.f32 %v1118_v31, %v296_v57 }
 0x19d   :  { %v268_v63 = vadd.f32 1e-05, %v252_v58  ;;  %v712_v2 = vpop.eup %711  ;;  %v297_v3 = vmul.f32 %v710_v61, %v1047_v55  ;;  %v221_v4 = vpop.xlane.xlu1 %220  ;;  %667 = vmatprep.mubr.msk.bf16.mxu0 %vm100_vm0, %v356_v59  ;;  %v349_v54 = vadd.f32 %v1122_v36, %v326_v60 }
 0x19e   :  { %v242_v45 = vpop.xlane.xlu0 %241  ;;  %v304_v7 = vmul.f32 %v712_v2, %v1056_v0  ;;  %721 = vrsqrt.f32 %v275_v62  ;;  %v253_v8 = vmul.f32 0.03125, %v221_v4  ;;  %v342_v16 = vadd.f32 %v1122_v36, %v319_v6 }
 0x19f   :  { %v260_v9 = vmul.f32 0.03125, %v242_v45  ;;  %723 = vrsqrt.f32 %v268_v63  ;;  %v360_v12 = vpack.c.bf16 %v349_v54, %v348_v5  ;;  %v320_v13 = vmul.f32 %v1118_v31, %v297_v3 }
 0x1a0   :  { %v714_v55 = vpop.eup %713  ;;  %v269_v14 = vadd.f32 1e-05, %v253_v8  ;;  %v327_v26 = vmul.f32 %v1118_v31, %v304_v7 }
 0x1a1   :  { %v276_v15 = vadd.f32 1e-05, %v260_v9  ;;  %v716_v18 = vpop.eup %715  ;;  %v305_v19 = vmul.f32 %v714_v55, %v1059_v1  ;;  %v245_v22 = vpop.xlane.xlu1 %244  ;;  %675 = vmatprep.mubr.msk.bf16.mxu1 %vm100_vm0, %v360_v12  ;;  %v343_v0 = vadd.f32 %v1122_v36, %v320_v13 }
 0x1a2   :  { %v298_v27 = vmul.f32 %v716_v18, %v1068_v10  ;;  %725 = vrsqrt.f32 %v269_v14  ;;  %v261_v30 = vmul.f32 0.03125, %v245_v22  ;;  %v350_v39 = vadd.f32 %v1122_v36, %v327_v26 }
 0x1a3   :  { %727 = vrsqrt.f32 %v276_v15  ;;  %v357_v32 = vpack.c.bf16 %v343_v0, %v342_v16  ;;  %v328_v33 = vmul.f32 %v1118_v31, %v305_v19 }
 0x1a4   :  { %v718_v34 = vpop.eup %717  ;;  %v277_v20 = vadd.f32 1e-05, %v261_v30  ;;  %v321_v41 = vmul.f32 %v1118_v31, %v298_v27 }
 0x1a5   :  { %v720_v1 = vpop.eup %719  ;;  %v299_v38 = vmul.f32 %v718_v34, %v1071_v11  ;;  %668 = vmatmul.mubr.msk.bf16.vlgmr.msra.gmra.mrb[0].mxu0 %vm100_vm0, %v357_v32  ;;  %v351_v40 = vadd.f32 %v1122_v36, %v328_v33 }
 0x1a6   :  { %v306_v10 = vmul.f32 %v720_v1, %v1080_v23  ;;  %729 = vrsqrt.f32 %v277_v20  ;;  %v344_v11 = vadd.f32 %v1122_v36, %v321_v41 }
 0x1a7   :  { %v361_v42 = vpack.c.bf16 %v351_v40, %v350_v39  ;;  %v322_v43 = vmul.f32 %v1118_v31, %v299_v38 }
 0x1a8   :  { %v722_v46 = vpop.eup %721  ;;  %v329_v50 = vmul.f32 %v1118_v31, %v306_v10 }
 0x1a9   :  { %v724_v24 = vpop.eup %723  ;;  %v307_v48 = vmul.f32 %v722_v46, %v1083_v17  ;;  %676 = vmatmul.mubr.msk.bf16.vlgmr.msra.gmra.mrb[0].mxu1 %vm100_vm0, %v361_v42  ;;  %v345_v49 = vadd.f32 %v1122_v36, %v322_v43 }
 0x1aa   :  { %v300_v51 = vmul.f32 %v724_v24, %v1092_v35  ;;  %v352_v17 = vadd.f32 %v1122_v36, %v329_v50 }
 0x1ab   :  { %v358_v52 = vpack.c.bf16 %v345_v49, %v344_v11  ;;  %v330_v23 = vmul.f32 %v1118_v31, %v307_v48 }
 0x1ac   :  { %v726_v28 = vpop.eup %725  ;;  %v323_v56 = vmul.f32 %v1118_v31, %v300_v51 }
 0x1ad   :  { %v728_v44 = vpop.eup %727  ;;  %v301_v29 = vmul.f32 %v726_v28, %v1095_v21  ;;  %671 = vmatprep.mubr.msk.bf16.mxu0 %vm100_vm0, %v358_v52  ;;  %v353_v53 = vadd.f32 %v1122_v36, %v330_v23 }
 0x1ae   :  { %v308_v57 = vmul.f32 %v728_v44, %v1104_v47  ;;  %v346_v21 = vadd.f32 %v1122_v36, %v323_v56 }
 0x1af   :  { %v362_v37 = vpack.c.bf16 %v353_v53, %v352_v17  ;;  %v324_v35 = vmul.f32 %v1118_v31, %v301_v29 }
 0x1b0   :  { %v730_v58 = vpop.eup %729  ;;  %v331_v61 = vmul.f32 %v1118_v31, %v308_v57 }
 0x1b1   :  { %v309_v59 = vmul.f32 %v730_v58, %v1107_v25  ;;  %679 = vmatprep.mubr.msk.bf16.mxu1 %vm100_vm0, %v362_v37  ;;  %v347_v60 = vadd.f32 %v1122_v36, %v324_v35  ;;  %v610_v25 = vld [vmem:[#allocation10] ss:$0 sm:$0xff] }
 0x1b2   :  { %v354_v47 = vadd.f32 %v1122_v36, %v331_v61 }
 0x1b3   :  { %v359_v62 = vpack.c.bf16 %v347_v60, %v346_v21  ;;  %v332_v63 = vmul.f32 %v1118_v31, %v309_v59 }
 0x1b5   :  { %672 = vmatmul.mubr.msk.bf16.gmra.mrb[4].mxu0 %vm100_vm0, %v359_v62  ;;  %v355_v2 = vadd.f32 %v1122_v36, %v332_v63 }
 0x1b7   :  { %v363_v3 = vpack.c.bf16 %v355_v2, %v354_v47 }
 0x1b9   :  { %680 = vmatmul.mubr.msk.bf16.gmra.mrb[4].mxu1 %vm100_vm0, %v363_v3 }
 0x278   :  { %v669_v4 = vpop.f32.mrb[0].mxu0 }
 0x279   :  { %v454_v45 = vadd.f32 %v669_v4, %v610_v25  ;;  %v445_v5 = vpop.f32.mrb[1].mxu0 }
 0x27a   :  { %v446_v54 = vadd.f32 %v610_v25, %v445_v5  ;;  %v670_v6 = vpop.f32.mrb[2].mxu0 }
 0x27b   :  { %v639_v7 = vpack.c.bf16 %v454_v45, %v454_v45  ;;  %v457_v8 = vadd.f32 %v670_v6, %v610_v25  ;;  %v448_v9 = vpop.f32.mrb[3].mxu0 }
 0x27c   :  { %v637_v31 = vpack.c.bf16 %v446_v54, %v446_v54  ;;  %v449_v12 = vadd.f32 %v610_v25, %v448_v9  ;;  %v677_v13 = vpop.f32.mrb[0].mxu1 }
 0x27d   :  { %575 = vst.msk [vmem:[#allocation11 + $0x8] sm:$0xf] %vm572_vm1, %v639_v7  ;;  %v640_v55 = vpack.c.bf16 %v457_v8, %v457_v8  ;;  %v486_v36 = vadd.f32 %v677_v13, %v610_v25  ;;  %v477_v14 = vpop.f32.mrb[1].mxu1 }
 0x27e   :  { %573 = vst.msk [vmem:[#allocation11] sm:$0xf] %vm572_vm1, %v637_v31  ;;  %v638_v15 = vpack.c.bf16 %v449_v12, %v449_v12  ;;  %v478_v18 = vadd.f32 %v610_v25, %v477_v14  ;;  %v678_v19 = vpop.f32.mrb[2].mxu1 }
 0x27f   :  { %576 = vst.msk [vmem:[#allocation11 + $0xc] sm:$0xf] %vm572_vm1, %v640_v55  ;;  %v647_v22 = vpack.c.bf16 %v486_v36, %v486_v36  ;;  %v489_v16 = vadd.f32 %v678_v19, %v610_v25  ;;  %v480_v0 = vpop.f32.mrb[3].mxu1 }
 0x280   :  { %574 = vst.msk [vmem:[#allocation11 + $0x4] sm:$0xf] %vm572_vm1, %v638_v15  ;;  %v645_v26 = vpack.c.bf16 %v478_v18, %v478_v18  ;;  %v481_v27 = vadd.f32 %v610_v25, %v480_v0 }
 0x281   :  { %583 = vst.msk [vmem:[#allocation11 + $0x28] sm:$0xf] %vm572_vm1, %v647_v22  ;;  %v648_v30 = vpack.c.bf16 %v489_v16, %v489_v16 }
 0x282   :  { %581 = vst.msk [vmem:[#allocation11 + $0x20] sm:$0xf] %vm572_vm1, %v645_v26  ;;  %v646_v32 = vpack.c.bf16 %v481_v27, %v481_v27 }
 0x283   :  { %584 = vst.msk [vmem:[#allocation11 + $0x2c] sm:$0xf] %vm572_vm1, %v648_v30 }
 0x284   :  { %582 = vst.msk [vmem:[#allocation11 + $0x24] sm:$0xf] %vm572_vm1, %v646_v32 }
 0x288   :  { %v673_v33 = vpop.f32.mrb[4].mxu0 }
 0x289   :  { %v470_v34 = vadd.f32 %v673_v33, %v610_v25  ;;  %v461_v20 = vpop.f32.mrb[5].mxu0 }
 0x28a   :  { %v462_v1 = vadd.f32 %v610_v25, %v461_v20  ;;  %v674_v38 = vpop.f32.mrb[6].mxu0 }
 0x28b   :  { %v643_v39 = vpack.c.bf16 %v470_v34, %v470_v34  ;;  %v473_v40 = vadd.f32 %v674_v38, %v610_v25  ;;  %v464_v41 = vpop.f32.mrb[7].mxu0 }
 0x28c   :  { %v641_v10 = vpack.c.bf16 %v462_v1, %v462_v1  ;;  %v465_v42 = vadd.f32 %v610_v25, %v464_v41  ;;  %v681_v43 = vpop.f32.mrb[4].mxu1 }
 0x28d   :  { %579 = vst.msk [vmem:[#allocation11 + $0x18] sm:$0xf] %vm572_vm1, %v643_v39  ;;  %v644_v46 = vpack.c.bf16 %v473_v40, %v473_v40  ;;  %v502_v24 = vadd.f32 %v681_v43, %v610_v25  ;;  %v493_v48 = vpop.f32.mrb[5].mxu1 }
 0x28e   :  { %577 = vst.msk [vmem:[#allocation11 + $0x10] sm:$0xf] %vm572_vm1, %v641_v10  ;;  %v642_v11 = vpack.c.bf16 %v465_v42, %v465_v42  ;;  %v494_v49 = vadd.f32 %v610_v25, %v493_v48  ;;  %v682_v50 = vpop.f32.mrb[6].mxu1 }
 0x28f   :  { %580 = vst.msk [vmem:[#allocation11 + $0x1c] sm:$0xf] %vm572_vm1, %v644_v46  ;;  %v651_v51 = vpack.c.bf16 %v502_v24, %v502_v24  ;;  %v505_v52 = vadd.f32 %v682_v50, %v610_v25  ;;  %v496_v23 = vpop.f32.mrb[7].mxu1 }
 0x290   :  { %578 = vst.msk [vmem:[#allocation11 + $0x14] sm:$0xf] %vm572_vm1, %v642_v11  ;;  %v649_v28 = vpack.c.bf16 %v494_v49, %v494_v49  ;;  %v497_v44 = vadd.f32 %v610_v25, %v496_v23 }
 0x291   :  { %587 = vst.msk [vmem:[#allocation11 + $0x38] sm:$0xf] %vm572_vm1, %v651_v51  ;;  %v652_v29 = vpack.c.bf16 %v505_v52, %v505_v52 }
 0x292   :  { %585 = vst.msk [vmem:[#allocation11 + $0x30] sm:$0xf] %vm572_vm1, %v649_v28  ;;  %v650_v17 = vpack.c.bf16 %v497_v44, %v497_v44 }
 0x293   :  { %588 = vst.msk [vmem:[#allocation11 + $0x3c] sm:$0xf] %vm572_vm1, %v652_v29 }
 0x294   :  { %586 = vst.msk [vmem:[#allocation11 + $0x34] sm:$0xf] %vm572_vm1, %v650_v17 }
 0x295   :  { %852 = shalt.err (!%p849_p2)
}
 0x296   :  { %s853_s10 = scalar_lea.hbm %s1213_s5, 1024 }
 0x297   :  { %p854_p3 = scmp.ne.s32.totalorder %s1213_s5, %s853_s10  ;;  %p857_p4 = scmp.lt.u32.totalorder %s853_s10, %s1213_s5 }
 0x299   :  { %p859_p5 = pnand %p857_p4, %p854_p3 }
 0x29b   :  { %862 = shalt.err (!%p859_p5)
}
 0x29c   :  { %600 = dma.vmem_to_hbm [thread:$0]  %s595_s6, 1024, %s1213_s5, [#allocation4], %s873_s1, %s873_s1, %s874_s16  }
 0x29d   :  { %869 = dma.done.wait [#allocation4], 1024  }
 0x29e   :  { %870 = vsyncadd [#allocation4], 4294966272 }
 0x29f   :  { %604 = vsyncpa [#allocation3], 1 }
 0x2a0   :  { %605 = vsyncpa [#allocation6], 1 }
 0x2a1   :  { %606 = vsyncpa [#allocation9], 1 }
 0x2a2   :  { %607 = vsyncpa [#allocation4], 1 }

// kernel: nat_cross_layer_forward.5
= control target key start
LH: loop header
LB: loop body
LE: loop exit
PB: predicated region body
PF: predicated region fallthrough
CT: control target
= control target key end

     0   :  { %13 = vsyncpa [#allocation3], 0  ;;  %s1942_s0 = inlined_call_operand.hbm [shape: bf16[128,32], index: 0, kind: input, shape index: {}]   ;;  %s1943_s1 = inlined_call_operand.hbm [shape: f32[1,32], index: 1, kind: input, shape index: {}]   ;;  %s1944_s2 = inlined_call_operand.hbm [shape: f32[1,32], index: 2, kind: input, shape index: {}]   ;;  %s1945_s3 = inlined_call_operand.hbm [shape: bf16[32,128], index: 3, kind: input, shape index: {}]   ;;  %s1946_s4 = inlined_call_operand.hbm [shape: f32[1,128], index: 4, kind: input, shape index: {}]   ;;  %s1947_s5 = inlined_call_operand.hbm [shape: bf16[128,32], index: 5, kind: input, shape index: {}]   ;;  %s1948_s6 = inlined_call_operand.hbm [shape: f32[1,32], index: 6, kind: input, shape index: {}]   ;;  %s1949_s7 = inlined_call_operand.hbm [shape: f32[128,1], index: 7, kind: input, shape index: {}]   ;;  %s1950_s8 = inlined_call_operand.hbm [shape: f32[128,32], index: 8, kind: output, shape index: {}]  }
   0x1   :  { %14 = vsyncpa [#allocation6], 0 }
   0x2   :  { %15 = vsyncpa [#allocation9], 0 }
   0x3   :  { %16 = vsyncpa [#allocation12], 0 }
   0x4   :  { %17 = vsyncpa [#allocation15], 0 }
   0x5   :  { %18 = vsyncpa [#allocation4], 0  ;;  %s1448_s27 = smov [#allocation5]   ;;  %s1238_s9 = scalar_lea.hbm %s1943_s1, 16 }
   0x6   :  { %s37_s28 = sshll.u32 %s1448_s27, 4  ;;  %p1239_p0 = scmp.ne.s32.totalorder %s1943_s1, %s1238_s9  ;;  %s38_s28 = int_to_ptr.vmem [resolvable:$true] %s37_s28 }
   0x7   :  { %p1242_p1 = scmp.lt.u32.totalorder %s1238_s9, %s1943_s1 }
   0x9   :  { %p1244_p2 = pnand %p1242_p1, %p1239_p0 }
   0xb   :  { %1247 = shalt.err (!%p1244_p2)
}
   0xc   :  { %s1248_s14 = scalar_lea.vmem %s38_s28, 16  ;;  %s1252_s15 = scalar_lea.vmem %s38_s28, 32 }
   0xd   :  { %p1249_p3 = scmp.ne.s32.totalorder %s38_s28, %s1248_s14  ;;  %p1253_p4 = scmp.lt.s32.totalorder %s38_s28, %s38_s28 }
   0xe   :  { %p1254_p5 = scmp.lt.s32.totalorder %s1252_s15, %s1248_s14 }
  0x10   :  { %p1255_p6 = por %p1254_p5, %p1253_p4 }
  0x12   :  { %p1256_p7 = pnand %p1255_p6, %p1249_p3 }
  0x14   :  { %1259 = shalt.err (!%p1256_p7)
}
  0x15   :  { %40 = dma.hbm_to_vmem [thread:$0]  %s1943_s1, 16, %s38_s28, [#allocation6]  }
  0x16   :  { %s1449_s18 = smov [#allocation8]   ;;  %s1450_s20 = smov [#allocation11]  }
  0x17   :  { %s56_s19 = sshll.u32 %s1449_s18, 4  ;;  %s78_s21 = sshll.u32 %s1450_s20, 4  ;;  %s57_s19 = int_to_ptr.vmem [resolvable:$true] %s56_s19  ;;  %s79_s21 = int_to_ptr.vmem [resolvable:$true] %s78_s21 }
  0x18   :  { %s1260_s24 = scalar_lea.hbm %s1945_s3, 256 }
  0x19   :  { %p1261_p8 = scmp.ne.s32.totalorder %s1945_s3, %s1260_s24  ;;  %p1264_p9 = scmp.lt.u32.totalorder %s1260_s24, %s1945_s3 }
  0x1b   :  { %p1266_p10 = pnand %p1264_p9, %p1261_p8 }
  0x1d   :  { %1269 = shalt.err (!%p1266_p10)
}
  0x1e   :  { %s1270_s1 = scalar_lea.vmem %s57_s19, 256  ;;  %p1275_p12 = scmp.lt.s32.totalorder %s57_s19, %s57_s19 }
  0x1f   :  { %p1271_p11 = scmp.ne.s32.totalorder %s57_s19, %s1270_s1  ;;  %p1276_p13 = scmp.lt.s32.totalorder %s1270_s1, %s1270_s1 }
  0x21   :  { %p1277_p0 = por %p1276_p13, %p1275_p12 }
  0x23   :  { %p1278_p1 = pnand %p1277_p0, %p1271_p11 }
  0x25   :  { %1281 = shalt.err (!%p1278_p1)
}
  0x26   :  { %s1451_s28 = smov 64   ;;  %s1452_s30 = smov 4  }
  0x27   :  { %62 = dma.hbm_to_vmem [thread:$0]  %s1945_s3, 256, %s57_s19, [#allocation9], %s1451_s28, %s1451_s28, %s1452_s30  }
  0x28   :  { %s1282_s13 = scalar_lea.hbm %s1947_s5, 1024 }
  0x29   :  { %p1283_p2 = scmp.ne.s32.totalorder %s1947_s5, %s1282_s13  ;;  %p1286_p3 = scmp.lt.u32.totalorder %s1282_s13, %s1947_s5 }
  0x2b   :  { %p1288_p4 = pnand %p1286_p3, %p1283_p2 }
  0x2d   :  { %1291 = shalt.err (!%p1288_p4)
}
  0x2e   :  { %s1292_s18 = scalar_lea.vmem %s79_s21, 1024  ;;  %p1297_p6 = scmp.lt.s32.totalorder %s79_s21, %s79_s21 }
  0x2f   :  { %p1293_p5 = scmp.ne.s32.totalorder %s79_s21, %s1292_s18  ;;  %p1298_p7 = scmp.lt.s32.totalorder %s1292_s18, %s1292_s18 }
  0x31   :  { %p1299_p8 = por %p1298_p7, %p1297_p6 }
  0x33   :  { %p1300_p9 = pnand %p1299_p8, %p1293_p5 }
  0x35   :  { %1303 = shalt.err (!%p1300_p9)
}
  0x36   :  { %84 = dma.hbm_to_vmem [thread:$0]  %s1947_s5, 1024, %s79_s21, [#allocation12], %s1451_s28, %s1451_s28, %s1452_s30  }
  0x37   :  { %s1453_s20 = smov [#allocation2]   ;;  %s1454_s23 = smov [#allocation7]  }
  0x38   :  { %s24_s22 = sshll.u32 %s1453_s20, 4  ;;  %s47_s24 = sshll.u32 %s1454_s23, 4  ;;  %s25_s22 = int_to_ptr.vmem [resolvable:$true] %s24_s22  ;;  %s48_s24 = int_to_ptr.vmem [resolvable:$true] %s47_s24 }
  0x39   :  { %s1304_s27 = scalar_lea.hbm %s1942_s0, 1024 }
  0x3a   :  { %p1305_p10 = scmp.ne.s32.totalorder %s1942_s0, %s1304_s27  ;;  %p1308_p11 = scmp.lt.u32.totalorder %s1304_s27, %s1942_s0 }
  0x3c   :  { %p1310_p12 = pnand %p1308_p11, %p1305_p10 }
  0x3e   :  { %1313 = shalt.err (!%p1310_p12)
}
  0x3f   :  { %s1314_s5 = scalar_lea.vmem %s25_s22, 1024  ;;  %p1319_p0 = scmp.lt.s32.totalorder %s25_s22, %s25_s22 }
  0x40   :  { %p1315_p13 = scmp.ne.s32.totalorder %s25_s22, %s1314_s5  ;;  %p1320_p1 = scmp.lt.s32.totalorder %s1314_s5, %s1314_s5 }
  0x42   :  { %p1321_p2 = por %p1320_p1, %p1319_p0 }
  0x44   :  { %p1322_p3 = pnand %p1321_p2, %p1315_p13 }
  0x46   :  { %1325 = shalt.err (!%p1322_p3)
}
  0x47   :  { %30 = dma.hbm_to_vmem [thread:$0]  %s1942_s0, 1024, %s25_s22, [#allocation3], %s1451_s28, %s1451_s28, %s1452_s30  }
  0x48   :  { %s1326_s14 = scalar_lea.hbm %s1944_s2, 16 }
  0x49   :  { %p1327_p4 = scmp.ne.s32.totalorder %s1944_s2, %s1326_s14  ;;  %p1330_p5 = scmp.lt.u32.totalorder %s1326_s14, %s1944_s2 }
  0x4b   :  { %p1332_p6 = pnand %p1330_p5, %p1327_p4 }
  0x4d   :  { %1335 = shalt.err (!%p1332_p6)
}
  0x4e   :  { %s1336_s3 = scalar_lea.vmem %s48_s24, 16  ;;  %s1340_s19 = scalar_lea.vmem %s48_s24, 32 }
  0x4f   :  { %p1337_p7 = scmp.ne.s32.totalorder %s48_s24, %s1336_s3  ;;  %p1341_p8 = scmp.lt.s32.totalorder %s48_s24, %s48_s24 }
  0x50   :  { %p1342_p9 = scmp.lt.s32.totalorder %s1340_s19, %s1336_s3 }
  0x52   :  { %p1343_p10 = por %p1342_p9, %p1341_p8 }
  0x54   :  { %p1344_p11 = pnand %p1343_p10, %p1337_p7 }
  0x56   :  { %1347 = shalt.err (!%p1344_p11)
}
  0x57   :  { %50 = dma.hbm_to_vmem [thread:$0]  %s1944_s2, 16, %s48_s24, [#allocation6]  }
  0x58   :  { %s1455_s30 = smov [#allocation10]   ;;  %s1456_s22 = smov [#allocation13]  }
  0x59   :  { %s69_s20 = sshll.u32 %s1455_s30, 4  ;;  %s91_s23 = sshll.u32 %s1456_s22, 4  ;;  %s70_s20 = int_to_ptr.vmem [resolvable:$true] %s69_s20  ;;  %s92_s23 = int_to_ptr.vmem [resolvable:$true] %s91_s23 }
  0x5a   :  { %s1348_s27 = scalar_lea.hbm %s1946_s4, 16 }
  0x5b   :  { %p1349_p12 = scmp.ne.s32.totalorder %s1946_s4, %s1348_s27  ;;  %p1352_p13 = scmp.lt.u32.totalorder %s1348_s27, %s1946_s4 }
  0x5d   :  { %p1354_p0 = pnand %p1352_p13, %p1349_p12 }
  0x5f   :  { %1357 = shalt.err (!%p1354_p0)
}
  0x60   :  { %s1358_s2 = scalar_lea.vmem %s70_s20, 16  ;;  %s1362_s24 = scalar_lea.vmem %s70_s20, 32 }
  0x61   :  { %p1359_p1 = scmp.ne.s32.totalorder %s70_s20, %s1358_s2  ;;  %p1363_p2 = scmp.lt.s32.totalorder %s70_s20, %s70_s20 }
  0x62   :  { %p1364_p3 = scmp.lt.s32.totalorder %s1362_s24, %s1358_s2 }
  0x64   :  { %p1365_p4 = por %p1364_p3, %p1363_p2 }
  0x66   :  { %p1366_p5 = pnand %p1365_p4, %p1359_p1 }
  0x68   :  { %1369 = shalt.err (!%p1366_p5)
}
  0x69   :  { %72 = dma.hbm_to_vmem [thread:$0]  %s1946_s4, 16, %s70_s20, [#allocation9]  }
  0x6a   :  { %s1370_s13 = scalar_lea.hbm %s1948_s6, 16 }
  0x6b   :  { %p1371_p6 = scmp.ne.s32.totalorder %s1948_s6, %s1370_s13  ;;  %p1374_p7 = scmp.lt.u32.totalorder %s1370_s13, %s1948_s6 }
  0x6d   :  { %p1376_p8 = pnand %p1374_p7, %p1371_p6 }
  0x6f   :  { %1379 = shalt.err (!%p1376_p8)
}
  0x70   :  { %s1380_s18 = scalar_lea.vmem %s92_s23, 16  ;;  %s1384_s3 = scalar_lea.vmem %s92_s23, 32 }
  0x71   :  { %p1381_p9 = scmp.ne.s32.totalorder %s92_s23, %s1380_s18  ;;  %p1385_p10 = scmp.lt.s32.totalorder %s92_s23, %s92_s23 }
  0x72   :  { %p1386_p11 = scmp.lt.s32.totalorder %s1384_s3, %s1380_s18 }
  0x74   :  { %p1387_p12 = por %p1386_p11, %p1385_p10 }
  0x76   :  { %p1388_p13 = pnand %p1387_p12, %p1381_p9 }
  0x78   :  { %1391 = shalt.err (!%p1388_p13)
}
  0x79   :  { %94 = dma.hbm_to_vmem [thread:$0]  %s1948_s6, 16, %s92_s23, [#allocation12]  }
  0x7a   :  { %s1457_s0 = smov [#allocation14]   ;;  %s1392_s22 = scalar_lea.hbm %s1949_s7, 2048 }
  0x7b   :  { %s100_s28 = sshll.u32 %s1457_s0, 4  ;;  %p1393_p0 = scmp.ne.s32.totalorder %s1949_s7, %s1392_s22  ;;  %s101_s28 = int_to_ptr.vmem [resolvable:$true] %s100_s28 }
  0x7c   :  { %p1396_p1 = scmp.lt.u32.totalorder %s1392_s22, %s1949_s7 }
  0x7e   :  { %p1398_p2 = pnand %p1396_p1, %p1393_p0 }
  0x80   :  { %1401 = shalt.err (!%p1398_p2)
}
  0x81   :  { %s1402_s1 = scalar_lea.vmem %s101_s28, 2048  ;;  %p1407_p4 = scmp.lt.s32.totalorder %s101_s28, %s101_s28 }
  0x82   :  { %p1403_p3 = scmp.ne.s32.totalorder %s101_s28, %s1402_s1  ;;  %p1408_p5 = scmp.lt.s32.totalorder %s1402_s1, %s1402_s1 }
  0x84   :  { %p1409_p6 = por %p1408_p5, %p1407_p4 }
  0x86   :  { %p1410_p7 = pnand %p1409_p6, %p1403_p3 }
  0x88   :  { %1413 = shalt.err (!%p1410_p7)
}
  0x89   :  { %s1458_s6 = smov 128   ;;  %s1459_s23 = smov 8  }
  0x8a   :  { %106 = dma.hbm_to_vmem [thread:$0]  %s1949_s7, 2048, %s101_s28, [#allocation15], %s1458_s6, %s1458_s6, %s1459_s23  }
  0x8b   :  { %1436 = dma.done.wait [#allocation3], 1024  }
  0x8c   :  { %1437 = vsyncadd [#allocation3], 4294966272 }
  0x8d   :  { %1438 = dma.done.wait [#allocation6], 32  }
  0x8e   :  { %1439 = vsyncadd [#allocation6], 4294967264 }
  0x8f   :  { %1440 = dma.done.wait [#allocation9], 272  }
  0x90   :  { %1441 = vsyncadd [#allocation9], 4294967024 }
  0x91   :  { %1442 = dma.done.wait [#allocation12], 1040  }
  0x92   :  { %1443 = vsyncadd [#allocation12], 4294966256 }
  0x93   :  { %1444 = dma.done.wait [#allocation15], 2048  }
  0x94   :  { %1445 = vsyncadd [#allocation15], 4294965248  ;;  %v1016_v0 = vld [vmem:[#allocation2] sm:$0xff]   ;;  %vm164_vm0 = vcmask 261120   ;;  %v1047_v1 = vld [vmem:[#allocation2 + $0x8] sm:$0xff]   ;;  %s1461_s7 = smov [#allocation16]  }
  0x95   :  { %v1615_v2 = vunpack.c.l.bf16 %v1016_v0  ;;  %v1617_v3 = vunpack.c.l.bf16 %v1047_v1  ;;  %v1619_v4 = vunpack.c.h.bf16 %v1016_v0  ;;  %v1621_v5 = vunpack.c.h.bf16 %v1047_v1  ;;  %v1048_v6 = vld [vmem:[#allocation2 + $0x10] sm:$0xff]   ;;  %v1049_v13 = vld [vmem:[#allocation2 + $0x18] sm:$0xff]   ;;  %v1050_v16 = vld [vmem:[#allocation2 + $0x20] sm:$0xff]   ;;  %s977_s2 = sshll.u32 %s1461_s7, 4  ;;  %s978_s2 = int_to_ptr.vmem [resolvable:$true] %s977_s2 }
  0x96   :  { %v1631_v11 = vunpack.c.l.bf16 %v1048_v6  ;;  %v1633_v12 = vunpack.c.h.bf16 %v1048_v6  ;;  %v1639_v17 = vunpack.c.l.bf16 %v1049_v13  ;;  %v1641_v18 = vunpack.c.h.bf16 %v1049_v13  ;;  %v1051_v23 = vld [vmem:[#allocation2 + $0x28] sm:$0xff]   ;;  %v1052_v28 = vld [vmem:[#allocation2 + $0x30] sm:$0xff]   ;;  %v1053_v33 = vld [vmem:[#allocation2 + $0x38] sm:$0xff]   ;;  %s1414_s24 = scalar_lea.vmem %s978_s2, 2048  ;;  %p1419_p9 = scmp.lt.s32.totalorder %s978_s2, %s978_s2 }
  0x97   :  { %v165_v7 = vsel %vm164_vm0, %v1615_v2, 0.0  ;;  %v171_v8 = vsel %vm164_vm0, %v1617_v3, 0.0  ;;  %v168_v9 = vsel %vm164_vm0, %v1619_v4, 0.0  ;;  %v174_v10 = vsel %vm164_vm0, %v1621_v5, 0.0  ;;  %p1415_p8 = scmp.ne.s32.totalorder %s978_s2, %s1414_s24  ;;  %p1420_p10 = scmp.lt.s32.totalorder %s1414_s24, %s1414_s24 }
  0x98   :  { %166 = vadd.xlane.f32.xlu0 %v165_v7  ;;  %172 = vadd.xlane.f32.xlu1 %v171_v8  ;;  %v177_v14 = vsel %vm164_vm0, %v1631_v11, 0.0  ;;  %v180_v15 = vsel %vm164_vm0, %v1633_v12, 0.0  ;;  %v183_v19 = vsel %vm164_vm0, %v1639_v17, 0.0  ;;  %v186_v20 = vsel %vm164_vm0, %v1641_v18, 0.0 }
  0x99   :  { %v1647_v21 = vunpack.c.l.bf16 %v1050_v16  ;;  %v1649_v22 = vunpack.c.h.bf16 %v1050_v16  ;;  %v1655_v26 = vunpack.c.l.bf16 %v1051_v23  ;;  %v1657_v27 = vunpack.c.h.bf16 %v1051_v23  ;;  %p1421_p11 = por %p1420_p10, %p1419_p9 }
  0x9a   :  { %v1663_v31 = vunpack.c.l.bf16 %v1052_v28  ;;  %v1665_v32 = vunpack.c.h.bf16 %v1052_v28  ;;  %v1671_v36 = vunpack.c.l.bf16 %v1053_v33  ;;  %v1673_v37 = vunpack.c.h.bf16 %v1053_v33 }
  0x9b   :  { %v189_v24 = vsel %vm164_vm0, %v1647_v21, 0.0  ;;  %v192_v25 = vsel %vm164_vm0, %v1649_v22, 0.0  ;;  %v195_v29 = vsel %vm164_vm0, %v1655_v26, 0.0  ;;  %v198_v30 = vsel %vm164_vm0, %v1657_v27, 0.0  ;;  %p1422_p12 = pnand %p1421_p11, %p1415_p8 }
  0x9c   :  { %169 = vadd.xlane.f32.xlu0 %v168_v9  ;;  %175 = vadd.xlane.f32.xlu1 %v174_v10  ;;  %v201_v34 = vsel %vm164_vm0, %v1663_v31, 0.0  ;;  %v204_v35 = vsel %vm164_vm0, %v1665_v32, 0.0  ;;  %v207_v38 = vsel %vm164_vm0, %v1671_v36, 0.0  ;;  %v210_v39 = vsel %vm164_vm0, %v1673_v37, 0.0 }
  0xa0   :  { %178 = vadd.xlane.f32.xlu0 %v177_v14  ;;  %181 = vadd.xlane.f32.xlu1 %v180_v15 }
  0xa4   :  { %184 = vadd.xlane.f32.xlu0 %v183_v19  ;;  %187 = vadd.xlane.f32.xlu1 %v186_v20 }
  0xa8   :  { %190 = vadd.xlane.f32.xlu0 %v189_v24  ;;  %193 = vadd.xlane.f32.xlu1 %v192_v25 }
  0xac   :  { %196 = vadd.xlane.f32.xlu0 %v195_v29  ;;  %199 = vadd.xlane.f32.xlu1 %v198_v30 }
  0xb0   :  { %202 = vadd.xlane.f32.xlu0 %v201_v34  ;;  %205 = vadd.xlane.f32.xlu1 %v204_v35 }
  0xb4   :  { %208 = vadd.xlane.f32.xlu0 %v207_v38  ;;  %211 = vadd.xlane.f32.xlu1 %v210_v39 }
 0x125   :  { %v167_v40 = vpop.xlane.xlu0 %166  ;;  %v173_v41 = vpop.xlane.xlu1 %172 }
 0x126   :  { %v214_v42 = vmul.f32 0.03125, %v167_v40  ;;  %v216_v43 = vmul.f32 0.03125, %v173_v41 }
 0x128   :  { %v1680_v44 = vsub.f32 %v1615_v2, %v214_v42  ;;  %v1683_v45 = vsub.f32 %v1617_v3, %v216_v43 }
 0x129   :  { %v170_v46 = vpop.xlane.xlu0 %169  ;;  %v176_v47 = vpop.xlane.xlu1 %175 }
 0x12a   :  { %v215_v48 = vmul.f32 0.03125, %v170_v46  ;;  %v217_v49 = vmul.f32 0.03125, %v176_v47  ;;  %v246_v50 = vmul.f32 %v1680_v44, %v1680_v44  ;;  %v248_v51 = vmul.f32 %v1683_v45, %v1683_v45 }
 0x12c   :  { %v1690_v52 = vsub.f32 %v1619_v4, %v215_v48  ;;  %v1693_v53 = vsub.f32 %v1621_v5, %v217_v49  ;;  %v262_v54 = vsel %vm164_vm0, %v246_v50, 0.0  ;;  %v268_v57 = vsel %vm164_vm0, %v248_v51, 0.0 }
 0x12d   :  { %263 = vadd.xlane.f32.xlu0 %v262_v54  ;;  %v179_v55 = vpop.xlane.xlu0 %178  ;;  %v182_v56 = vpop.xlane.xlu1 %181 }
 0x12e   :  { %v218_v58 = vmul.f32 0.03125, %v179_v55  ;;  %v219_v59 = vmul.f32 0.03125, %v182_v56  ;;  %v247_v60 = vmul.f32 %v1690_v52, %v1690_v52  ;;  %v249_v61 = vmul.f32 %v1693_v53, %v1693_v53 }
 0x130   :  { %v1702_v62 = vsub.f32 %v1631_v11, %v218_v58  ;;  %v1705_v63 = vsub.f32 %v1633_v12, %v219_v59  ;;  %v265_v0 = vsel %vm164_vm0, %v247_v60, 0.0  ;;  %v271_v7 = vsel %vm164_vm0, %v249_v61, 0.0 }
 0x131   :  { %269 = vadd.xlane.f32.xlu0 %v268_v57  ;;  %266 = vadd.xlane.f32.xlu1 %v265_v0  ;;  %v185_v1 = vpop.xlane.xlu0 %184  ;;  %v188_v6 = vpop.xlane.xlu1 %187 }
 0x132   :  { %v220_v8 = vmul.f32 0.03125, %v185_v1  ;;  %v221_v9 = vmul.f32 0.03125, %v188_v6  ;;  %v250_v10 = vmul.f32 %v1702_v62, %v1702_v62  ;;  %v251_v13 = vmul.f32 %v1705_v63, %v1705_v63 }
 0x134   :  { %v1714_v14 = vsub.f32 %v1639_v17, %v220_v8  ;;  %v1717_v15 = vsub.f32 %v1641_v18, %v221_v9  ;;  %v274_v16 = vsel %vm164_vm0, %v250_v10, 0.0  ;;  %v277_v23 = vsel %vm164_vm0, %v251_v13, 0.0 }
 0x135   :  { %272 = vadd.xlane.f32.xlu1 %v271_v7  ;;  %275 = vadd.xlane.f32.xlu0 %v274_v16  ;;  %v191_v19 = vpop.xlane.xlu0 %190  ;;  %v194_v20 = vpop.xlane.xlu1 %193 }
 0x136   :  { %v222_v24 = vmul.f32 0.03125, %v191_v19  ;;  %v223_v25 = vmul.f32 0.03125, %v194_v20  ;;  %v252_v28 = vmul.f32 %v1714_v14, %v1714_v14  ;;  %v253_v29 = vmul.f32 %v1717_v15, %v1717_v15 }
 0x138   :  { %v1726_v30 = vsub.f32 %v1647_v21, %v222_v24  ;;  %v1729_v33 = vsub.f32 %v1649_v22, %v223_v25  ;;  %v280_v34 = vsel %vm164_vm0, %v252_v28, 0.0  ;;  %v283_v39 = vsel %vm164_vm0, %v253_v29, 0.0  ;;  %v1164_v28 = vld [vmem:[#allocation8] sm:$0xff]   ;;  %v1165_v29 = vld [vmem:[#allocation8 + $0x8] sm:$0xff]  }
 0x139   :  { %278 = vadd.xlane.f32.xlu1 %v277_v23  ;;  %281 = vadd.xlane.f32.xlu0 %v280_v34  ;;  %v197_v35 = vpop.xlane.xlu0 %196  ;;  %v200_v38 = vpop.xlane.xlu1 %199  ;;  %v1775_v34 = vld [vmem:[#allocation11] sm:$0xff]  }
 0x13a   :  { %v224_v40 = vmul.f32 0.03125, %v197_v35  ;;  %v225_v41 = vmul.f32 0.03125, %v200_v38  ;;  %v254_v42 = vmul.f32 %v1726_v30, %v1726_v30  ;;  %v255_v43 = vmul.f32 %v1729_v33, %v1729_v33  ;;  %1080 = vmatprep.subr.bf16.mxu0 %v1164_v28  ;;  %v1778_v35 = vld [vmem:[#allocation11 + $0x8] sm:$0xff]   ;;  %1132 = vmatprep.subr.bf16.mxu1 %v1775_v34 }
 0x13b   :  { %1081 = vmatpush3.bf16.msra.mxu0 %v1164_v28  ;;  %1140 = vmatpush3.bf16.msra.mxu1 %v1775_v34 }
 0x13c   :  { %v1738_v46 = vsub.f32 %v1655_v26, %v224_v40  ;;  %v1741_v47 = vsub.f32 %v1657_v27, %v225_v41  ;;  %v286_v48 = vsel %vm164_vm0, %v254_v42, 0.0  ;;  %v289_v51 = vsel %vm164_vm0, %v255_v43, 0.0  ;;  %1082 = vmatprep.subr.bf16.mxu0 %v1165_v29  ;;  %1133 = vmatprep.subr.bf16.mxu1 %v1778_v35 }
 0x13d   :  { %284 = vadd.xlane.f32.xlu1 %v283_v39  ;;  %287 = vadd.xlane.f32.xlu0 %v286_v48  ;;  %v203_v49 = vpop.xlane.xlu0 %202  ;;  %v206_v50 = vpop.xlane.xlu1 %205 }
 0x13e   :  { %v226_v54 = vmul.f32 0.03125, %v203_v49  ;;  %v227_v55 = vmul.f32 0.03125, %v206_v50  ;;  %v256_v56 = vmul.f32 %v1738_v46, %v1738_v46  ;;  %v257_v57 = vmul.f32 %v1741_v47, %v1741_v47 }
 0x13f   :  { %1083 = vmatpush3.bf16.msra.mxu0 %v1165_v29  ;;  %1141 = vmatpush3.bf16.msra.mxu1 %v1778_v35 }
 0x140   :  { %v1750_v58 = vsub.f32 %v1663_v31, %v226_v54  ;;  %v1753_v59 = vsub.f32 %v1665_v32, %v227_v55  ;;  %v292_v60 = vsel %vm164_vm0, %v256_v56, 0.0  ;;  %v295_v1 = vsel %vm164_vm0, %v257_v57, 0.0  ;;  %1100 = vmatprep.subr.bf16.mxu0 %v1775_v34 }
 0x141   :  { %290 = vadd.xlane.f32.xlu1 %v289_v51  ;;  %293 = vadd.xlane.f32.xlu0 %v292_v60  ;;  %v209_v61 = vpop.xlane.xlu0 %208  ;;  %v212_v0 = vpop.xlane.xlu1 %211 }
 0x142   :  { %v228_v6 = vmul.f32 0.03125, %v209_v61  ;;  %v229_v7 = vmul.f32 0.03125, %v212_v0  ;;  %v258_v8 = vmul.f32 %v1750_v58, %v1750_v58  ;;  %v259_v9 = vmul.f32 %v1753_v59, %v1753_v59 }
 0x144   :  { %v1762_v10 = vsub.f32 %v1671_v36, %v228_v6  ;;  %v1765_v13 = vsub.f32 %v1673_v37, %v229_v7  ;;  %v298_v16 = vsel %vm164_vm0, %v258_v8, 0.0  ;;  %v301_v19 = vsel %vm164_vm0, %v259_v9, 0.0 }
 0x145   :  { %296 = vadd.xlane.f32.xlu1 %v295_v1  ;;  %299 = vadd.xlane.f32.xlu0 %v298_v16 }
 0x146   :  { %v260_v20 = vmul.f32 %v1762_v10, %v1762_v10  ;;  %v261_v23 = vmul.f32 %v1765_v13, %v1765_v13 }
 0x148   :  { %v304_v24 = vsel %vm164_vm0, %v260_v20, 0.0  ;;  %v307_v25 = vsel %vm164_vm0, %v261_v23, 0.0 }
 0x149   :  { %302 = vadd.xlane.f32.xlu1 %v301_v19  ;;  %305 = vadd.xlane.f32.xlu0 %v304_v24 }
 0x14d   :  { %308 = vadd.xlane.f32.xlu1 %v307_v25  ;;  %v1785_v25 = vld [vmem:[#allocation5] ss:$0 sm:$0xff] }
 0x1ba   :  { %v264_v38 = vpop.xlane.xlu0 %263 }
 0x1bb   :  { %v310_v39 = vmul.f32 0.03125, %v264_v38 }
 0x1bd   :  { %v326_v40 = vadd.f32 1e-05, %v310_v39 }
 0x1be   :  { %v267_v41 = vpop.xlane.xlu1 %266  ;;  %v270_v42 = vpop.xlane.xlu0 %269 }
 0x1bf   :  { %1174 = vrsqrt.f32 %v326_v40  ;;  %v311_v43 = vmul.f32 0.03125, %v267_v41  ;;  %v312_v48 = vmul.f32 0.03125, %v270_v42 }
 0x1c1   :  { %v327_v49 = vadd.f32 1e-05, %v311_v43  ;;  %v328_v50 = vadd.f32 1e-05, %v312_v48 }
 0x1c2   :  { %v273_v51 = vpop.xlane.xlu1 %272  ;;  %v276_v54 = vpop.xlane.xlu0 %275 }
 0x1c3   :  { %1176 = vrsqrt.f32 %v327_v49  ;;  %v313_v55 = vmul.f32 0.03125, %v273_v51  ;;  %v314_v56 = vmul.f32 0.03125, %v276_v54 }
 0x1c4   :  { %1178 = vrsqrt.f32 %v328_v50  ;;  %v1790_v50 = vld [vmem:[#allocation7] ss:$0 sm:$0xff] }
 0x1c5   :  { %v329_v57 = vadd.f32 1e-05, %v313_v55  ;;  %v330_v60 = vadd.f32 1e-05, %v314_v56 }
 0x1c6   :  { %v279_v61 = vpop.xlane.xlu1 %278  ;;  %v282_v0 = vpop.xlane.xlu0 %281 }
 0x1c7   :  { %1180 = vrsqrt.f32 %v329_v57  ;;  %v315_v1 = vmul.f32 0.03125, %v279_v61  ;;  %v316_v6 = vmul.f32 0.03125, %v282_v0 }
 0x1c8   :  { %1182 = vrsqrt.f32 %v330_v60 }
 0x1c9   :  { %v1175_v7 = vpop.eup %1174  ;;  %v331_v8 = vadd.f32 1e-05, %v315_v1  ;;  %v332_v9 = vadd.f32 1e-05, %v316_v6 }
 0x1ca   :  { %v285_v16 = vpop.xlane.xlu1 %284  ;;  %v288_v19 = vpop.xlane.xlu0 %287  ;;  %v358_v20 = vmul.f32 %v1175_v7, %v1680_v44 }
 0x1cb   :  { %1184 = vrsqrt.f32 %v331_v8  ;;  %v317_v23 = vmul.f32 0.03125, %v285_v16  ;;  %v318_v24 = vmul.f32 0.03125, %v288_v19 }
 0x1cc   :  { %1186 = vrsqrt.f32 %v332_v9  ;;  %v381_v43 = vmul.f32 %v1785_v25, %v358_v20 }
 0x1cd   :  { %v1177_v28 = vpop.eup %1176  ;;  %v333_v29 = vadd.f32 1e-05, %v317_v23  ;;  %v334_v38 = vadd.f32 1e-05, %v318_v24 }
 0x1ce   :  { %v1179_v39 = vpop.eup %1178  ;;  %v291_v40 = vpop.xlane.xlu1 %290  ;;  %v359_v42 = vmul.f32 %v1177_v28, %v1690_v52  ;;  %v404_v0 = vadd.f32 %v1790_v50, %v381_v43 }
 0x1cf   :  { %v294_v41 = vpop.xlane.xlu0 %293  ;;  %v360_v48 = vmul.f32 %v1179_v39, %v1683_v45  ;;  %1188 = vrsqrt.f32 %v333_v29  ;;  %v319_v44 = vmul.f32 0.03125, %v291_v40 }
 0x1d0   :  { %v320_v49 = vmul.f32 0.03125, %v294_v41  ;;  %1190 = vrsqrt.f32 %v334_v38  ;;  %v382_v51 = vmul.f32 %v1785_v25, %v359_v42 }
 0x1d1   :  { %v1181_v54 = vpop.eup %1180  ;;  %v335_v55 = vadd.f32 1e-05, %v319_v44  ;;  %v383_v1 = vmul.f32 %v1785_v25, %v360_v48 }
 0x1d2   :  { %v336_v56 = vadd.f32 1e-05, %v320_v49  ;;  %v1183_v57 = vpop.eup %1182  ;;  %v361_v60 = vmul.f32 %v1181_v54, %v1693_v53  ;;  %v297_v61 = vpop.xlane.xlu1 %296  ;;  %v405_v45 = vadd.f32 %v1790_v50, %v382_v51 }
 0x1d3   :  { %v300_v52 = vpop.xlane.xlu0 %299  ;;  %v362_v6 = vmul.f32 %v1183_v57, %v1702_v62  ;;  %1192 = vrsqrt.f32 %v335_v55  ;;  %v321_v7 = vmul.f32 0.03125, %v297_v61  ;;  %v406_v38 = vadd.f32 %v1790_v50, %v383_v1 }
 0x1d4   :  { %v322_v8 = vmul.f32 0.03125, %v300_v52  ;;  %1194 = vrsqrt.f32 %v336_v56  ;;  %v420_v9 = vpack.c.bf16 %v405_v45, %v404_v0  ;;  %v384_v16 = vmul.f32 %v1785_v25, %v361_v60 }
 0x1d5   :  { %v1185_v19 = vpop.eup %1184  ;;  %v337_v20 = vadd.f32 1e-05, %v321_v7  ;;  %v385_v39 = vmul.f32 %v1785_v25, %v362_v6 }
 0x1d6   :  { %v338_v53 = vadd.f32 1e-05, %v322_v8  ;;  %v1187_v23 = vpop.eup %1186  ;;  %v363_v24 = vmul.f32 %v1185_v19, %v1705_v63  ;;  %v303_v28 = vpop.xlane.xlu1 %302  ;;  %1084 = vmatprep.mubr.msk.bf16.mxu0 %vm164_vm0, %v420_v9  ;;  %v407_v62 = vadd.f32 %v1790_v50, %v384_v16 }
 0x1d7   :  { %v306_v29 = vpop.xlane.xlu0 %305  ;;  %v364_v40 = vmul.f32 %v1187_v23, %v1714_v14  ;;  %1196 = vrsqrt.f32 %v337_v20  ;;  %v323_v41 = vmul.f32 0.03125, %v303_v28  ;;  %v408_v56 = vadd.f32 %v1790_v50, %v385_v39 }
 0x1d8   :  { %v324_v42 = vmul.f32 0.03125, %v306_v29  ;;  %1198 = vrsqrt.f32 %v338_v53  ;;  %v421_v43 = vpack.c.bf16 %v407_v62, %v406_v38  ;;  %v386_v48 = vmul.f32 %v1785_v25, %v363_v24 }
 0x1d9   :  { %v1189_v63 = vpop.eup %1188  ;;  %v339_v44 = vadd.f32 1e-05, %v323_v41  ;;  %v387_v57 = vmul.f32 %v1785_v25, %v364_v40 }
 0x1da   :  { %v340_v49 = vadd.f32 1e-05, %v324_v42  ;;  %v1191_v51 = vpop.eup %1190  ;;  %v365_v54 = vmul.f32 %v1189_v63, %v1717_v15  ;;  %v309_v55 = vpop.xlane.xlu1 %308  ;;  %1085 = vmatmul.mubr.msk.bf16.vlgmr.msra.gmra.mrb[0].mxu0 %vm164_vm0, %v421_v43  ;;  %v409_v14 = vadd.f32 %v1790_v50, %v386_v48 }
 0x1db   :  { %v366_v60 = vmul.f32 %v1191_v51, %v1726_v30  ;;  %1200 = vrsqrt.f32 %v339_v44  ;;  %v325_v61 = vmul.f32 0.03125, %v309_v55  ;;  %1101 = vmatpush3.bf16.msra.mxu0 %v1775_v34  ;;  %v410_v7 = vadd.f32 %v1790_v50, %v387_v57  ;;  %v1173_v57 = vld [vmem:[#allocation11 + $0x38] sm:$0xff]  }
 0x1dc   :  { %1202 = vrsqrt.f32 %v340_v49  ;;  %v422_v52 = vpack.c.bf16 %v409_v14, %v408_v56  ;;  %v388_v0 = vmul.f32 %v1785_v25, %v365_v54  ;;  %1102 = vmatprep.subr.bf16.mxu0 %v1778_v35  ;;  %v1169_v56 = vld [vmem:[#allocation11 + $0x18] sm:$0xff]   ;;  %v1171_v14 = vld [vmem:[#allocation11 + $0x28] sm:$0xff]  }
 0x1dd   :  { %v1193_v15 = vpop.eup %1192  ;;  %v341_v45 = vadd.f32 1e-05, %v325_v61  ;;  %v389_v8 = vmul.f32 %v1785_v25, %v366_v60  ;;  %v845_v60 = vld [vmem:[#allocation14 + $0x8] sm:$0xff]  ;;  %v1460_v61 = vmov 0  }
 0x1de   :  { %v1195_v1 = vpop.eup %1194  ;;  %v367_v6 = vmul.f32 %v1193_v15, %v1729_v33  ;;  %1088 = vmatprep.mubr.msk.bf16.mxu0 %vm164_vm0, %v422_v52  ;;  %v411_v30 = vadd.f32 %v1790_v50, %v388_v0  ;;  %1163 = vset.pattern.permute.xlu1 %v1460_v61  ;;  %v846_v52 = vld [vmem:[#allocation14 + $0x10] sm:$0xff]  ;;  %v844_v0 = vld [vmem:[#allocation14] sm:$0xff]  ;;  %v853_v15 = vld [vmem:[#allocation14 + $0x48] sm:$0xff] }
 0x1df   :  { %v368_v34 = vmul.f32 %v1195_v1, %v1738_v46  ;;  %1204 = vrsqrt.f32 %v341_v45  ;;  %1103 = vmatpush3.bf16.msra.mxu0 %v1778_v35  ;;  %v412_v53 = vadd.f32 %v1790_v50, %v389_v8  ;;  %1162 = vset.pattern.permute.xlu0 %v1460_v61  ;;  %v847_v45 = vld [vmem:[#allocation14 + $0x18] sm:$0xff] }
 0x1e0   :  { %v423_v9 = vpack.c.bf16 %v411_v30, %v410_v7  ;;  %v390_v16 = vmul.f32 %v1785_v25, %v367_v6  ;;  %867 = vperm.xlu1 %1163, %v845_v60   ;;  %862 = vperm.xlu0 %1162, %v844_v0   ;;  %v855_v1 = vld [vmem:[#allocation14 + $0x58] sm:$0xff]  ;;  %v848_v6 = vld [vmem:[#allocation14 + $0x20] sm:$0xff]  ;;  %v857_v7 = vld [vmem:[#allocation14 + $0x68] sm:$0xff] }
 0x1e1   :  { %v1197_v19 = vpop.eup %1196  ;;  %v391_v24 = vmul.f32 %v1785_v25, %v368_v34  ;;  %v849_v30 = vld [vmem:[#allocation14 + $0x28] sm:$0xff]  ;;  %v859_v8 = vld [vmem:[#allocation14 + $0x78] sm:$0xff]  ;;  %v850_v34 = vld [vmem:[#allocation14 + $0x30] sm:$0xff] }
 0x1e2   :  { %v1199_v20 = vpop.eup %1198  ;;  %v369_v33 = vmul.f32 %v1197_v19, %v1741_v47  ;;  %1089 = vmatmul.mubr.msk.bf16.gmra.mrb[4].mxu0 %vm164_vm0, %v423_v9  ;;  %v413_v23 = vadd.f32 %v1790_v50, %v390_v16  ;;  %v851_v9 = vld [vmem:[#allocation14 + $0x38] sm:$0xff]  ;;  %v852_v16 = vld [vmem:[#allocation14 + $0x40] sm:$0xff]  ;;  %v854_v19 = vld [vmem:[#allocation14 + $0x50] sm:$0xff] }
 0x1e3   :  { %v370_v46 = vmul.f32 %v1199_v20, %v1750_v58  ;;  %v414_v47 = vadd.f32 %v1790_v50, %v391_v24  ;;  %v856_v20 = vld [vmem:[#allocation14 + $0x60] sm:$0xff] }
 0x1e4   :  { %v424_v28 = vpack.c.bf16 %v413_v23, %v412_v53  ;;  %v392_v35 = vmul.f32 %v1785_v25, %v369_v33  ;;  %872 = vperm.xlu1 %1163, %v846_v52   ;;  %907 = vperm.xlu0 %1162, %v853_v15   ;;  %v858_v33 = vld [vmem:[#allocation14 + $0x70] sm:$0xff]  ;;  %v1847_v53 = vld [vmem:[#allocation10] ss:$0 sm:$0xff] }
 0x1e5   :  { %v1201_v29 = vpop.eup %1200  ;;  %v393_v40 = vmul.f32 %v1785_v25, %v370_v46 }
 0x1e6   :  { %v1203_v38 = vpop.eup %1202  ;;  %v371_v62 = vmul.f32 %v1201_v29, %v1753_v59  ;;  %1092 = vmatprep.mubr.msk.bf16.mxu0 %vm164_vm0, %v424_v28  ;;  %v415_v39 = vadd.f32 %v1790_v50, %v392_v35 }
 0x1e7   :  { %v372_v41 = vmul.f32 %v1203_v38, %v1762_v10  ;;  %v416_v59 = vadd.f32 %v1790_v50, %v393_v40 }
 0x1e8   :  { %v425_v42 = vpack.c.bf16 %v415_v39, %v414_v47  ;;  %v394_v58 = vmul.f32 %v1785_v25, %v371_v62  ;;  %877 = vperm.xlu1 %1163, %v847_v45   ;;  %917 = vperm.xlu0 %1162, %v855_v1  }
 0x1e9   :  { %v1205_v43 = vpop.eup %1204  ;;  %v395_v44 = vmul.f32 %v1785_v25, %v372_v41 }
 0x1ea   :  { %v373_v48 = vmul.f32 %v1205_v43, %v1765_v13  ;;  %1093 = vmatmul.mubr.msk.bf16.gmra.mrb[8].mxu0 %vm164_vm0, %v425_v42  ;;  %v417_v63 = vadd.f32 %v1790_v50, %v394_v58  ;;  %v1168_v13 = vld [vmem:[#allocation11 + $0x10] sm:$0xff]  }
 0x1eb   :  { %v418_v10 = vadd.f32 %v1790_v50, %v395_v44  ;;  %1104 = vmatprep.subr.bf16.mxu0 %v1168_v13  ;;  %1134 = vmatprep.subr.bf16.mxu1 %v1168_v13 }
 0x1ec   :  { %v426_v49 = vpack.c.bf16 %v417_v63, %v416_v59  ;;  %v396_v51 = vmul.f32 %v1785_v25, %v373_v48  ;;  %1105 = vmatpush3.bf16.msra.mxu0 %v1168_v13  ;;  %1142 = vmatpush3.bf16.msra.mxu1 %v1168_v13  ;;  %v1170_v25 = vld [vmem:[#allocation11 + $0x20] sm:$0xff]  }
 0x1ed   :  { %1106 = vmatprep.subr.bf16.mxu0 %v1169_v56  ;;  %1135 = vmatprep.subr.bf16.mxu1 %v1169_v56 }
 0x1ee   :  { %1096 = vmatprep.mubr.msk.bf16.mxu0 %vm164_vm0, %v426_v49  ;;  %v419_v54 = vadd.f32 %v1790_v50, %v396_v51  ;;  %v1172_v50 = vld [vmem:[#allocation11 + $0x30] sm:$0xff]   ;;  %882 = vperm.xlu1 %1163, %v848_v6  }
 0x1ef   :  { %927 = vperm.xlu0 %1162, %v857_v7  }
 0x1f0   :  { %v427_v55 = vpack.c.bf16 %v419_v54, %v418_v10  ;;  %1107 = vmatpush3.bf16.msra.mxu0 %v1169_v56  ;;  %1143 = vmatpush3.bf16.msra.mxu1 %v1169_v56 }
 0x1f1   :  { %1108 = vmatprep.subr.bf16.mxu0 %v1170_v25  ;;  %1136 = vmatprep.subr.bf16.mxu1 %v1170_v25 }
 0x1f2   :  { %1097 = vmatmul.mubr.msk.bf16.gmra.mrb[12].mxu0 %vm164_vm0, %v427_v55  ;;  %887 = vperm.xlu1 %1163, %v849_v30  }
 0x1f3   :  { %937 = vperm.xlu0 %1162, %v859_v8  }
 0x1f4   :  { %1109 = vmatpush3.bf16.msra.mxu0 %v1170_v25  ;;  %1144 = vmatpush3.bf16.msra.mxu1 %v1170_v25 }
 0x1f5   :  { %1110 = vmatprep.subr.bf16.mxu0 %v1171_v14  ;;  %1137 = vmatprep.subr.bf16.mxu1 %v1171_v14 }
 0x1f6   :  { %892 = vperm.xlu1 %1163, %v850_v34  }
 0x1f8   :  { %1111 = vmatpush3.bf16.msra.mxu0 %v1171_v14  ;;  %1145 = vmatpush3.bf16.msra.mxu1 %v1171_v14 }
 0x1f9   :  { %1112 = vmatprep.subr.bf16.mxu0 %v1172_v50  ;;  %1138 = vmatprep.subr.bf16.mxu1 %v1172_v50 }
 0x1fa   :  { %897 = vperm.xlu1 %1163, %v851_v9  }
 0x1fc   :  { %1113 = vmatpush3.bf16.msra.mxu0 %v1172_v50  ;;  %1146 = vmatpush3.bf16.msra.mxu1 %v1172_v50 }
 0x1fd   :  { %1114 = vmatprep.subr.bf16.mxu0 %v1173_v57  ;;  %1139 = vmatprep.subr.bf16.mxu1 %v1173_v57 }
 0x1fe   :  { %902 = vperm.xlu1 %1163, %v852_v16  }
 0x200   :  { %1115 = vmatpush3.bf16.msra.mxu0 %v1173_v57  ;;  %1147 = vmatpush3.bf16.msra.mxu1 %v1173_v57 }
 0x202   :  { %912 = vperm.xlu1 %1163, %v854_v19  }
 0x206   :  { %922 = vperm.xlu1 %1163, %v856_v20  }
 0x20a   :  { %932 = vperm.xlu1 %1163, %v858_v33  }
 0x2ad   :  { %v1086_v23 = vpop.f32.mrb[0].mxu0 }
 0x2ae   :  { %v518_v24 = vadd.f32 %v1086_v23, %v1847_v53  ;;  %v509_v46 = vpop.f32.mrb[1].mxu0 }
 0x2af   :  { %v510_v28 = vadd.f32 %v1847_v53, %v509_v46  ;;  %v1087_v35 = vpop.f32.mrb[2].mxu0 }
 0x2b0   :  { %v590_v29 = vmul.f32 0.70710677, %v518_v24  ;;  %v521_v38 = vadd.f32 %v1087_v35, %v1847_v53  ;;  %v512_v62 = vpop.f32.mrb[3].mxu0  ;;  %v574_v0 = vmul.f32 0.5, %v518_v24 }
 0x2b1   :  { %v588_v47 = vmul.f32 0.70710677, %v510_v28  ;;  %v513_v39 = vadd.f32 %v1847_v53, %v512_v62  ;;  %v572_v7 = vmul.f32 0.5, %v510_v28 }
 0x2b2   :  { %1206 = verf.f32 %v590_v29  ;;  %v591_v40 = vmul.f32 0.70710677, %v521_v38  ;;  %v575_v15 = vmul.f32 0.5, %v521_v38 }
 0x2b3   :  { %1208 = verf.f32 %v588_v47  ;;  %v589_v41 = vmul.f32 0.70710677, %v513_v39  ;;  %v573_v30 = vmul.f32 0.5, %v513_v39 }
 0x2b4   :  { %1210 = verf.f32 %v591_v40 }
 0x2b5   :  { %1212 = verf.f32 %v589_v41  ;;  %v1090_v42 = vpop.f32.mrb[4].mxu0 }
 0x2b6   :  { %v534_v58 = vadd.f32 %v1090_v42, %v1847_v53  ;;  %v525_v43 = vpop.f32.mrb[5].mxu0 }
 0x2b7   :  { %v526_v48 = vadd.f32 %v1847_v53, %v525_v43  ;;  %v1091_v59 = vpop.f32.mrb[6].mxu0 }
 0x2b8   :  { %v594_v63 = vmul.f32 0.70710677, %v534_v58  ;;  %v537_v44 = vadd.f32 %v1091_v59, %v1847_v53  ;;  %v528_v49 = vpop.f32.mrb[7].mxu0  ;;  %v578_v41 = vmul.f32 0.5, %v534_v58 }
 0x2b9   :  { %v592_v51 = vmul.f32 0.70710677, %v526_v48  ;;  %v1857_v10 = vadd.f32 %v1847_v53, %v528_v49 }
 0x2ba   :  { %1214 = verf.f32 %v594_v63  ;;  %v595_v54 = vmul.f32 0.70710677, %v537_v44  ;;  %v579_v49 = vmul.f32 0.5, %v537_v44 }
 0x2bb   :  { %1216 = verf.f32 %v592_v51  ;;  %v593_v55 = vmul.f32 0.70710677, %v1857_v10 }
 0x2bc   :  { %v1207_v13 = vpop.eup %1206  ;;  %1218 = verf.f32 %v595_v54 }
 0x2bd   :  { %v1209_v56 = vpop.eup %1208  ;;  %v622_v25 = vadd.f32 1.0, %v1207_v13  ;;  %1220 = verf.f32 %v593_v55  ;;  %v1094_v14 = vpop.f32.mrb[8].mxu0 }
 0x2be   :  { %v1211_v50 = vpop.eup %1210  ;;  %v620_v57 = vadd.f32 1.0, %v1209_v56  ;;  %v1861_v60 = vadd.f32 %v1094_v14, %v1847_v53  ;;  %v541_v61 = vpop.f32.mrb[9].mxu0  ;;  %v576_v56 = vmul.f32 0.5, %v526_v48 }
 0x2bf   :  { %v1213_v52 = vpop.eup %1212  ;;  %v623_v45 = vadd.f32 1.0, %v1211_v50  ;;  %v1864_v1 = vadd.f32 %v1847_v53, %v541_v61  ;;  %v1095_v6 = vpop.f32.mrb[10].mxu0  ;;  %v638_v16 = vmul.f32 %v622_v25, %v574_v0  ;;  %v577_v61 = vmul.f32 0.5, %v1857_v10 }
 0x2c0   :  { %v621_v8 = vadd.f32 1.0, %v1213_v52  ;;  %v598_v34 = vmul.f32 0.70710677, %v1861_v60  ;;  %v544_v9 = vpop.f32.mrb[11].mxu0  ;;  %v553_v33 = vadd.f32 %v1095_v6, %v1847_v53  ;;  %v636_v23 = vmul.f32 %v620_v57, %v572_v7 }
 0x2c1   :  { %v639_v19 = vmul.f32 %v623_v45, %v575_v15  ;;  %v596_v20 = vmul.f32 0.70710677, %v1864_v1  ;;  %v545_v46 = vadd.f32 %v1847_v53, %v544_v9 }
 0x2c2   :  { %v637_v24 = vmul.f32 %v621_v8, %v573_v30  ;;  %1222 = verf.f32 %v598_v34  ;;  %v599_v29 = vmul.f32 0.70710677, %v553_v33 }
 0x2c3   :  { %v653_v35 = vpack.c.bf16 %v639_v19, %v638_v16  ;;  %1224 = verf.f32 %v596_v20  ;;  %v597_v38 = vmul.f32 0.70710677, %v545_v46  ;;  %v583_v20 = vmul.f32 0.5, %v553_v33 }
 0x2c4   :  { %v1215_v28 = vpop.eup %1214  ;;  %v652_v62 = vpack.c.bf16 %v637_v24, %v636_v23  ;;  %1226 = verf.f32 %v599_v29  ;;  %v580_v24 = vmul.f32 0.5, %v1864_v1 }
 0x2c5   :  { %v1217_v47 = vpop.eup %1216  ;;  %v1098_v39 = vpop.f32.mrb[12].mxu0  ;;  %v626_v42 = vadd.f32 1.0, %v1215_v28  ;;  %1228 = verf.f32 %v597_v38 }
 0x2c6   :  { %v1219_v40 = vpop.eup %1218  ;;  %v566_v43 = vadd.f32 %v1098_v39, %v1847_v53  ;;  %v557_v59 = vpop.f32.mrb[13].mxu0  ;;  %1116 = vmatprep.mubr.bf16.mxu0 %v652_v62  ;;  %v624_v13 = vadd.f32 1.0, %v1217_v47 }
 0x2c7   :  { %v1221_v63 = vpop.eup %1220  ;;  %v627_v51 = vadd.f32 1.0, %v1219_v40  ;;  %v558_v54 = vadd.f32 %v1847_v53, %v557_v59  ;;  %v1099_v55 = vpop.f32.mrb[14].mxu0  ;;  %1117 = vmatmul.mubr.bf16.vlgmr.msra.gmra.mrb[16].mxu0 %v653_v35  ;;  %v642_v15 = vmul.f32 %v626_v42, %v578_v41  ;;  %v581_v35 = vmul.f32 0.5, %v545_v46 }
 0x2c8   :  { %v602_v25 = vmul.f32 0.70710677, %v566_v43  ;;  %v569_v14 = vadd.f32 %v1099_v55, %v1847_v53  ;;  %v560_v50 = vpop.f32.mrb[15].mxu0  ;;  %v625_v58 = vadd.f32 1.0, %v1221_v63  ;;  %v640_v6 = vmul.f32 %v624_v13, %v576_v56 }
 0x2c9   :  { %v643_v57 = vmul.f32 %v627_v51, %v579_v49  ;;  %v600_v52 = vmul.f32 0.70710677, %v558_v54  ;;  %v561_v0 = vadd.f32 %v1847_v53, %v560_v50  ;;  %v582_v53 = vmul.f32 0.5, %v1861_v60 }
 0x2ca   :  { %1230 = verf.f32 %v602_v25  ;;  %v603_v44 = vmul.f32 0.70710677, %v569_v14  ;;  %v641_v7 = vmul.f32 %v625_v58, %v577_v61  ;;  %v586_v60 = vmul.f32 0.5, %v566_v43 }
 0x2cb   :  { %1232 = verf.f32 %v600_v52  ;;  %v601_v45 = vmul.f32 0.70710677, %v561_v0  ;;  %v655_v48 = vpack.c.bf16 %v643_v57, %v642_v15  ;;  %v587_v33 = vmul.f32 0.5, %v569_v14  ;;  %v868_v52 = vpop.permute.xlu1 %867  ;;  %v1877_v14 = vld [vmem:[#allocation13] ss:$0 sm:$0xff] }
 0x2cc   :  { %v1223_v30 = vpop.eup %1222  ;;  %1234 = verf.f32 %v603_v44  ;;  %v654_v34 = vpack.c.bf16 %v641_v7, %v640_v6  ;;  %v584_v13 = vmul.f32 0.5, %v558_v54  ;;  %v585_v1 = vmul.f32 0.5, %v561_v0 }
 0x2cd   :  { %v1225_v8 = vpop.eup %1224  ;;  %1236 = verf.f32 %v601_v45  ;;  %v630_v9 = vadd.f32 1.0, %v1223_v30 }
 0x2ce   :  { %v1227_v16 = vpop.eup %1226  ;;  %v628_v19 = vadd.f32 1.0, %v1225_v8  ;;  %1120 = vmatprep.mubr.bf16.mxu1 %v654_v34 }
 0x2cf   :  { %v1229_v10 = vpop.eup %1228  ;;  %v631_v23 = vadd.f32 1.0, %v1227_v16  ;;  %1121 = vmatmul.mubr.bf16.vlgmr.msra.gmra.mrb[0].mxu1 %v655_v48  ;;  %v646_v28 = vmul.f32 %v630_v9, %v582_v53  ;;  %v873_v15 = vpop.permute.xlu1 %872 }
 0x2d0   :  { %v629_v29 = vadd.f32 1.0, %v1229_v10  ;;  %v644_v62 = vmul.f32 %v628_v19, %v580_v24  ;;  %v863_v53 = vpop.permute.xlu0 %862 }
 0x2d1   :  { %v647_v38 = vmul.f32 %v631_v23, %v583_v20 }
 0x2d2   :  { %v645_v47 = vmul.f32 %v629_v29, %v581_v35 }
 0x2d3   :  { %v657_v40 = vpack.c.bf16 %v647_v38, %v646_v28  ;;  %v878_v44 = vpop.permute.xlu1 %877 }
 0x2d4   :  { %v1231_v39 = vpop.eup %1230  ;;  %v656_v59 = vpack.c.bf16 %v645_v47, %v644_v62 }
 0x2d5   :  { %v1233_v41 = vpop.eup %1232  ;;  %v634_v42 = vadd.f32 1.0, %v1231_v39 }
 0x2d6   :  { %v1235_v63 = vpop.eup %1234  ;;  %v632_v49 = vadd.f32 1.0, %v1233_v41  ;;  %1124 = vmatprep.mubr.bf16.mxu1 %v656_v59  ;;  %v908_v41 = vpop.permute.xlu0 %907 }
 0x2d7   :  { %v1237_v51 = vpop.eup %1236  ;;  %v635_v55 = vadd.f32 1.0, %v1235_v63  ;;  %1125 = vmatmul.mubr.bf16.gmra.mrb[4].mxu1 %v657_v40  ;;  %v650_v56 = vmul.f32 %v634_v42, %v586_v60  ;;  %v883_v45 = vpop.permute.xlu1 %882 }
 0x2d8   :  { %v633_v46 = vadd.f32 1.0, %v1237_v51  ;;  %v648_v50 = vmul.f32 %v632_v49, %v584_v13 }
 0x2d9   :  { %v651_v25 = vmul.f32 %v635_v55, %v587_v33 }
 0x2da   :  { %v649_v58 = vmul.f32 %v633_v46, %v585_v1  ;;  %v918_v46 = vpop.permute.xlu0 %917 }
 0x2db   :  { %v659_v57 = vpack.c.bf16 %v651_v25, %v650_v56  ;;  %v888_v43 = vpop.permute.xlu1 %887 }
 0x2dc   :  { %v658_v61 = vpack.c.bf16 %v649_v58, %v648_v50 }
 0x2de   :  { %1128 = vmatprep.mubr.bf16.mxu1 %v658_v61 }
 0x2df   :  { %1129 = vmatmul.mubr.bf16.gmra.mrb[8].mxu1 %v659_v57  ;;  %v893_v6 = vpop.permute.xlu1 %892 }
 0x2e3   :  { %v898_v10 = vpop.permute.xlu1 %897 }
 0x2e7   :  { %v903_v62 = vpop.permute.xlu1 %902 }
 0x2eb   :  { %v913_v55 = vpop.permute.xlu1 %912 }
 0x39a   :  { %v1118_v54 = vpop.f32.mrb[16].mxu0 }
 0x39b   :  { %v774_v0 = vadd.f32 %v1118_v54, %v1877_v14  ;;  %v765_v7 = vpop.f32.mrb[17].mxu0 }
 0x39c   :  { %v766_v30 = vadd.f32 %v1877_v14, %v765_v7  ;;  %v1119_v48 = vpop.f32.mrb[18].mxu0 }
 0x39d   :  { %v830_v8 = vadd.f32 %v1617_v3, %v774_v0  ;;  %v777_v34 = vadd.f32 %v1119_v48, %v1877_v14  ;;  %v768_v9 = vpop.f32.mrb[19].mxu0 }
 0x39e   :  { %v828_v16 = vadd.f32 %v1615_v2, %v766_v30  ;;  %v769_v19 = vadd.f32 %v1877_v14, %v768_v9 }
 0x39f   :  { %v942_v20 = vmul.f32 %v873_v15, %v830_v8  ;;  %v831_v23 = vadd.f32 %v1621_v5, %v777_v34  ;;  %v923_v15 = vpop.permute.xlu1 %922 }
 0x3a0   :  { %v940_v24 = vmul.f32 %v863_v53, %v828_v16  ;;  %v829_v35 = vadd.f32 %v1619_v4, %v769_v19 }
 0x3a1   :  { %958 = vst.msk [vmem:[#allocation16 + $0x10] sm:$0xff] %vm164_vm0, %v942_v20  ;;  %v943_v29 = vmul.f32 %v878_v44, %v831_v23 }
 0x3a2   :  { %956 = vst.msk [vmem:[#allocation16] sm:$0xff] %vm164_vm0, %v940_v24  ;;  %v941_v3 = vmul.f32 %v868_v52, %v829_v35  ;;  %v1122_v28 = vpop.f32.mrb[0].mxu1 }
 0x3a3   :  { %959 = vst.msk [vmem:[#allocation16 + $0x18] sm:$0xff] %vm164_vm0, %v943_v29  ;;  %v790_v2 = vadd.f32 %v1122_v28, %v1877_v14  ;;  %v781_v38 = vpop.f32.mrb[1].mxu1  ;;  %v933_v8 = vpop.permute.xlu1 %932 }
 0x3a4   :  { %957 = vst.msk [vmem:[#allocation16 + $0x8] sm:$0xff] %vm164_vm0, %v941_v3  ;;  %v782_v5 = vadd.f32 %v1877_v14, %v781_v38  ;;  %v1123_v47 = vpop.f32.mrb[2].mxu1 }
 0x3a5   :  { %v834_v4 = vadd.f32 %v1639_v17, %v790_v2  ;;  %v793_v39 = vadd.f32 %v1123_v47, %v1877_v14  ;;  %v784_v40 = vpop.f32.mrb[3].mxu1 }
 0x3a6   :  { %v832_v42 = vadd.f32 %v1631_v11, %v782_v5  ;;  %v785_v59 = vadd.f32 %v1877_v14, %v784_v40 }
 0x3a7   :  { %v946_v63 = vmul.f32 %v893_v6, %v834_v4  ;;  %v835_v49 = vadd.f32 %v1641_v18, %v793_v39  ;;  %v928_v6 = vpop.permute.xlu0 %927 }
 0x3a8   :  { %v944_v51 = vmul.f32 %v883_v45, %v832_v42  ;;  %v833_v60 = vadd.f32 %v1633_v12, %v785_v59 }
 0x3a9   :  { %962 = vst.msk [vmem:[#allocation16 + $0x30] sm:$0xff] %vm164_vm0, %v946_v63  ;;  %v947_v33 = vmul.f32 %v898_v10, %v835_v49 }
 0x3aa   :  { %960 = vst.msk [vmem:[#allocation16 + $0x20] sm:$0xff] %vm164_vm0, %v944_v51  ;;  %v945_v17 = vmul.f32 %v888_v43, %v833_v60  ;;  %v1126_v13 = vpop.f32.mrb[4].mxu1 }
 0x3ab   :  { %963 = vst.msk [vmem:[#allocation16 + $0x38] sm:$0xff] %vm164_vm0, %v947_v33  ;;  %v806_v11 = vadd.f32 %v1126_v13, %v1877_v14  ;;  %v797_v1 = vpop.f32.mrb[5].mxu1  ;;  %v938_v10 = vpop.permute.xlu0 %937 }
 0x3ac   :  { %961 = vst.msk [vmem:[#allocation16 + $0x28] sm:$0xff] %vm164_vm0, %v945_v17  ;;  %v798_v18 = vadd.f32 %v1877_v14, %v797_v1  ;;  %v1127_v56 = vpop.f32.mrb[6].mxu1 }
 0x3ad   :  { %v838_v12 = vadd.f32 %v1655_v26, %v806_v11  ;;  %v809_v25 = vadd.f32 %v1127_v56, %v1877_v14  ;;  %v800_v50 = vpop.f32.mrb[7].mxu1 }
 0x3ae   :  { %v836_v58 = vadd.f32 %v1647_v21, %v798_v18  ;;  %v801_v57 = vadd.f32 %v1877_v14, %v800_v50 }
 0x3af   :  { %v950_v61 = vmul.f32 %v913_v55, %v838_v12  ;;  %v839_v52 = vadd.f32 %v1657_v27, %v809_v25 }
 0x3b0   :  { %v948_v44 = vmul.f32 %v903_v62, %v836_v58  ;;  %v837_v45 = vadd.f32 %v1649_v22, %v801_v57 }
 0x3b1   :  { %966 = vst.msk [vmem:[#allocation16 + $0x50] sm:$0xff] %vm164_vm0, %v950_v61  ;;  %v951_v43 = vmul.f32 %v918_v46, %v839_v52 }
 0x3b2   :  { %964 = vst.msk [vmem:[#allocation16 + $0x40] sm:$0xff] %vm164_vm0, %v948_v44  ;;  %v949_v26 = vmul.f32 %v908_v41, %v837_v45  ;;  %v1130_v54 = vpop.f32.mrb[8].mxu1 }
 0x3b3   :  { %967 = vst.msk [vmem:[#allocation16 + $0x58] sm:$0xff] %vm164_vm0, %v951_v43  ;;  %v822_v21 = vadd.f32 %v1130_v54, %v1877_v14  ;;  %v813_v0 = vpop.f32.mrb[9].mxu1 }
 0x3b4   :  { %965 = vst.msk [vmem:[#allocation16 + $0x48] sm:$0xff] %vm164_vm0, %v949_v26  ;;  %v814_v27 = vadd.f32 %v1877_v14, %v813_v0  ;;  %v1131_v7 = vpop.f32.mrb[10].mxu1 }
 0x3b5   :  { %v842_v22 = vadd.f32 %v1671_v36, %v822_v21  ;;  %v825_v30 = vadd.f32 %v1131_v7, %v1877_v14  ;;  %v816_v48 = vpop.f32.mrb[11].mxu1 }
 0x3b6   :  { %v840_v34 = vadd.f32 %v1663_v31, %v814_v27  ;;  %v817_v9 = vadd.f32 %v1877_v14, %v816_v48 }
 0x3b7   :  { %v954_v16 = vmul.f32 %v933_v8, %v842_v22  ;;  %v843_v19 = vadd.f32 %v1673_v37, %v825_v30 }
 0x3b8   :  { %v952_v53 = vmul.f32 %v923_v15, %v840_v34  ;;  %v841_v20 = vadd.f32 %v1665_v32, %v817_v9 }
 0x3b9   :  { %970 = vst.msk [vmem:[#allocation16 + $0x70] sm:$0xff] %vm164_vm0, %v954_v16  ;;  %v955_v36 = vmul.f32 %v938_v10, %v843_v19 }
 0x3ba   :  { %968 = vst.msk [vmem:[#allocation16 + $0x60] sm:$0xff] %vm164_vm0, %v952_v53  ;;  %v953_v23 = vmul.f32 %v928_v6, %v841_v20 }
 0x3bb   :  { %971 = vst.msk [vmem:[#allocation16 + $0x78] sm:$0xff] %vm164_vm0, %v955_v36 }
 0x3bc   :  { %969 = vst.msk [vmem:[#allocation16 + $0x68] sm:$0xff] %vm164_vm0, %v953_v23 }
 0x3bd   :  { %1425 = shalt.err (!%p1422_p12)
}
 0x3be   :  { %s1426_s11 = scalar_lea.hbm %s1950_s8, 2048 }
 0x3bf   :  { %p1427_p13 = scmp.ne.s32.totalorder %s1950_s8, %s1426_s11  ;;  %p1430_p0 = scmp.lt.u32.totalorder %s1426_s11, %s1950_s8 }
 0x3c1   :  { %p1432_p1 = pnand %p1430_p0, %p1427_p13 }
 0x3c3   :  { %1435 = shalt.err (!%p1432_p1)
}
 0x3c4   :  { %983 = dma.vmem_to_hbm [thread:$0]  %s978_s2, 2048, %s1950_s8, [#allocation4], %s1458_s6, %s1458_s6, %s1459_s23  }
 0x3c5   :  { %1446 = dma.done.wait [#allocation4], 2048  }
 0x3c6   :  { %1447 = vsyncadd [#allocation4], 4294965248 }
 0x3c7   :  { %987 = vsyncpa [#allocation3], 1 }
 0x3c8   :  { %988 = vsyncpa [#allocation6], 1 }
 0x3c9   :  { %989 = vsyncpa [#allocation9], 1 }
 0x3ca   :  { %990 = vsyncpa [#allocation12], 1 }
 0x3cb   :  { %991 = vsyncpa [#allocation15], 1 }
 0x3cc   :  { %992 = vsyncpa [#allocation4], 1 }

// kernel: nat_cross_layer_forward.4
= control target key start
LH: loop header
LB: loop body
LE: loop exit
PB: predicated region body
PF: predicated region fallthrough
CT: control target
= control target key end

     0   :  { %s4408_s0 = inlined_call_operand.hbm [shape: f32[2,64,32], index: 0, kind: input, shape index: {}]   ;;  %s4409_s1 = inlined_call_operand.hbm [shape: f32[2,64,32], index: 1, kind: input, shape index: {}]   ;;  %s4410_s2 = inlined_call_operand.hbm [shape: bf16[2,64,64], index: 2, kind: input, shape index: {}]   ;;  %s4411_s3 = inlined_call_operand.hbm [shape: bf16[32,32], index: 3, kind: input, shape index: {}]   ;;  %s4412_s4 = inlined_call_operand.hbm [shape: f32[1,32], index: 4, kind: input, shape index: {}]   ;;  %s4413_s5 = inlined_call_operand.hbm [shape: bf16[32,32], index: 5, kind: input, shape index: {}]   ;;  %s4414_s6 = inlined_call_operand.hbm [shape: f32[1,32], index: 6, kind: input, shape index: {}]   ;;  %s4415_s7 = inlined_call_operand.hbm [shape: f32[4,64,64], index: 7, kind: input, shape index: {}]   ;;  %s4416_s8 = inlined_call_operand.hbm [shape: bf16[2,64,32], index: 8, kind: output, shape index: {}]  }
   0x1   :  { %4442 = sst [smem:[#allocation38_spill]] %s4409_s1 }
   0x2   :  { %4443 = sst [smem:[#allocation39_spill]] %s4411_s3 }
   0x3   :  { %4444 = sst [smem:[#allocation40_spill]] %s4413_s5 }
   0x4   :  { %4445 = sst [smem:[#allocation41_spill]] %s4416_s8 }
   0x5   :  { %13 = vsyncpa [#allocation5], 0 }
   0x6   :  { %15 = vsyncpa [#allocation5 + $0x1], 0 }
   0x7   :  { %16 = vsyncpa [#allocation8], 0 }
   0x8   :  { %18 = vsyncpa [#allocation8 + $0x1], 0 }
   0x9   :  { %19 = vsyncpa [#allocation11], 0 }
   0xa   :  { %20 = vsyncpa [#allocation14], 0 }
   0xb   :  { %21 = vsyncpa [#allocation17], 0 }
   0xc   :  { %22 = vsyncpa [#allocation6], 0 }
   0xd   :  { %24 = vsyncpa [#allocation6 + $0x1], 0  ;;  %s3420_s27 = smov 0   ;;  %s3422_s28 = smov 0  }
   0xe   :  { %s3424_s29 = smov 0   ;;  %s3426_s30 = smov 0  }
   0xf   :  { %s3428_s9 = smov 0   ;;  %s3430_s10 = smov 0  }
  0x10 LB: > { %4446 = sst [smem:[#allocation25_spill]] %s3328_s27  ;;  %s3451_s11 = sadd.s32 4294967295, %s3348_s10   ;;  %s3348_s10 = sphi %s3430_s10, %s30_s10   ;;  %s3344_s9 = sphi %s3428_s9, %s4507_s9   ;;  %s3340_s30 = sphi %s3426_s30, %s4506_s30   ;;  %s3336_s29 = sphi %s3424_s29, %s4502_s29   ;;  %s3332_s28 = sphi %s3422_s28, %s4505_s28   ;;  %s3328_s27 = sphi %s3420_s27, %s4504_s27  }
  0x11   : > { %4447 = sst [smem:[#allocation26_spill]] %s3336_s29  ;;  %p2376_p0 = scmp.ge.s32.totalorder %s3348_s10, 1 }
  0x12   : > { %4448 = sst [smem:[#allocation27_spill]] %s3340_s30  ;;  %p4425_p1 = scmp.eq.s32.totalorder %s3451_s11, 0 }
  0x13   : > { %4449 = sst [smem:[#allocation28_spill]] %s3348_s10  ;;  %p267_p3 = scmp.lt.s32.totalorder %s3348_s10, 3 }
  0x14   : > { %s3350_s13 = smov [#allocation10]   ;;  %s3351_s16 = smov [#allocation13]  }
  0x15   : > { %p3457_p4 = pnand %p2376_p0, %p267_p3  ;;  %s279_s14 = sshll.u32 %s3350_s13, 4  ;;  %s3461_s14 = int_to_ptr.vmem [resolvable:$true] %s279_s14 }
  0x16   : > { %s303_s17 = sshll.u32 %s3351_s16, 4  ;;  %s4452_s3 = sld [smem:[#allocation39_spill]]  ;;  %s3472_s17 = int_to_ptr.vmem [resolvable:$true] %s303_s17 }
  0x17   : > { %s4450_s12 = scalar_select %p3457_p4, 1, 0 }
  0x18   : > { %p2761_p5 = pneg %p3457_p4 }
  0x1a   : > { %p3468_p7 = pnand %p2761_p5, %p4425_p1 }
  0x1c   : > { %s4451_s15 = scalar_select %p3468_p7, 1, 0 }
  0x1d   : > { %s3020_s20 = scalar_lea.hbm %s4452_s3, 256  ;;  %p3482_p9 = pneg %p3468_p7 }
  0x1e   : > { %p3021_p8 = scmp.ne.s32.totalorder %s4452_s3, %s3020_s20  ;;  %p3027_p12 = scmp.lt.u32.totalorder %s3020_s20, %s4452_s3 }
  0x1f   : > { %s4453_s23 = scalar_select %p3482_p9, 1, 0 }
  0x20   : > { %p3023_p10 = pnand %p3482_p9, %p3021_p8 }
  0x22   : > { %p3024_p11 = pneg %p3023_p10 }
  0x24   : > { %p3029_p13 = pnand %p3027_p12, %p3024_p11 }
  0x26   : > { %3032 = shalt.err (!%p3029_p13)
}
  0x27   : > { %s3033_s26 = scalar_lea.vmem %s3461_s14, 256  ;;  %p3041_p6 = scmp.lt.s32.totalorder %s3461_s14, %s3461_s14 }
  0x28   : > { %p3034_p0 = scmp.ne.s32.totalorder %s3461_s14, %s3033_s26  ;;  %p3042_p2 = scmp.lt.s32.totalorder %s3033_s26, %s3033_s26 }
  0x2a   : > { %p3036_p3 = pnand %p3034_p0, %p3482_p9  ;;  %p3043_p8 = por %p3042_p2, %p3041_p6 }
  0x2c   : > { %p3037_p5 = pneg %p3036_p3 }
  0x2e   : > { %p3044_p10 = pnand %p3043_p8, %p3037_p5 }
  0x30   : > { %3047 = shalt.err (!%p3044_p10)
}
  0x31   : > { %s4419_s13 = smov 64   ;;  %s4420_s16 = smov 4  }
  0x32   : > { %2764 = dma.hbm_to_vmem [thread:$0]  (!%p3468_p7), %s4452_s3, 256, %s3461_s14, [#allocation11], %s4419_s13, %s4419_s13, %s4420_s16  }
  0x33   : > { %s4454_s5 = sld [smem:[#allocation40_spill]] }
  0x39   : > { %s3048_s22 = scalar_lea.hbm %s4454_s5, 256 }
  0x3a   : > { %p3049_p2 = scmp.ne.s32.totalorder %s4454_s5, %s3048_s22  ;;  %p3055_p12 = scmp.lt.u32.totalorder %s3048_s22, %s4454_s5 }
  0x3c   : > { %p3051_p6 = pnand %p3049_p2, %p3482_p9 }
  0x3e   : > { %p3052_p11 = pneg %p3051_p6 }
  0x40   : > { %p3057_p13 = pnand %p3055_p12, %p3052_p11 }
  0x42   : > { %3060 = shalt.err (!%p3057_p13)
}
  0x43   : > { %s3061_s14 = scalar_lea.vmem %s3472_s17, 256  ;;  %p3069_p8 = scmp.lt.s32.totalorder %s3472_s17, %s3472_s17 }
  0x44   : > { %p3062_p0 = scmp.ne.s32.totalorder %s3472_s17, %s3061_s14  ;;  %p3070_p10 = scmp.lt.s32.totalorder %s3061_s14, %s3061_s14 }
  0x46   : > { %p3064_p3 = pnand %p3062_p0, %p3482_p9  ;;  %p3071_p2 = por %p3070_p10, %p3069_p8 }
  0x48   : > { %p3065_p5 = pneg %p3064_p3 }
  0x4a   : > { %p3072_p6 = pnand %p3071_p2, %p3065_p5 }
  0x4c   : > { %3075 = shalt.err (!%p3072_p6)
}
  0x4d   : > { %2770 = dma.hbm_to_vmem [thread:$0]  (!%p3468_p7), %s4454_s5, 256, %s3472_s17, [#allocation14], %s4419_s13, %s4419_s13, %s4420_s16  }
  0x4e   : > { %s2375_s19 = sadd.s32 4294967294, %s3348_s10   ;;  %s42_s20 = sadd.s32 1, %s3344_s9 }
  0x4f   : > { %s51_s21 = sadd.s32 1, %s3336_s29  ;;  %p44_p11 = scmp.ge.s32.totalorder %s42_s20, 2 }
  0x50   : > { %p58_p12 = scmp.ne.s32.totalorder %s3336_s29, %s3332_s28  ;;  %p59_p13 = scmp.eq.s32.totalorder %s3348_s10, 0 }
  0x51   : > { %p64_p0 = scmp.ne.s32.totalorder %s3332_s28, %s3328_s27  ;;  %s4509_s20 = smov (%p44_p11, %s42_s20), 0 }
  0x52   : > { %4455 = sst [smem:[#allocation29_spill]] %s4509_s20  ;;  %p60_p3 = por %p59_p13, %p58_p12 }
  0x53   : > { %p3544_p5 = por %p4425_p1, %p64_p0  ;;  %s46_s17 = ssub.s32 %s3344_s9, %s4509_s20 }
  0x54   : > { %p4457_p8 = scmp.eq.s32.totalorder %s3451_s11, 1  ;;  %p49_p2 = scmp.eq.s32.totalorder %s46_s17, 0 }
  0x55   : > { %s4456_s22 = scalar_select %p3544_p5, 1, 0 }
  0x56   : > { %p3552_p10 = por %p4457_p8, %p58_p12  ;;  %p260_p6 = scmp.eq.s32.totalorder %s2375_s19, 1 }
  0x57   : > { %s3557_s25 = scalar_select %p49_p2, %s3336_s29, %s51_s21  }
  0x58   : > { %s4458_s24 = scalar_select %p3552_p10, 1, 0 }
  0x59   : > { %4460 = sst [smem:[#allocation31_spill]] %s3557_s25  ;;  %p3559_p4 = por %p260_p6, %p64_p0 }
  0x5a   : > { %4459 = sst [smem:[#allocation30_spill]] %s4458_s24  ;;  %p2796_p11 = scmp.lt.s32.totalorder %s3348_s10, 2 }
  0x5b   : > { %s4461_s26 = scalar_select %p3559_p4, 1, 0 }
  0x5c   : > { %s3565_s14 = sand.u32 1, %s3336_s29   ;;  %s4424_s8 = sshll.u32 %s3344_s9, 10 }
  0x5d   : > { %4462 = sst [smem:[#allocation32_spill]] %s4461_s26  ;;  %s4423_s18 = sshll.u32 %s3565_s14, 6 }
  0x5e   : > { %p3569_p13 = pnand %p2796_p11, %p60_p3  ;;  %s367_s17 = sand.u32 1, %s3348_s10  }
  0x5f   : > { %s4464_s1 = sld [smem:[#allocation38_spill]]  ;;  %s371_s3 = scalar_lea.vmem [#allocation7], %s4423_s18 }
  0x60   : > { %s4463_s13 = scalar_select %p3569_p13, 1, 0 }
  0x61   : > { %s380_s5 = sshll.u32 %s371_s3, 4  ;;  %s3585_s20 = scalar_lea.sflag [#allocation8], %s367_s17  ;;  %s3583_s5 = int_to_ptr.vmem [resolvable:$true] %s380_s5 }
  0x62   : > { %p3591_p0 = pneg %p3569_p13 }
  0x64   : > { %s4465_s29 = scalar_select %p3591_p0, 1, 0 }
  0x65   : > { %s3579_s16 = scalar_lea.hbm %s4464_s1, %s4424_s8  ;;  %s3081_s18 = scalar_lea.hbm %s4464_s1, 2048 }
  0x66   : > { %s3076_s25 = scalar_lea.hbm %s3579_s16, 1024  ;;  %p3082_p2 = scmp.lt.u32.totalorder %s3579_s16, %s4464_s1 }
  0x67   : > { %p3077_p12 = scmp.ne.s32.totalorder %s3579_s16, %s3076_s25  ;;  %p3083_p6 = scmp.lt.u32.totalorder %s3081_s18, %s3076_s25 }
  0x68   : > { %p3085_p1 = scmp.lt.u32.totalorder %s3076_s25, %s3579_s16 }
  0x69   : > { %p3079_p3 = pnand %p3591_p0, %p3077_p12  ;;  %p3084_p11 = por %p3083_p6, %p3082_p2 }
  0x6b   : > { %p3080_p8 = pneg %p3079_p3  ;;  %p3086_p4 = por %p3085_p1, %p3084_p11 }
  0x6d   : > { %p3087_p10 = pnand %p3086_p4, %p3080_p8 }
  0x6f   : > { %3090 = shalt.err (!%p3087_p10)
}
  0x70   : > { %s3091_s17 = scalar_lea.vmem %s3583_s5, 1024  ;;  %s3354_s19 = smov [#allocation7]  }
  0x71   : > { %p3092_p12 = scmp.ne.s32.totalorder %s3583_s5, %s3091_s17  ;;  %s3096_s21 = sshll.u32 %s3354_s19, 4  ;;  %s3097_s21 = int_to_ptr.vmem [resolvable:$false] %s3096_s21 }
  0x72   : > { %s3098_s8 = scalar_lea.vmem %s3097_s21, 2048  ;;  %p3099_p7 = scmp.lt.s32.totalorder %s3583_s5, %s3097_s21 }
  0x73   : > { %p3094_p3 = pnand %p3092_p12, %p3591_p0  ;;  %p3100_p9 = scmp.lt.s32.totalorder %s3098_s8, %s3091_s17 }
  0x75   : > { %p3095_p5 = pneg %p3094_p3  ;;  %p3101_p2 = por %p3100_p9, %p3099_p7 }
  0x77   : > { %p3102_p6 = pnand %p3101_p2, %p3095_p5 }
  0x79   : > { %3105 = shalt.err (!%p3102_p6)
}
  0x7a   : > { %s3355_s25 = smov 128   ;;  %s3356_s18 = smov 8  }
  0x7b   : > { %2783 = dma.hbm_to_vmem [thread:$0]  (!%p3569_p13), %s3579_s16, 1024, %s3583_s5, %s3585_s20, %s3355_s25, %s3355_s25, %s3356_s18  }
  0x7c   : > { %s3357_s3 = smov [#allocation12]   ;;  %s3358_s21 = smov [#allocation15]  }
  0x7d   : > { %s293_s19 = sshll.u32 %s3357_s3, 4  ;;  %s317_s17 = sshll.u32 %s3358_s21, 4  ;;  %s294_s19 = int_to_ptr.vmem [resolvable:$true] %s293_s19  ;;  %s318_s17 = int_to_ptr.vmem [resolvable:$true] %s317_s17 }
  0x7e   : > { %s3106_s10 = scalar_lea.hbm %s4412_s4, 16  ;;  %p4466_p4 = scmp.ne.s32.totalorder %s4453_s23, 0 }
  0x7f   : > { %p3107_p1 = scmp.ne.s32.totalorder %s4412_s4, %s3106_s10  ;;  %p3113_p5 = scmp.lt.u32.totalorder %s3106_s10, %s4412_s4 }
  0x81   : > { %p3109_p7 = pnand %p3107_p1, %p4466_p4 }
  0x83   : > { %p3110_p9 = pneg %p3109_p7 }
  0x85   : > { %p3115_p10 = pnand %p3113_p5, %p3110_p9 }
  0x87   : > { %3118 = shalt.err (!%p3115_p10)
}
  0x88   : > { %s3119_s5 = scalar_lea.vmem %s294_s19, 16  ;;  %s3126_s1 = scalar_lea.vmem %s294_s19, 32 }
  0x89   : > { %p3120_p8 = scmp.ne.s32.totalorder %s294_s19, %s3119_s5  ;;  %p3127_p3 = scmp.lt.s32.totalorder %s294_s19, %s294_s19 }
  0x8a   : > { %p3128_p2 = scmp.lt.s32.totalorder %s3126_s1, %s3119_s5 }
  0x8b   : > { %p3122_p11 = pnand %p3120_p8, %p4466_p4 }
  0x8c   : > { %p3129_p6 = por %p3128_p2, %p3127_p3 }
  0x8d   : > { %p3123_p12 = pneg %p3122_p11 }
  0x8f   : > { %p3130_p13 = pnand %p3129_p6, %p3123_p12 }
  0x91   : > { %3133 = shalt.err (!%p3130_p13)
}
  0x92   : > { %p4467_p1 = scmp.ne.s32.totalorder %s4451_s15, 0  ;;  %s3134_s24 = scalar_lea.hbm %s4414_s6, 16 }
  0x93   : > { %p3135_p7 = scmp.ne.s32.totalorder %s4414_s6, %s3134_s24  ;;  %p3141_p13 = scmp.lt.u32.totalorder %s3134_s24, %s4414_s6 }
  0x94   : > { %2767 = dma.hbm_to_vmem [thread:$0]  (!%p4467_p1), %s4412_s4, 16, %s294_s19, [#allocation11]  }
  0x95   : > { %p3137_p9 = pnand %p3135_p7, %p4466_p4 }
  0x97   : > { %p3138_p5 = pneg %p3137_p9 }
  0x99   : > { %p3143_p10 = pnand %p3141_p13, %p3138_p5 }
  0x9b   : > { %3146 = shalt.err (!%p3143_p10)
}
  0x9c   : > { %s3147_s5 = scalar_lea.vmem %s318_s17, 16  ;;  %s3154_s19 = scalar_lea.vmem %s318_s17, 32 }
  0x9d   : > { %p3148_p8 = scmp.ne.s32.totalorder %s318_s17, %s3147_s5  ;;  %p3155_p3 = scmp.lt.s32.totalorder %s318_s17, %s318_s17 }
  0x9e   : > { %p3156_p2 = scmp.lt.s32.totalorder %s3154_s19, %s3147_s5 }
  0x9f   : > { %p3150_p11 = pnand %p3148_p8, %p4466_p4 }
  0xa0   : > { %p3157_p6 = por %p3156_p2, %p3155_p3 }
  0xa1   : > { %p3151_p12 = pneg %p3150_p11 }
  0xa3   : > { %p3158_p0 = pnand %p3157_p6, %p3151_p12 }
  0xa5   : > { %3161 = shalt.err (!%p3158_p0)
}
  0xa6   : > { %2773 = dma.hbm_to_vmem [thread:$0]  (!%p4467_p1), %s4414_s6, 16, %s318_s17, [#allocation14]  }
  0xa7   : > { %s3359_s16 = smov [#allocation16]   ;;  %s3162_s26 = scalar_lea.hbm %s4415_s7, 4096 }
  0xa8   : > { %s330_s30 = sshll.u32 %s3359_s16, 4  ;;  %p3163_p7 = scmp.ne.s32.totalorder %s4415_s7, %s3162_s26  ;;  %s331_s30 = int_to_ptr.vmem [resolvable:$true] %s330_s30 }
  0xa9   : > { %p3169_p5 = scmp.lt.u32.totalorder %s3162_s26, %s4415_s7 }
  0xaa   : > { %p3165_p0 = pnand %p3163_p7, %p4466_p4 }
  0xac   : > { %p3166_p9 = pneg %p3165_p0 }
  0xae   : > { %p3171_p13 = pnand %p3169_p5, %p3166_p9 }
  0xb0   : > { %3174 = shalt.err (!%p3171_p13)
}
  0xb1   : > { %s3175_s17 = scalar_lea.vmem %s331_s30, 4096  ;;  %p3183_p12 = scmp.lt.s32.totalorder %s331_s30, %s331_s30 }
  0xb2   : > { %p3176_p10 = scmp.ne.s32.totalorder %s331_s30, %s3175_s17  ;;  %p3184_p3 = scmp.lt.s32.totalorder %s3175_s17, %s3175_s17 }
  0xb4   : > { %p3178_p8 = pnand %p3176_p10, %p4466_p4  ;;  %p3185_p2 = por %p3184_p3, %p3183_p12 }
  0xb6   : > { %p3179_p11 = pneg %p3178_p8 }
  0xb8   : > { %p3186_p6 = pnand %p3185_p2, %p3179_p11 }
  0xba   : > { %3189 = shalt.err (!%p3186_p6)
}
  0xbb   : > { %2776 = dma.hbm_to_vmem [thread:$0]  (!%p4467_p1), %s4415_s7, 4096, %s331_s30, [#allocation17], %s3355_s25, %s3355_s25, %s3356_s18  }
  0xbc   : > { %s4468_s23 = sshll.u32 %s3344_s9, 10  ;;  %s4469_s24 = sshll.u32 %s3565_s14, 6 }
  0xbd   : > { %s3680_s10 = scalar_lea.hbm %s4408_s0, %s4468_s23  ;;  %s348_s15 = scalar_lea.vmem [#allocation4], %s4469_s24 }
  0xbe   : > { %s357_s26 = sshll.u32 %s348_s15, 4  ;;  %s2389_s3 = sshll.u32 %s3565_s14, 5  ;;  %s3684_s26 = int_to_ptr.vmem [resolvable:$true] %s357_s26 }
  0xbf   : > { %s345_s21 = scalar_lea.sflag [#allocation5], %s3565_s14  ;;  %s3190_s8 = scalar_lea.hbm %s3680_s10, 1024 }
  0xc0   : > { %p3191_p4 = scmp.ne.s32.totalorder %s3680_s10, %s3190_s8  ;;  %p4470_p1 = scmp.ne.s32.totalorder %s4465_s29, 0 }
  0xc1   : > { %s3195_s17 = scalar_lea.hbm %s4408_s0, 2048  ;;  %p3196_p9 = scmp.lt.u32.totalorder %s3680_s10, %s4408_s0 }
  0xc2   : > { %p3193_p7 = pnand %p3191_p4, %p4470_p1  ;;  %p3197_p5 = scmp.lt.u32.totalorder %s3195_s17, %s3190_s8 }
  0xc3   : > { %p3199_p10 = scmp.lt.u32.totalorder %s3190_s8, %s3680_s10 }
  0xc4   : > { %p3194_p0 = pneg %p3193_p7  ;;  %p3198_p13 = por %p3197_p5, %p3196_p9 }
  0xc6   : > { %p3200_p8 = por %p3199_p10, %p3198_p13 }
  0xc8   : > { %p3201_p11 = pnand %p3200_p8, %p3194_p0 }
  0xca   : > { %3204 = shalt.err (!%p3201_p11)
}
  0xcb   : > { %s3205_s23 = scalar_lea.vmem %s3684_s26, 1024  ;;  %s3360_s27 = smov [#allocation4]  }
  0xcc   : > { %p3206_p12 = scmp.ne.s32.totalorder %s3684_s26, %s3205_s23  ;;  %s3210_s16 = sshll.u32 %s3360_s27, 4  ;;  %s3211_s16 = int_to_ptr.vmem [resolvable:$false] %s3210_s16 }
  0xcd   : > { %s3212_s24 = scalar_lea.vmem %s3211_s16, 2048  ;;  %p3213_p6 = scmp.lt.s32.totalorder %s3684_s26, %s3211_s16 }
  0xce   : > { %p3208_p3 = pnand %p3206_p12, %p4470_p1  ;;  %p3214_p4 = scmp.lt.s32.totalorder %s3212_s24, %s3205_s23 }
  0xd0   : > { %p3209_p2 = pneg %p3208_p3  ;;  %p3215_p7 = por %p3214_p4, %p3213_p6 }
  0xd2   : > { %p3216_p9 = pnand %p3215_p7, %p3209_p2 }
  0xd4   : > { %3219 = shalt.err (!%p3216_p9)
}
  0xd5   : > { %p4471_p0 = scmp.ne.s32.totalorder %s4463_s13, 0  ;;  %s2479_s15 = sshll.u32 %s3344_s9, 9 }
  0xd6   : > { %s3718_s5 = scalar_lea.hbm %s4410_s2, %s2479_s15  ;;  %s394_s17 = scalar_lea.vmem [#allocation9], %s2389_s3 }
  0xd7   : > { %2780 = dma.hbm_to_vmem [thread:$0]  (!%p4471_p0), %s3680_s10, 1024, %s3684_s26, %s345_s21, %s3355_s25, %s3355_s25, %s3356_s18  }
  0xd8   : > { %s401_s19 = sshll.u32 %s394_s17, 4  ;;  %s3220_s1 = scalar_lea.hbm %s3718_s5, 512  ;;  %s3722_s19 = int_to_ptr.vmem [resolvable:$true] %s401_s19 }
  0xd9   : > { %p3221_p5 = scmp.ne.s32.totalorder %s3718_s5, %s3220_s1  ;;  %s3225_s10 = scalar_lea.hbm %s4410_s2, 1024 }
  0xda   : > { %p3226_p8 = scmp.lt.u32.totalorder %s3718_s5, %s4410_s2  ;;  %p3227_p11 = scmp.lt.u32.totalorder %s3225_s10, %s3220_s1 }
  0xdb   : > { %p3223_p13 = pnand %p3221_p5, %p4470_p1  ;;  %p3229_p3 = scmp.lt.u32.totalorder %s3220_s1, %s3718_s5 }
  0xdc   : > { %p3228_p12 = por %p3227_p11, %p3226_p8 }
  0xdd   : > { %p3224_p10 = pneg %p3223_p13 }
  0xde   : > { %p3230_p2 = por %p3229_p3, %p3228_p12 }
  0xe0   : > { %p3231_p6 = pnand %p3230_p2, %p3224_p10 }
  0xe2   : > { %3234 = shalt.err (!%p3231_p6)
}
  0xe3   : > { %s3235_s14 = scalar_lea.vmem %s3722_s19, 512  ;;  %s3361_s3 = smov [#allocation9]  }
  0xe4   : > { %p3236_p4 = scmp.ne.s32.totalorder %s3722_s19, %s3235_s14  ;;  %s3240_s23 = sshll.u32 %s3361_s3, 4  ;;  %s3241_s23 = int_to_ptr.vmem [resolvable:$false] %s3240_s23 }
  0xe5   : > { %s3242_s27 = scalar_lea.vmem %s3241_s23, 1024  ;;  %p3243_p5 = scmp.lt.s32.totalorder %s3722_s19, %s3241_s23 }
  0xe6   : > { %p3238_p7 = pnand %p3236_p4, %p4470_p1  ;;  %p3244_p13 = scmp.lt.s32.totalorder %s3242_s27, %s3235_s14 }
  0xe8   : > { %p3239_p9 = pneg %p3238_p7  ;;  %p3245_p8 = por %p3244_p13, %p3243_p5 }
  0xea   : > { %p3246_p11 = pnand %p3245_p8, %p3239_p9 }
  0xec   : > { %3249 = shalt.err (!%p3246_p11)
}
  0xed   : > { %s4472_s16 = smov 4   ;;  %s4473_s24 = smov 64  }
  0xee   : > { %2786 = dma.hbm_to_vmem [thread:$0]  (!%p4471_p0), %s3718_s5, 512, %s3722_s19, %s3585_s20, %s4473_s24, %s4473_s24, %s4472_s16  }
  0xef   : > { %p4474_p1 = scmp.ne.s32.totalorder %s4450_s12, 0 }
  0xf1   : > { %413 = sbr.rel (%p4474_p1) target bundleno = 2849 (0xb21), region = 52 }
  0xf8   : > { %s3752_s29 = sand.u32 1, %s3332_s28   ;;  %p4475_p10 = scmp.ne.s32.totalorder %s4456_s22, 0 }
  0xf9   : > { %s2393_s15 = sshll.u32 %s3752_s29, 6  ;;  %s416_s8 = scalar_lea.sflag [#allocation5], %s3752_s29 }
  0xfa   : > { %s3756_s30 = scalar_lea.vmem [#allocation4], %s2393_s15 }
  0xfb   : > { %3303 = dma.done.wait (%p4475_p10), %s416_s8, 1024  }
  0xfc   : > { %3305 = vsyncadd (%p4475_p10), %s416_s8, 4294966272  ;;  %s424_s13 = sand.u32 1, %s3451_s11   ;;  %s3763_s20 = scalar_lea.vmem [#allocation7], %s2393_s15 }
  0xfd   : > { %s425_s12 = scalar_lea.sflag [#allocation8], %s424_s13 }
  0xfe   : > { %3307 = dma.done.wait (%p4475_p10), %s425_s12, 1536  }
  0xff   : > { %3309 = vsyncadd (%p4475_p10), %s425_s12, 4294965760  ;;  %s2395_s5 = sshll.u32 %s3752_s29, 5  ;;  %p4476_p0 = scmp.eq.s32.totalorder %s3451_s11, 0 }
 0x100   : > { %s3772_s17 = scalar_lea.vmem [#allocation9], %s2395_s5 }
 0x101   : > { %3311 = dma.done.wait (%p4476_p0), [#allocation11], 272   ;;  %p4477_p12 = pmov %p4476_p0 }
 0x102   : > { %p4478_p3 = pmov %p4476_p0 }
 0x103   : > { %3313 = vsyncadd (%p4477_p12), [#allocation11], 4294967024 }
 0x104   : > { %3315 = dma.done.wait (%p4478_p3), [#allocation14], 272   ;;  %p4479_p2 = pmov %p4476_p0 }
 0x105   : > { %p4480_p6 = pmov %p4476_p0 }
 0x106   : > { %3317 = vsyncadd (%p4479_p2), [#allocation14], 4294967024 }
 0x107   : > { %3319 = dma.done.wait (%p4480_p6), [#allocation17], 4096   ;;  %p4481_p4 = pmov %p4476_p0 }
 0x108   : > { %v2872_v0 = vld [vmem:[#allocation10] sm:$0xff]   ;;  %v2873_v1 = vld [vmem:[#allocation10 + $0x8] sm:$0xff]   ;;  %vm540_vm0 = vcmask 261120   ;;  %v507_v5 = vld [vmem:[%s3763_s20 + $0x10] sm:$0xff]  ;;  %vm666_vm1 = vcmask 64512   ;;  %s3362_s11 = smov 96  }
 0x109   : > { %3321 = vsyncadd (%p4481_p4), [#allocation17], 4294963200  ;;  %2565 = vmatprep.subr.bf16.mxu0 %v2872_v0  ;;  %v505_v2 = vld [vmem:[%s3763_s20] sm:$0xff]  ;;  %v506_v3 = vld [vmem:[%s3763_s20 + $0x8] sm:$0xff]  ;;  %vm756_vm2 = vcmask 523264   ;;  %s3363_s22 = smov 120  }
 0x10a   : > { %2566 = vmatpush3.bf16.msra.mxu0 %v2872_v0  ;;  %v513_v4 = vpack.c.bf16 %v506_v3, %v505_v2  ;;  %v508_v6 = vld [vmem:[%s3763_s20 + $0x18] sm:$0xff]  ;;  %v509_v7 = vld [vmem:[%s3763_s20 + $0x20] sm:$0xff]  ;;  %v510_v8 = vld [vmem:[%s3763_s20 + $0x28] sm:$0xff]  ;;  %s3364_s19 = smov 88   ;;  %s3365_s1 = smov 112   ;;  %vm1297_vm3 = vcmask 130112  }
 0x10b   : > { %2567 = vmatprep.subr.bf16.mxu0 %v2873_v1  ;;  %v2874_v9 = vld [vmem:[%s3772_s17] sm:$0xff]   ;;  %v514_v10 = vpack.c.bf16 %v508_v6, %v507_v5  ;;  %v2875_v11 = vld [vmem:[%s3772_s17 + $0x8] sm:$0xff]   ;;  %v515_v12 = vpack.c.bf16 %v510_v8, %v509_v7  ;;  %v511_v15 = vld [vmem:[%s3763_s20 + $0x30] sm:$0xff]  ;;  %s3366_s25 = smov 80   ;;  %s3367_s18 = smov 104   ;;  %vm1653_vm4 = vcmask 195712  }
 0x10c   : > { %2569 = vmatprep.mubr.msk.bf16.mxu0 %vm540_vm0, %v513_v4  ;;  %2717 = vmatprep.subr.msk.bf16.mxu1 %vm666_vm1, %v2874_v9  ;;  %v680_v13 = vsel %vm666_vm1, %v2874_v9, 0  ;;  %v683_v14 = vsel %vm666_vm1, %v2875_v11, 0  ;;  %v512_v16 = vld [vmem:[%s3763_s20 + $0x38] sm:$0xff]  ;;  %v2876_v18 = vld [vmem:[%s3772_s17 + $0x10] sm:$0xff]   ;;  %v638_v52 = vld [vmem:[#allocation16] sm:$0xff]  ;;  %s3368_s10 = smov 72  }
 0x10d   : > { %2578 = vmatpush3.bf16.xpose.msra.mxu1 %v680_v13  ;;  %v516_v17 = vpack.c.bf16 %v512_v16, %v511_v15  ;;  %v686_v19 = vsel %vm666_vm1, %v2876_v18, 0  ;;  %v2877_v20 = vld [vmem:[%s3772_s17 + $0x18] sm:$0xff]   ;;  %841 = vrot.lane.b32.xlu0 %v2874_v9, %s3362_s11  ;;  %v2402_v23 = vld [vmem:[#allocation12] ss:$0 sm:$0xff]  ;;  %v642_v3 = vld [vmem:[#allocation16 + $0x20] sm:$0xff]  ;;  %s3369_s26 = smov 8  }
 0x10e   : > { %2568 = vmatpush3.bf16.msra.mxu0 %v2873_v1  ;;  %2718 = vmatprep.subr.msk.bf16.mxu1 %vm666_vm1, %v2875_v11  ;;  %v689_v21 = vsel %vm666_vm1, %v2877_v20, 0  ;;  %v640_v51 = vld [vmem:[#allocation16 + $0x10] sm:$0xff]  ;;  %v641_v54 = vld [vmem:[#allocation16 + $0x18] sm:$0xff]  ;;  %v639_v57 = vld [vmem:[#allocation16 + $0x8] sm:$0xff]  ;;  %s3370_s21 = smov 16   ;;  %s3371_s14 = smov 24  }
 0x10f   : > { %843 = vrot.lane.b32.xlu1 %v2875_v11, %s3362_s11  ;;  %v644_v1 = vld [vmem:[#allocation16 + $0x30] sm:$0xff]  ;;  %v645_v11 = vld [vmem:[#allocation16 + $0x38] sm:$0xff]  ;;  %v3847_v16 = vld [vmem:[%s3772_s17 + $0x8] sm:$0xff]   ;;  %vm2009_vm5 = vcmask 261312   ;;  %vm2166_vm6 = vcmask 257024   ;;  %s4330_s3 = scalar_lea.vmem [#allocation18], %s2395_s5 }
 0x110   : > { %s4492_s23 = sld [smem:[#allocation27_spill]]  ;;  %s2191_s16 = sshll.u32 %s4330_s3, 4  ;;  %s4353_s16 = int_to_ptr.vmem [resolvable:$true] %s2191_s16 }
 0x111   : > { %2570 = vmatmul.mubr.msk.bf16.vlgmr.msra.gmra.mrb[0].mxu0 %vm540_vm0, %v514_v10  ;;  %s4493_s24 = sld [smem:[#allocation30_spill]]  ;;  %s4494_s13 = sld [smem:[#allocation41_spill]] }
 0x112   : > { %2573 = vmatprep.mubr.msk.bf16.mxu0 %vm540_vm0, %v515_v12  ;;  %s3250_s20 = scalar_lea.vmem %s4353_s16, 512  ;;  %s3372_s5 = smov [#allocation18]  }
 0x113   : > { %845 = vrot.lane.b32.xlu1 %v2876_v18, %s3362_s11  ;;  %p3251_p7 = scmp.ne.s32.totalorder %s4353_s16, %s3250_s20 }
 0x115   : > { %2580 = vmatpush3.bf16.xpose.msra.mxu1 %v683_v14 }
 0x116   : > { %2719 = vmatprep.subr.msk.bf16.mxu1 %vm666_vm1, %v2876_v18  ;;  %v3855_v18 = vld [vmem:[%s3772_s17] sm:$0xff]   ;;  %s2488_s27 = sshll.u32 %s4492_s23, 9 }
 0x117   : > { %847 = vrot.lane.b32.xlu1 %v2877_v20, %s3362_s11  ;;  %s4351_s12 = scalar_lea.hbm %s4494_s13, %s2488_s27  ;;  %p4495_p9 = scmp.ne.s32.totalorder %s4493_s24, 0 }
 0x119   : > { %2574 = vmatmul.mubr.msk.bf16.gmra.mrb[4].mxu0 %vm540_vm0, %v516_v17  ;;  %v3851_v17 = vld [vmem:[%s3772_s17 + $0x10] sm:$0xff]   ;;  %p3252_p5 = pnand %p3251_p7, %p4495_p9 }
 0x11b   : > { %p3253_p13 = pneg %p3252_p5 }
 0x11d   : > { %2582 = vmatpush3.bf16.xpose.msra.mxu1 %v686_v19  ;;  %v643_v19 = vld [vmem:[#allocation16 + $0x28] sm:$0xff] }
 0x11e   : > { %2720 = vmatprep.subr.msk.bf16.mxu1 %vm666_vm1, %v2877_v20 }
 0x125   : > { %2584 = vmatpush3.bf16.xpose.msra.mxu1 %v689_v21 }
 0x17f   : > { %v842_v47 = vpop.permute.xlu0 %841 }
 0x180   : > { %2593 = vmatprep.subr.bf16.mxu0 %v842_v47 }
 0x181   : > { %v844_v48 = vpop.permute.xlu1 %843  ;;  %2594 = vmatpush3.bf16.msra.mxu0 %v842_v47 }
 0x182   : > { %2595 = vmatprep.subr.bf16.mxu0 %v844_v48 }
 0x185   : > { %v846_v49 = vpop.permute.xlu1 %845  ;;  %2596 = vmatpush3.bf16.msra.mxu0 %v844_v48 }
 0x186   : > { %2597 = vmatprep.subr.bf16.mxu0 %v846_v49 }
 0x189   : > { %v848_v50 = vpop.permute.xlu1 %847  ;;  %2598 = vmatpush3.bf16.msra.mxu0 %v846_v49 }
 0x18a   : > { %2599 = vmatprep.subr.bf16.mxu0 %v848_v50 }
 0x18d   : > { %2600 = vmatpush3.bf16.msra.mxu0 %v848_v50 }
 0x1e4   : > { %v2571_v22 = vpop.f32.mrb[0].mxu0 }
 0x1e5   : > { %v587_v24 = vpop.f32.mrb[1].mxu0  ;;  %v596_v26 = vadd.f32 %v2571_v22, %v2402_v23  ;;  %v3862_v22 = vld [vmem:[%s3772_s17 + $0x18] sm:$0xff]  }
 0x1e6   : > { %v2572_v25 = vpop.f32.mrb[2].mxu0  ;;  %v588_v29 = vadd.f32 %v2402_v23, %v587_v24 }
 0x1e7   : > { %v599_v27 = vadd.f32 %v2572_v25, %v2402_v23  ;;  %v590_v28 = vpop.f32.mrb[3].mxu0 }
 0x1e8   : > { %v591_v30 = vadd.f32 %v2402_v23, %v590_v28 }
 0x1e9   : > { %v619_v31 = vpack.c.bf16 %v599_v27, %v596_v26 }
 0x1ea   : > { %v618_v32 = vpack.c.bf16 %v591_v30, %v588_v29 }
 0x1eb   : > { %623 = vst.msk [vmem:[#allocation2 + $0x8] sm:$0xff] %vm540_vm0, %v619_v31 }
 0x1ec   : > { %622 = vst.msk [vmem:[#allocation2] sm:$0xff] %vm540_vm0, %v618_v32  ;;  %v2575_v33 = vpop.f32.mrb[4].mxu0 }
 0x1ed   : > { %v612_v34 = vadd.f32 %v2575_v33, %v2402_v23  ;;  %v603_v35 = vpop.f32.mrb[5].mxu0 }
 0x1ee   : > { %v604_v36 = vadd.f32 %v2402_v23, %v603_v35  ;;  %v2576_v37 = vpop.f32.mrb[6].mxu0 }
 0x1ef   : > { %v615_v38 = vadd.f32 %v2576_v37, %v2402_v23  ;;  %v606_v39 = vpop.f32.mrb[7].mxu0 }
 0x1f0   : > { %v607_v40 = vadd.f32 %v2402_v23, %v606_v39 }
 0x1f1   : > { %v621_v41 = vpack.c.bf16 %v615_v38, %v612_v34 }
 0x1f2   : > { %v620_v42 = vpack.c.bf16 %v607_v40, %v604_v36  ;;  %v3818_v44 = vld [vmem:[#allocation2 + $0x8] sm:$0xff] }
 0x1f3   : > { %625 = vst.msk [vmem:[#allocation2 + $0x18] sm:$0xff] %vm540_vm0, %v621_v41  ;;  %v3813_v43 = vld [vmem:[#allocation2] sm:$0xff] }
 0x1f4   : > { %624 = vst.msk [vmem:[#allocation2 + $0x10] sm:$0xff] %vm540_vm0, %v620_v42  ;;  %2585 = vmatprep.mubr.msk.bf16.mxu1 %vm666_vm1, %v3813_v43 }
 0x1f5   : > { %2586 = vmatmul.mubr.msk.bf16.vlgmr.msra.gmra.mrb[0].mxu1 %vm666_vm1, %v3818_v44 }
 0x1fa   : > { %v3822_v45 = vld [vmem:[#allocation2 + $0x18] sm:$0xff] }
 0x1fb   : > { %v3824_v46 = vld [vmem:[#allocation2 + $0x10] sm:$0xff] }
 0x1fc   : > { %2589 = vmatprep.mubr.msk.bf16.mxu1 %vm666_vm1, %v3824_v46 }
 0x1fd   : > { %2590 = vmatmul.mubr.msk.bf16.gmra.mrb[4].mxu1 %vm666_vm1, %v3822_v45 }
 0x2c8   : > { %v2587_v53 = vpop.f32.mrb[0].mxu1 }
 0x2c9   : > { %v734_v55 = vadd.f32 %v2587_v53, %v640_v51  ;;  %v725_v56 = vpop.f32.mrb[1].mxu1 }
 0x2ca   : > { %v726_v58 = vadd.f32 %v725_v56, %v638_v52  ;;  %v2588_v59 = vpop.f32.mrb[2].mxu1 }
 0x2cb   : > { %v737_v60 = vadd.f32 %v2588_v59, %v641_v54  ;;  %v728_v61 = vpop.f32.mrb[3].mxu1  ;;  %v763_v62 = vsel %vm756_vm2, %v734_v55, -inf }
 0x2cc   : > { %v729_v63 = vadd.f32 %v728_v61, %v639_v57  ;;  %764 = vmax.xlane.f32.xlu1 %v763_v62  ;;  %v757_v0 = vsel %vm756_vm2, %v726_v58, -inf }
 0x2cd   : > { %758 = vmax.xlane.f32.xlu0 %v757_v0  ;;  %v766_v2 = vsel %vm756_vm2, %v737_v60, -inf }
 0x2ce   : > { %v760_v5 = vsel %vm756_vm2, %v729_v63, -inf }
 0x2d0   : > { %767 = vmax.xlane.f32.xlu1 %v766_v2  ;;  %v2591_v4 = vpop.f32.mrb[4].mxu1 }
 0x2d1   : > { %v3834_v6 = vadd.f32 %v2591_v4, %v644_v1  ;;  %761 = vmax.xlane.f32.xlu0 %v760_v5  ;;  %v741_v7 = vpop.f32.mrb[5].mxu1 }
 0x2d2   : > { %v3836_v8 = vadd.f32 %v741_v7, %v642_v3  ;;  %v2592_v9 = vpop.f32.mrb[6].mxu1 }
 0x2d3   : > { %v775_v10 = vsel %vm756_vm2, %v3834_v6, -inf  ;;  %v744_v12 = vpop.f32.mrb[7].mxu1  ;;  %v3840_v13 = vadd.f32 %v2592_v9, %v645_v11 }
 0x2d4   : > { %v769_v14 = vsel %vm756_vm2, %v3836_v8, -inf  ;;  %v745_v20 = vadd.f32 %v744_v12, %v643_v19 }
 0x2d5   : > { %776 = vmax.xlane.f32.xlu0 %v775_v10  ;;  %v778_v15 = vsel %vm756_vm2, %v3840_v13, -inf }
 0x2d6   : > { %v772_v21 = vsel %vm756_vm2, %v745_v20, -inf }
 0x2d9   : > { %770 = vmax.xlane.f32.xlu0 %v769_v14 }
 0x2dd   : > { %779 = vmax.xlane.f32.xlu0 %v778_v15 }
 0x2e1   : > { %1001 = vrot.lane.b32.xlu1 %v3847_v16, %s3363_s22 }
 0x2e5   : > { %1003 = vrot.lane.b32.xlu1 %v3851_v17, %s3363_s22 }
 0x2f3   : > { %999 = vrot.lane.b32.xlu0 %v3855_v18, %s3363_s22 }
 0x2f7   : > { %971 = vrot.lane.b32.xlu0 %v3813_v43, %s3363_s22 }
 0x2fb   : > { %975 = vrot.lane.b32.xlu0 %v3824_v46, %s3363_s22 }
 0x2ff   : > { %1180 = vrot.lane.b32.xlu0 %v3855_v18, %s3364_s19 }
 0x309   : > { %773 = vmax.xlane.f32.xlu1 %v772_v21 }
 0x31a   : > { %1005 = vrot.lane.b32.xlu1 %v3862_v22, %s3363_s22 }
 0x31e   : > { %973 = vrot.lane.b32.xlu1 %v3818_v44, %s3363_s22 }
 0x322   : > { %977 = vrot.lane.b32.xlu1 %v3822_v45, %s3363_s22 }
 0x326   : > { %1182 = vrot.lane.b32.xlu1 %v3847_v16, %s3364_s19 }
 0x32a   : > { %1184 = vrot.lane.b32.xlu1 %v3851_v17, %s3364_s19 }
 0x32e   : > { %1186 = vrot.lane.b32.xlu1 %v3862_v22, %s3364_s19 }
 0x359   : > { %v765_v23 = vpop.xlane.xlu1 %764 }
 0x35a   : > { %v759_v24 = vpop.xlane.xlu0 %758  ;;  %v783_v26 = vsub.f32 %v734_v55, %v765_v23  ;;  %v961_v23 = vld [vmem:[#allocation16 + $0x50] sm:$0xff] }
 0x35b   : > { %v781_v25 = vsub.f32 %v726_v58, %v759_v24 }
 0x35c   : > { %v793_v32 = vmul.f32 1.442695, %v783_v26 }
 0x35d   : > { %v789_v27 = vmul.f32 1.442695, %v781_v25  ;;  %v768_v28 = vpop.xlane.xlu1 %767  ;;  %v959_v25 = vld [vmem:[#allocation16 + $0x40] sm:$0xff] }
 0x35e   : > { %v784_v29 = vsub.f32 %v737_v60, %v768_v28  ;;  %v762_v30 = vpop.xlane.xlu0 %761  ;;  %v960_v28 = vld [vmem:[#allocation16 + $0x48] sm:$0xff] }
 0x35f   : > { %v782_v31 = vsub.f32 %v729_v63, %v762_v30  ;;  %2892 = vpow2.f32 %v789_v27 }
 0x360   : > { %v795_v33 = vmul.f32 1.442695, %v784_v29 }
 0x361   : > { %v791_v34 = vmul.f32 1.442695, %v782_v31  ;;  %v1002_v50 = vpop.permute.xlu1 %1001 }
 0x362   : > { %2894 = vpow2.f32 %v795_v33  ;;  %v777_v35 = vpop.xlane.xlu0 %776  ;;  %v1023_v51 = vsel %vm666_vm1, %v1002_v50, 0  ;;  %v962_v33 = vld [vmem:[#allocation16 + $0x58] sm:$0xff] }
 0x363   : > { %2896 = vpow2.f32 %v791_v34  ;;  %v787_v56 = vsub.f32 %v3834_v6, %v777_v35 }
 0x364   : > { %2898 = vpow2.f32 %v793_v32 }
 0x365   : > { %v1004_v52 = vpop.permute.xlu1 %1003  ;;  %v801_v61 = vmul.f32 1.442695, %v787_v56  ;;  %v966_v56 = vld [vmem:[#allocation16 + $0x78] sm:$0xff] }
 0x366   : > { %v771_v36 = vpop.xlane.xlu0 %770  ;;  %v1026_v53 = vsel %vm666_vm1, %v1004_v52, 0 }
 0x367   : > { %v785_v54 = vsub.f32 %v3836_v8, %v771_v36 }
 0x369   : > { %v3867_v38 = vpop.eup %2892  ;;  %v797_v57 = vmul.f32 1.442695, %v785_v54 }
 0x36a   : > { %v780_v37 = vpop.xlane.xlu0 %779 }
 0x36b   : > { %v788_v55 = vsub.f32 %v3840_v13, %v780_v37  ;;  %2900 = vpow2.f32 %v797_v57 }
 0x36c   : > { %v3869_v39 = vpop.eup %2894 }
 0x36d   : > { %v3871_v40 = vpop.eup %2896  ;;  %v803_v58 = vmul.f32 1.442695, %v788_v55 }
 0x36e   : > { %v3873_v41 = vpop.eup %2898  ;;  %v1000_v42 = vpop.permute.xlu0 %999  ;;  %v837_v47 = vpack.c.bf16 %v3871_v40, %v3867_v38 }
 0x36f   : > { %v838_v48 = vpack.c.bf16 %v3869_v39, %v3873_v41  ;;  %2721 = vmatprep.subr.msk.bf16.mxu0 %vm666_vm1, %v1000_v42  ;;  %v1020_v49 = vsel %vm666_vm1, %v1000_v42, 0  ;;  %2902 = vpow2.f32 %v803_v58  ;;  %v965_v42 = vld [vmem:[#allocation16 + $0x70] sm:$0xff] }
 0x370   : > { %2601 = vmatprep.mubr.msk.bf16.mxu0 %vm756_vm2, %v837_v47 }
 0x371   : > { %2602 = vmatmul.mubr.msk.bf16.vlgmr.msra.gmra.mrb[8].mxu0 %vm756_vm2, %v838_v48 }
 0x372   : > { %2610 = vmatpush3.bf16.xpose.msra.mxu0 %v1020_v49  ;;  %v972_v7 = vpop.permute.xlu0 %971 }
 0x373   : > { %2722 = vmatprep.subr.msk.bf16.mxu0 %vm666_vm1, %v1002_v50 }
 0x375   : > { %v3892_v1 = vpop.eup %2900 }
 0x376   : > { %v976_v9 = vpop.permute.xlu0 %975 }
 0x379   : > { %v3894_v2 = vpop.eup %2902 }
 0x37a   : > { %2612 = vmatpush3.bf16.xpose.msra.mxu0 %v1023_v51  ;;  %v1181_v12 = vpop.permute.xlu0 %1180 }
 0x37b   : > { %2723 = vmatprep.subr.msk.bf16.mxu0 %vm666_vm1, %v1004_v52  ;;  %2625 = vmatprep.subr.bf16.mxu1 %v1181_v12 }
 0x37c   : > { %2626 = vmatpush3.bf16.msra.mxu1 %v1181_v12 }
 0x382   : > { %2614 = vmatpush3.bf16.xpose.msra.mxu0 %v1026_v53  ;;  %v963_v53 = vld [vmem:[#allocation16 + $0x60] sm:$0xff] }
 0x396   : > { %v774_v59 = vpop.xlane.xlu1 %773 }
 0x397   : > { %v786_v60 = vsub.f32 %v745_v20, %v774_v59  ;;  %v3945_v59 = vld [vmem:[%s3772_s17 + $0x8] sm:$0xff]  }
 0x399   : > { %v799_v62 = vmul.f32 1.442695, %v786_v60 }
 0x39a   : > { %v1006_v63 = vpop.permute.xlu1 %1005 }
 0x39b   : > { %2904 = vpow2.f32 %v799_v62  ;;  %2724 = vmatprep.subr.msk.bf16.mxu0 %vm666_vm1, %v1006_v63  ;;  %v1029_v0 = vsel %vm666_vm1, %v1006_v63, 0  ;;  %v3955_v62 = vld [vmem:[%s3772_s17] sm:$0xff]   ;;  %v964_v63 = vld [vmem:[#allocation16 + $0x68] sm:$0xff] }
 0x39c   : > { %2906 = vpow2.f32 %v801_v61  ;;  %2616 = vmatpush3.bf16.xpose.msra.mxu0 %v1029_v0  ;;  %v3951_v61 = vld [vmem:[%s3772_s17 + $0x10] sm:$0xff]  }
 0x39e   : > { %v974_v8 = vpop.permute.xlu1 %973 }
 0x3a2   : > { %v978_v10 = vpop.permute.xlu1 %977 }
 0x3a5   : > { %v3896_v3 = vpop.eup %2904 }
 0x3a6   : > { %v3898_v4 = vpop.eup %2906  ;;  %v839_v5 = vpack.c.bf16 %v3896_v3, %v3892_v1  ;;  %v1183_v14 = vpop.permute.xlu1 %1182 }
 0x3a7   : > { %v840_v6 = vpack.c.bf16 %v3894_v2, %v3898_v4  ;;  %2627 = vmatprep.subr.bf16.mxu1 %v1183_v14 }
 0x3a8   : > { %2605 = vmatprep.mubr.msk.bf16.mxu0 %vm756_vm2, %v839_v5  ;;  %2628 = vmatpush3.bf16.msra.mxu1 %v1183_v14 }
 0x3a9   : > { %2606 = vmatmul.mubr.msk.bf16.gmra.mrb[12].mxu0 %vm756_vm2, %v840_v6  ;;  %v3962_v6 = vld [vmem:[%s3772_s17 + $0x18] sm:$0xff]  }
 0x3aa   : > { %2617 = vmatprep.mubr.msk.bf16.mxu0 %vm666_vm1, %v972_v7  ;;  %v1185_v18 = vpop.permute.xlu1 %1184 }
 0x3ab   : > { %2629 = vmatprep.subr.bf16.mxu1 %v1185_v18 }
 0x3ac   : > { %2630 = vmatpush3.bf16.msra.mxu1 %v1185_v18 }
 0x3ae   : > { %v1187_v16 = vpop.permute.xlu1 %1186 }
 0x3af   : > { %2631 = vmatprep.subr.bf16.mxu1 %v1187_v16 }
 0x3b0   : > { %2632 = vmatpush3.bf16.msra.mxu1 %v1187_v16 }
 0x3b1   : > { %2618 = vmatmul.mubr.msk.bf16.vlgmr.msra.gmra.mrb[16].mxu0 %vm666_vm1, %v974_v8 }
 0x3b2   : > { %2621 = vmatprep.mubr.msk.bf16.mxu0 %vm666_vm1, %v976_v9 }
 0x3b9   : > { %2622 = vmatmul.mubr.msk.bf16.gmra.mrb[20].mxu0 %vm666_vm1, %v978_v10 }
 0x444   : > { %v3914_v11 = vpop.f32.mrb[8].mxu0 }
 0x445   : > { %v3916_v13 = vpop.f32.mrb[9].mxu0 }
 0x446   : > { %v3918_v15 = vpop.f32.mrb[10].mxu0 }
 0x447   : > { %4482 = vst [vmem:[#allocation33_spill] sm:$0xff] %v3918_v15  ;;  %v3920_v19 = vpop.f32.mrb[11].mxu0 }
 0x47c   : > { %v3922_v17 = vpop.f32.mrb[12].mxu0 }
 0x47d   : > { %4483 = vst [vmem:[#allocation34_spill] sm:$0xff] %v3922_v17  ;;  %v3924_v20 = vpop.f32.mrb[13].mxu0 }
 0x47e   : > { %4484 = vst [vmem:[#allocation35_spill] sm:$0xff] %v3924_v20  ;;  %v3926_v21 = vpop.f32.mrb[14].mxu0 }
 0x47f   : > { %4485 = vst [vmem:[#allocation36_spill] sm:$0xff] %v3926_v21  ;;  %v3928_v22 = vpop.f32.mrb[15].mxu0 }
 0x480   : > { %4486 = vst [vmem:[#allocation37_spill] sm:$0xff] %v3928_v22 }
 0x484   : > { %v2619_v24 = vpop.f32.mrb[16].mxu0 }
 0x485   : > { %v1074_v26 = vadd.f32 %v2619_v24, %v961_v23  ;;  %v1065_v27 = vpop.f32.mrb[17].mxu0 }
 0x486   : > { %v2620_v29 = vpop.f32.mrb[18].mxu0  ;;  %v1066_v30 = vadd.f32 %v1065_v27, %v959_v25 }
 0x487   : > { %v1068_v31 = vpop.f32.mrb[19].mxu0  ;;  %v1102_v32 = vsel %vm756_vm2, %v1074_v26, -inf  ;;  %v1077_v36 = vadd.f32 %v2620_v29, %v962_v33 }
 0x488   : > { %v1069_v34 = vadd.f32 %v1068_v31, %v960_v28  ;;  %1103 = vmax.xlane.f32.xlu0 %v1102_v32  ;;  %v1096_v37 = vsel %vm756_vm2, %v1066_v30, -inf }
 0x489   : > { %v1105_v52 = vsel %vm756_vm2, %v1077_v36, -inf }
 0x48a   : > { %v1099_v35 = vsel %vm756_vm2, %v1069_v34, -inf }
 0x48b   : > { %1100 = vmax.xlane.f32.xlu1 %v1099_v35 }
 0x48c   : > { %1097 = vmax.xlane.f32.xlu0 %v1096_v37  ;;  %v2623_v47 = vpop.f32.mrb[20].mxu0 }
 0x48d   : > { %v1081_v48 = vpop.f32.mrb[21].mxu0  ;;  %v3933_v50 = vadd.f32 %v2623_v47, %v965_v42 }
 0x48e   : > { %v2624_v49 = vpop.f32.mrb[22].mxu0  ;;  %v3936_v54 = vadd.f32 %v1081_v48, %v963_v53 }
 0x48f   : > { %v1084_v51 = vpop.f32.mrb[23].mxu0  ;;  %v1114_v55 = vsel %vm756_vm2, %v3933_v50, -inf  ;;  %v3940_v57 = vadd.f32 %v2624_v49, %v966_v56 }
 0x490   : > { %1106 = vmax.xlane.f32.xlu0 %v1105_v52  ;;  %v1108_v58 = vsel %vm756_vm2, %v3936_v54, -inf  ;;  %v1085_v0 = vadd.f32 %v1084_v51, %v964_v63 }
 0x491   : > { %v1117_v60 = vsel %vm756_vm2, %v3940_v57, -inf }
 0x492   : > { %v1111_v5 = vsel %vm756_vm2, %v1085_v0, -inf }
 0x494   : > { %1115 = vmax.xlane.f32.xlu0 %v1114_v55 }
 0x498   : > { %1109 = vmax.xlane.f32.xlu0 %v1108_v58 }
 0x49c   : > { %1357 = vrot.lane.b32.xlu1 %v3945_v59, %s3365_s1  ;;  %1118 = vmax.xlane.f32.xlu0 %v1117_v60 }
 0x4a0   : > { %1359 = vrot.lane.b32.xlu1 %v3951_v61, %s3365_s1 }
 0x4b2   : > { %1355 = vrot.lane.b32.xlu0 %v3955_v62, %s3365_s1 }
 0x4b6   : > { %1327 = vrot.lane.b32.xlu0 %v3813_v43, %s3365_s1 }
 0x4ba   : > { %1331 = vrot.lane.b32.xlu0 %v3824_v46, %s3365_s1 }
 0x4be   : > { %1536 = vrot.lane.b32.xlu0 %v3955_v62, %s3366_s25 }
 0x4c4   : > { %1112 = vmax.xlane.f32.xlu1 %v1111_v5 }
 0x4d5   : > { %1361 = vrot.lane.b32.xlu1 %v3962_v6, %s3365_s1 }
 0x4d9   : > { %1329 = vrot.lane.b32.xlu1 %v3818_v44, %s3365_s1 }
 0x4dd   : > { %1333 = vrot.lane.b32.xlu1 %v3822_v45, %s3365_s1 }
 0x4e1   : > { %1538 = vrot.lane.b32.xlu1 %v3945_v59, %s3366_s25 }
 0x4e5   : > { %1540 = vrot.lane.b32.xlu1 %v3951_v61, %s3366_s25 }
 0x4e9   : > { %1542 = vrot.lane.b32.xlu1 %v3962_v6, %s3366_s25 }
 0x515   : > { %v1104_v7 = vpop.xlane.xlu0 %1103 }
 0x516   : > { %v1122_v9 = vsub.f32 %v1074_v26, %v1104_v7 }
 0x518   : > { %v1101_v8 = vpop.xlane.xlu1 %1100  ;;  %v1132_v23 = vmul.f32 1.442695, %v1122_v9 }
 0x519   : > { %v1121_v10 = vsub.f32 %v1069_v34, %v1101_v8  ;;  %v1098_v12 = vpop.xlane.xlu0 %1097 }
 0x51a   : > { %v1120_v14 = vsub.f32 %v1066_v30, %v1098_v12 }
 0x51b   : > { %v1130_v18 = vmul.f32 1.442695, %v1121_v10 }
 0x51c   : > { %v1128_v16 = vmul.f32 1.442695, %v1120_v14  ;;  %v1358_v42 = vpop.permute.xlu1 %1357 }
 0x51d   : > { %2908 = vpow2.f32 %v1130_v18  ;;  %v1107_v24 = vpop.xlane.xlu0 %1106  ;;  %v1379_v47 = vsel %vm666_vm1, %v1358_v42, 0 }
 0x51e   : > { %2910 = vpow2.f32 %v1128_v16  ;;  %v1123_v25 = vsub.f32 %v1077_v36, %v1107_v24 }
 0x51f   : > { %2912 = vpow2.f32 %v1132_v23 }
 0x520   : > { %v1134_v27 = vmul.f32 1.442695, %v1123_v25  ;;  %v1360_v48 = vpop.permute.xlu1 %1359 }
 0x521   : > { %v1116_v28 = vpop.xlane.xlu0 %1115  ;;  %v1382_v49 = vsel %vm666_vm1, %v1360_v48, 0 }
 0x522   : > { %2914 = vpow2.f32 %v1134_v27  ;;  %v1126_v53 = vsub.f32 %v3933_v50, %v1116_v28 }
 0x524   : > { %v1140_v63 = vmul.f32 1.442695, %v1126_v53 }
 0x525   : > { %v1110_v29 = vpop.xlane.xlu0 %1109 }
 0x526   : > { %v1124_v51 = vsub.f32 %v3936_v54, %v1110_v29 }
 0x527   : > { %v3967_v31 = vpop.eup %2908 }
 0x528   : > { %v3969_v32 = vpop.eup %2910  ;;  %v1136_v55 = vmul.f32 1.442695, %v1124_v51 }
 0x529   : > { %v1119_v26 = vpop.xlane.xlu0 %1118  ;;  %v1176_v30 = vpack.c.bf16 %v3967_v31, %v3969_v32  ;;  %v3973_v33 = vpop.eup %2912 }
 0x52a   : > { %v1127_v52 = vsub.f32 %v3940_v57, %v1119_v26  ;;  %2916 = vpow2.f32 %v1136_v55  ;;  %v1318_v55 = vld [vmem:[#allocation16 + $0x98] sm:$0xff] }
 0x52b   : > { %2633 = vmatprep.mubr.msk.bf16.mxu1 %vm756_vm2, %v1176_v30 }
 0x52c   : > { %v3976_v34 = vpop.eup %2914  ;;  %v1142_v56 = vmul.f32 1.442695, %v1127_v52 }
 0x52d   : > { %v1177_v35 = vpack.c.bf16 %v3976_v34, %v3973_v33  ;;  %v1356_v36 = vpop.permute.xlu0 %1355 }
 0x52e   : > { %v1376_v37 = vsel %vm666_vm1, %v1356_v36, 0  ;;  %2725 = vmatprep.subr.msk.bf16.mxu1 %vm666_vm1, %v1356_v36  ;;  %2918 = vpow2.f32 %v1142_v56 }
 0x52f   : > { %2634 = vmatmul.mubr.msk.bf16.vlgmr.msra.gmra.mrb[8].mxu1 %vm756_vm2, %v1177_v35  ;;  %v1317_v35 = vld [vmem:[#allocation16 + $0x90] sm:$0xff] }
 0x530   : > { %2642 = vmatpush3.bf16.xpose.msra.mxu1 %v1376_v37  ;;  %v1315_v37 = vld [vmem:[#allocation16 + $0x80] sm:$0xff] }
 0x531   : > { %2726 = vmatprep.subr.msk.bf16.mxu1 %vm666_vm1, %v1358_v42  ;;  %v1328_v12 = vpop.permute.xlu0 %1327 }
 0x534   : > { %v3992_v54 = vpop.eup %2916 }
 0x535   : > { %v1332_v18 = vpop.permute.xlu0 %1331 }
 0x538   : > { %2644 = vmatpush3.bf16.xpose.msra.mxu1 %v1379_v47  ;;  %v3994_v57 = vpop.eup %2918 }
 0x539   : > { %2727 = vmatprep.subr.msk.bf16.mxu1 %vm666_vm1, %v1360_v48  ;;  %v1537_v23 = vpop.permute.xlu0 %1536  ;;  %v1316_v48 = vld [vmem:[#allocation16 + $0x88] sm:$0xff] }
 0x53a   : > { %2657 = vmatprep.subr.bf16.mxu0 %v1537_v23 }
 0x53b   : > { %2658 = vmatpush3.bf16.msra.mxu0 %v1537_v23 }
 0x540   : > { %2646 = vmatpush3.bf16.xpose.msra.mxu1 %v1382_v49 }
 0x551   : > { %v1113_v58 = vpop.xlane.xlu1 %1112 }
 0x552   : > { %v1125_v60 = vsub.f32 %v1085_v0, %v1113_v58 }
 0x554   : > { %v1138_v5 = vmul.f32 1.442695, %v1125_v60 }
 0x555   : > { %v1362_v7 = vpop.permute.xlu1 %1361 }
 0x556   : > { %2920 = vpow2.f32 %v1138_v5  ;;  %v1385_v8 = vsel %vm666_vm1, %v1362_v7, 0  ;;  %2728 = vmatprep.subr.msk.bf16.mxu1 %vm666_vm1, %v1362_v7  ;;  %v1321_v5 = vld [vmem:[#allocation16 + $0xb0] sm:$0xff] }
 0x557   : > { %2922 = vpow2.f32 %v1140_v63  ;;  %2648 = vmatpush3.bf16.xpose.msra.mxu1 %v1385_v8 }
 0x559   : > { %v1330_v14 = vpop.permute.xlu1 %1329 }
 0x55d   : > { %v1334_v16 = vpop.permute.xlu1 %1333 }
 0x560   : > { %v3996_v50 = vpop.eup %2920 }
 0x561   : > { %v3998_v9 = vpop.eup %2922  ;;  %v1178_v0 = vpack.c.bf16 %v3996_v50, %v3992_v54  ;;  %v1539_v24 = vpop.permute.xlu1 %1538 }
 0x562   : > { %v1179_v10 = vpack.c.bf16 %v3994_v57, %v3998_v9  ;;  %2659 = vmatprep.subr.bf16.mxu0 %v1539_v24 }
 0x563   : > { %2637 = vmatprep.mubr.msk.bf16.mxu1 %vm756_vm2, %v1178_v0  ;;  %2660 = vmatpush3.bf16.msra.mxu0 %v1539_v24  ;;  %v1322_v24 = vld [vmem:[#allocation16 + $0xb8] sm:$0xff] }
 0x564   : > { %2638 = vmatmul.mubr.msk.bf16.gmra.mrb[12].mxu1 %vm756_vm2, %v1179_v10 }
 0x565   : > { %2649 = vmatprep.mubr.msk.bf16.mxu1 %vm666_vm1, %v1328_v12  ;;  %v1541_v28 = vpop.permute.xlu1 %1540 }
 0x566   : > { %2661 = vmatprep.subr.bf16.mxu0 %v1541_v28 }
 0x567   : > { %2662 = vmatpush3.bf16.msra.mxu0 %v1541_v28 }
 0x569   : > { %v1543_v59 = vpop.permute.xlu1 %1542 }
 0x56a   : > { %2663 = vmatprep.subr.bf16.mxu0 %v1543_v59 }
 0x56b   : > { %2664 = vmatpush3.bf16.msra.mxu0 %v1543_v59 }
 0x56c   : > { %2650 = vmatmul.mubr.msk.bf16.vlgmr.msra.gmra.mrb[16].mxu1 %vm666_vm1, %v1330_v14 }
 0x56d   : > { %2653 = vmatprep.mubr.msk.bf16.mxu1 %vm666_vm1, %v1332_v18  ;;  %v1319_v18 = vld [vmem:[#allocation16 + $0xa0] sm:$0xff] }
 0x574   : > { %2654 = vmatmul.mubr.msk.bf16.gmra.mrb[20].mxu1 %vm666_vm1, %v1334_v16 }
 0x602   : > { %v4014_v25 = vpop.f32.mrb[8].mxu1 }
 0x603   : > { %v4016_v27 = vpop.f32.mrb[9].mxu1 }
 0x604   : > { %v4018_v29 = vpop.f32.mrb[10].mxu1 }
 0x605   : > { %v4020_v26 = vpop.f32.mrb[11].mxu1 }
 0x637   : > { %v4022_v61 = vpop.f32.mrb[12].mxu1 }
 0x638   : > { %v4024_v62 = vpop.f32.mrb[13].mxu1 }
 0x639   : > { %v4026_v6 = vpop.f32.mrb[14].mxu1 }
 0x63a   : > { %v4028_v30 = vpop.f32.mrb[15].mxu1 }
 0x63f   : > { %v2651_v36 = vpop.f32.mrb[16].mxu1 }
 0x640   : > { %v1430_v42 = vadd.f32 %v2651_v36, %v1317_v35  ;;  %v1421_v47 = vpop.f32.mrb[17].mxu1  ;;  %v4045_v35 = vld [vmem:[%s3772_s17 + $0x8] sm:$0xff]  }
 0x641   : > { %v2652_v49 = vpop.f32.mrb[18].mxu1  ;;  %v1422_v51 = vadd.f32 %v1421_v47, %v1315_v37  ;;  %v4051_v37 = vld [vmem:[%s3772_s17 + $0x10] sm:$0xff]   ;;  %v4055_v47 = vld [vmem:[%s3772_s17] sm:$0xff]  }
 0x642   : > { %v1424_v52 = vpop.f32.mrb[19].mxu1  ;;  %v1458_v53 = vsel %vm756_vm2, %v1430_v42, -inf  ;;  %v1433_v60 = vadd.f32 %v2652_v49, %v1318_v55 }
 0x643   : > { %v1425_v56 = vadd.f32 %v1424_v52, %v1316_v48  ;;  %1459 = vmax.xlane.f32.xlu0 %v1458_v53  ;;  %v1452_v63 = vsel %vm756_vm2, %v1422_v51, -inf  ;;  %v1320_v48 = vld [vmem:[#allocation16 + $0xa8] sm:$0xff]  ;;  %v4062_v53 = vld [vmem:[%s3772_s17 + $0x18] sm:$0xff]   ;;  %s3254_s17 = sshll.u32 %s3372_s5, 4  ;;  %s3255_s17 = int_to_ptr.vmem [resolvable:$false] %s3254_s17 }
 0x644   : > { %v1461_v14 = vsel %vm756_vm2, %v1433_v60, -inf  ;;  %s3256_s11 = scalar_lea.vmem %s3255_s17, 1024  ;;  %p3257_p8 = scmp.lt.s32.totalorder %s4353_s16, %s3255_s17 }
 0x645   : > { %v1455_v58 = vsel %vm756_vm2, %v1425_v56, -inf  ;;  %p3258_p11 = scmp.lt.s32.totalorder %s3256_s11, %s3250_s20 }
 0x646   : > { %1456 = vmax.xlane.f32.xlu1 %v1455_v58 }
 0x647   : > { %1453 = vmax.xlane.f32.xlu0 %v1452_v63  ;;  %v2655_v7 = vpop.f32.mrb[20].mxu1  ;;  %p3259_p1 = por %p3258_p11, %p3257_p8 }
 0x648   : > { %v1437_v8 = vpop.f32.mrb[21].mxu1  ;;  %v4033_v10 = vadd.f32 %v2655_v7, %v1321_v5 }
 0x649   : > { %v2656_v0 = vpop.f32.mrb[22].mxu1  ;;  %v4036_v16 = vadd.f32 %v1437_v8, %v1319_v18  ;;  %p3260_p10 = pnand %p3259_p1, %p3253_p13 }
 0x64a   : > { %v1440_v12 = vpop.f32.mrb[23].mxu1  ;;  %v1470_v23 = vsel %vm756_vm2, %v4033_v10, -inf  ;;  %v4040_v28 = vadd.f32 %v2656_v0, %v1322_v24 }
 0x64b   : > { %1462 = vmax.xlane.f32.xlu0 %v1461_v14  ;;  %v1464_v59 = vsel %vm756_vm2, %v4036_v16, -inf  ;;  %v1441_v49 = vadd.f32 %v1440_v12, %v1320_v48 }
 0x64c   : > { %v1473_v36 = vsel %vm756_vm2, %v4040_v28, -inf }
 0x64d   : > { %v1467_v52 = vsel %vm756_vm2, %v1441_v49, -inf }
 0x64f   : > { %1471 = vmax.xlane.f32.xlu0 %v1470_v23 }
 0x653   : > { %1465 = vmax.xlane.f32.xlu0 %v1464_v59 }
 0x657   : > { %1713 = vrot.lane.b32.xlu1 %v4045_v35, %s3367_s18  ;;  %1474 = vmax.xlane.f32.xlu0 %v1473_v36 }
 0x65b   : > { %1715 = vrot.lane.b32.xlu1 %v4051_v37, %s3367_s18 }
 0x66d   : > { %1711 = vrot.lane.b32.xlu0 %v4055_v47, %s3367_s18 }
 0x671   : > { %1683 = vrot.lane.b32.xlu0 %v3813_v43, %s3367_s18 }
 0x675   : > { %1687 = vrot.lane.b32.xlu0 %v3824_v46, %s3367_s18 }
 0x67f   : > { %1468 = vmax.xlane.f32.xlu1 %v1467_v52 }
 0x690   : > { %1717 = vrot.lane.b32.xlu1 %v4062_v53, %s3367_s18 }
 0x694   : > { %1685 = vrot.lane.b32.xlu1 %v3818_v44, %s3367_s18 }
 0x698   : > { %1689 = vrot.lane.b32.xlu1 %v3822_v45, %s3367_s18 }
 0x6d0   : > { %v1460_v55 = vpop.xlane.xlu0 %1459 }
 0x6d1   : > { %v1478_v63 = vsub.f32 %v1430_v42, %v1460_v55 }
 0x6d3   : > { %v1457_v58 = vpop.xlane.xlu1 %1456  ;;  %v1488_v0 = vmul.f32 1.442695, %v1478_v63 }
 0x6d4   : > { %v1477_v5 = vsub.f32 %v1425_v56, %v1457_v58  ;;  %v1454_v43 = vpop.xlane.xlu0 %1453 }
 0x6d5   : > { %v1476_v7 = vsub.f32 %v1422_v51, %v1454_v43 }
 0x6d6   : > { %v1486_v46 = vmul.f32 1.442695, %v1477_v5 }
 0x6d7   : > { %v1484_v8 = vmul.f32 1.442695, %v1476_v7  ;;  %v1714_v52 = vpop.permute.xlu1 %1713 }
 0x6d8   : > { %2924 = vpow2.f32 %v1486_v46  ;;  %v1463_v12 = vpop.xlane.xlu0 %1462  ;;  %v1735_v55 = vsel %vm666_vm1, %v1714_v52, 0 }
 0x6d9   : > { %2926 = vpow2.f32 %v1484_v8  ;;  %v1479_v14 = vsub.f32 %v1433_v60, %v1463_v12 }
 0x6da   : > { %2928 = vpow2.f32 %v1488_v0 }
 0x6db   : > { %v1490_v18 = vmul.f32 1.442695, %v1479_v14  ;;  %v1716_v58 = vpop.permute.xlu1 %1715 }
 0x6dc   : > { %v1472_v23 = vpop.xlane.xlu0 %1471  ;;  %v1738_v63 = vsel %vm666_vm1, %v1716_v58, 0 }
 0x6dd   : > { %2930 = vpow2.f32 %v1490_v18  ;;  %v1482_v7 = vsub.f32 %v4033_v10, %v1472_v23 }
 0x6df   : > { %v1496_v14 = vmul.f32 1.442695, %v1482_v7 }
 0x6e0   : > { %v1466_v44 = vpop.xlane.xlu0 %1465 }
 0x6e1   : > { %v1480_v5 = vsub.f32 %v4036_v16, %v1466_v44 }
 0x6e2   : > { %v4067_v24 = vpop.eup %2924 }
 0x6e3   : > { %v4069_v45 = vpop.eup %2926  ;;  %v1492_v46 = vmul.f32 1.442695, %v1480_v5 }
 0x6e4   : > { %v1475_v42 = vpop.xlane.xlu0 %1474  ;;  %v1532_v51 = vpack.c.bf16 %v4067_v24, %v4069_v45  ;;  %v4073_v56 = vpop.eup %2928 }
 0x6e5   : > { %v1483_v43 = vsub.f32 %v4040_v28, %v1475_v42  ;;  %2932 = vpow2.f32 %v1492_v46 }
 0x6e6   : > { %2665 = vmatprep.mubr.msk.bf16.mxu0 %vm756_vm2, %v1532_v51 }
 0x6e7   : > { %v4076_v59 = vpop.eup %2930  ;;  %v1498_v8 = vmul.f32 1.442695, %v1483_v43 }
 0x6e8   : > { %v1533_v60 = vpack.c.bf16 %v4076_v59, %v4073_v56  ;;  %v1712_v36 = vpop.permute.xlu0 %1711 }
 0x6e9   : > { %v1732_v48 = vsel %vm666_vm1, %v1712_v36, 0  ;;  %2729 = vmatprep.subr.msk.bf16.mxu0 %vm666_vm1, %v1712_v36  ;;  %2934 = vpow2.f32 %v1498_v8 }
 0x6ea   : > { %2666 = vmatmul.mubr.msk.bf16.vlgmr.msra.gmra.mrb[24].mxu0 %vm756_vm2, %v1533_v60 }
 0x6eb   : > { %2674 = vmatpush3.bf16.xpose.msra.mxu0 %v1732_v48 }
 0x6ec   : > { %2730 = vmatprep.subr.msk.bf16.mxu0 %vm666_vm1, %v1714_v52  ;;  %v1684_v42 = vpop.permute.xlu0 %1683 }
 0x6ef   : > { %v4092_v16 = vpop.eup %2932 }
 0x6f0   : > { %v1688_v48 = vpop.permute.xlu0 %1687 }
 0x6f3   : > { %2676 = vmatpush3.bf16.xpose.msra.mxu0 %v1735_v55  ;;  %v4094_v28 = vpop.eup %2934 }
 0x6f4   : > { %2731 = vmatprep.subr.msk.bf16.mxu0 %vm666_vm1, %v1716_v58 }
 0x6fb   : > { %2678 = vmatpush3.bf16.xpose.msra.mxu0 %v1738_v63 }
 0x70c   : > { %v1469_v0 = vpop.xlane.xlu1 %1468 }
 0x70d   : > { %v1481_v12 = vsub.f32 %v1441_v49, %v1469_v0  ;;  %v1673_v0 = vld [vmem:[#allocation16 + $0xd0] sm:$0xff] }
 0x70f   : > { %v1494_v18 = vmul.f32 1.442695, %v1481_v12 }
 0x710   : > { %v1718_v51 = vpop.permute.xlu1 %1717 }
 0x711   : > { %2936 = vpow2.f32 %v1494_v18  ;;  %v1741_v60 = vsel %vm666_vm1, %v1718_v51, 0  ;;  %2732 = vmatprep.subr.msk.bf16.mxu0 %vm666_vm1, %v1718_v51 }
 0x712   : > { %2938 = vpow2.f32 %v1496_v14  ;;  %2680 = vmatpush3.bf16.xpose.msra.mxu0 %v1741_v60  ;;  %v1671_v14 = vld [vmem:[#allocation16 + $0xc0] sm:$0xff]  ;;  %v1672_v60 = vld [vmem:[#allocation16 + $0xc8] sm:$0xff] }
 0x714   : > { %v1686_v36 = vpop.permute.xlu1 %1685 }
 0x718   : > { %v1690_v52 = vpop.permute.xlu1 %1689 }
 0x71b   : > { %v4096_v10 = vpop.eup %2936 }
 0x71c   : > { %v4098_v23 = vpop.eup %2938  ;;  %v1534_v49 = vpack.c.bf16 %v4096_v10, %v4092_v16 }
 0x71d   : > { %v1535_v44 = vpack.c.bf16 %v4094_v28, %v4098_v23 }
 0x71e   : > { %2669 = vmatprep.mubr.msk.bf16.mxu0 %vm756_vm2, %v1534_v49 }
 0x71f   : > { %2670 = vmatmul.mubr.msk.bf16.gmra.mrb[28].mxu0 %vm756_vm2, %v1535_v44 }
 0x720   : > { %2681 = vmatprep.mubr.msk.bf16.mxu0 %vm666_vm1, %v1684_v42 }
 0x727   : > { %2682 = vmatmul.mubr.msk.bf16.vlgmr.msra.gmra.mrb[32].mxu0 %vm666_vm1, %v1686_v36 }
 0x728   : > { %2685 = vmatprep.mubr.msk.bf16.mxu0 %vm666_vm1, %v1688_v48  ;;  %v1674_v48 = vld [vmem:[#allocation16 + $0xd8] sm:$0xff] }
 0x72f   : > { %2686 = vmatmul.mubr.msk.bf16.gmra.mrb[36].mxu0 %vm666_vm1, %v1690_v52 }
 0x7bd   : > { %v4110_v55 = vpop.f32.mrb[24].mxu0 }
 0x7be   : > { %v4112_v58 = vpop.f32.mrb[25].mxu0 }
 0x7bf   : > { %v4114_v63 = vpop.f32.mrb[26].mxu0 }
 0x7c0   : > { %v4116_v5 = vpop.f32.mrb[27].mxu0 }
 0x7f2   : > { %v4118_v43 = vpop.f32.mrb[28].mxu0 }
 0x7f3   : > { %v4120_v7 = vpop.f32.mrb[29].mxu0 }
 0x7f4   : > { %v4122_v46 = vpop.f32.mrb[30].mxu0 }
 0x7f5   : > { %v4124_v8 = vpop.f32.mrb[31].mxu0 }
 0x7fa   : > { %v2683_v12 = vpop.f32.mrb[32].mxu0 }
 0x7fb   : > { %v4126_v18 = vadd.f32 %v2683_v12, %v1673_v0  ;;  %v1777_v51 = vpop.f32.mrb[33].mxu0  ;;  %v1677_v12 = vld [vmem:[#allocation16 + $0xf0] sm:$0xff] }
 0x7fc   : > { %v2684_v49 = vpop.f32.mrb[34].mxu0  ;;  %v4128_v44 = vadd.f32 %v1777_v51, %v1671_v14 }
 0x7fd   : > { %v1780_v42 = vpop.f32.mrb[35].mxu0  ;;  %v1814_v36 = vsel %vm756_vm2, %v4126_v18, -inf  ;;  %v4136_v17 = vadd.f32 %v2684_v49, %v1674_v48  ;;  %v1678_v48 = vld [vmem:[#allocation16 + $0xf8] sm:$0xff] }
 0x7fe   : > { %v4132_v52 = vadd.f32 %v1780_v42, %v1672_v60  ;;  %1815 = vmax.xlane.f32.xlu0 %v1814_v36  ;;  %v1808_v0 = vsel %vm756_vm2, %v4128_v44, -inf  ;;  %v1675_v42 = vld [vmem:[#allocation16 + $0xe0] sm:$0xff] }
 0x7ff   : > { %v1817_v60 = vsel %vm756_vm2, %v4136_v17, -inf }
 0x800   : > { %v1811_v21 = vsel %vm756_vm2, %v4132_v52, -inf }
 0x801   : > { %1812 = vmax.xlane.f32.xlu1 %v1811_v21 }
 0x802   : > { %1809 = vmax.xlane.f32.xlu0 %v1808_v0  ;;  %v2687_v14 = vpop.f32.mrb[36].mxu0 }
 0x803   : > { %v1793_v51 = vpop.f32.mrb[37].mxu0  ;;  %v4140_v20 = vadd.f32 %v2687_v14, %v1677_v12  ;;  %v1676_v12 = vld [vmem:[#allocation16 + $0xe8] sm:$0xff] }
 0x804   : > { %v2688_v22 = vpop.f32.mrb[38].mxu0  ;;  %v4144_v36 = vadd.f32 %v1793_v51, %v1675_v42 }
 0x805   : > { %v1796_v15 = vpop.f32.mrb[39].mxu0  ;;  %v1826_v21 = vsel %vm756_vm2, %v4140_v20, -inf  ;;  %v4153_v0 = vadd.f32 %v2688_v22, %v1678_v48  ;;  %v1500_v22 = vsel %vm756_vm2, %v4069_v45, 0.0  ;;  %v1503_v45 = vsel %vm756_vm2, %v4067_v24, 0.0 }
 0x806   : > { %1818 = vmax.xlane.f32.xlu0 %v1817_v60  ;;  %v1820_v49 = vsel %vm756_vm2, %v4144_v36, -inf  ;;  %v4155_v14 = vadd.f32 %v1796_v15, %v1676_v12  ;;  %v1153_v15 = vsel %vm756_vm2, %v3976_v34, 0.0  ;;  %v1512_v34 = vsel %vm756_vm2, %v4092_v16, 0.0 }
 0x807   : > { %v1829_v51 = vsel %vm756_vm2, %v4153_v0, -inf }
 0x808   : > { %v1823_v60 = vsel %vm756_vm2, %v4155_v14, -inf }
 0x80a   : > { %1827 = vmax.xlane.f32.xlu0 %v1826_v21 }
 0x80e   : > { %1821 = vmax.xlane.f32.xlu0 %v1820_v49 }
 0x812   : > { %1894 = vrot.lane.b32.xlu1 %v4045_v35, %s3368_s10  ;;  %v1144_v35 = vsel %vm756_vm2, %v3969_v32, 0.0  ;;  %v1156_v32 = vsel %vm756_vm2, %v3992_v54, 0.0  ;;  %v1509_v54 = vsel %vm756_vm2, %v4076_v59, 0.0 }
 0x816   : > { %1896 = vrot.lane.b32.xlu1 %v4051_v37, %s3368_s10  ;;  %v1150_v37 = vsel %vm756_vm2, %v3973_v33, 0.0  ;;  %v1162_v33 = vsel %vm756_vm2, %v3998_v9, 0.0  ;;  %v1159_v9 = vsel %vm756_vm2, %v3996_v50, 0.0 }
 0x824   : > { %1892 = vrot.lane.b32.xlu0 %v4055_v47, %s3368_s10  ;;  %v1506_v47 = vsel %vm756_vm2, %v4073_v56, 0.0  ;;  %v1165_v56 = vsel %vm756_vm2, %v3994_v57, 0.0 }
 0x83a   : > { %1830 = vmax.xlane.f32.xlu1 %v1829_v51 }
 0x83e   : > { %1824 = vmax.xlane.f32.xlu1 %v1823_v60 }
 0x843   : > { %1145 = vadd.xlane.f32.xlu0 %v1144_v35 }
 0x847   : > { %1151 = vadd.xlane.f32.xlu0 %v1150_v37 }
 0x84b   : > { %1154 = vadd.xlane.f32.xlu0 %v1153_v15 }
 0x84f   : > { %1898 = vrot.lane.b32.xlu1 %v4062_v53, %s3368_s10  ;;  %1501 = vadd.xlane.f32.xlu0 %v1500_v22  ;;  %v1147_v53 = vsel %vm756_vm2, %v3967_v31, 0.0  ;;  %v1515_v31 = vsel %vm756_vm2, %v4096_v10, 0.0 }
 0x853   : > { %1507 = vadd.xlane.f32.xlu0 %v1506_v47 }
 0x857   : > { %1157 = vadd.xlane.f32.xlu0 %v1156_v32 }
 0x85b   : > { %1163 = vadd.xlane.f32.xlu0 %v1162_v33 }
 0x85f   : > { %1513 = vadd.xlane.f32.xlu0 %v1512_v34 }
 0x873   : > { %1148 = vadd.xlane.f32.xlu1 %v1147_v53 }
 0x877   : > { %1504 = vadd.xlane.f32.xlu1 %v1503_v45 }
 0x87b   : > { %1510 = vadd.xlane.f32.xlu1 %v1509_v54 }
 0x87f   : > { %1160 = vadd.xlane.f32.xlu1 %v1159_v9 }
 0x883   : > { %1166 = vadd.xlane.f32.xlu1 %v1165_v56 }
 0x887   : > { %1516 = vadd.xlane.f32.xlu1 %v1515_v31  ;;  %v1521_v31 = vsel %vm756_vm2, %v4094_v28, 0.0  ;;  %v823_v28 = vsel %vm756_vm2, %v3898_v4, 0.0 }
 0x88b   : > { %v1816_v16 = vpop.xlane.xlu0 %1815 }
 0x88c   : > { %v1834_v24 = vsub.f32 %v4126_v18, %v1816_v16 }
 0x88e   : > { %v1844_v42 = vmul.f32 1.442695, %v1834_v24  ;;  %v1813_v21 = vpop.xlane.xlu1 %1812 }
 0x88f   : > { %v1833_v59 = vsub.f32 %v4132_v52, %v1813_v21  ;;  %v1810_v49 = vpop.xlane.xlu0 %1809  ;;  %v811_v21 = vsel %vm756_vm2, %v3873_v41, 0.0 }
 0x890   : > { %2940 = vpow2.f32 %v1844_v42  ;;  %v1832_v50 = vsub.f32 %v4128_v44, %v1810_v49  ;;  %v805_v42 = vsel %vm756_vm2, %v3867_v38, 0.0 }
 0x891   : > { %v1842_v48 = vmul.f32 1.442695, %v1833_v59  ;;  %v817_v59 = vsel %vm756_vm2, %v3892_v1, 0.0 }
 0x892   : > { %v1840_v12 = vmul.f32 1.442695, %v1832_v50  ;;  %v1895_v33 = vpop.permute.xlu1 %1894 }
 0x893   : > { %2942 = vpow2.f32 %v1842_v48  ;;  %v1819_v57 = vpop.xlane.xlu0 %1818 }
 0x894   : > { %2944 = vpow2.f32 %v1840_v12  ;;  %v1835_v51 = vsub.f32 %v4136_v17, %v1819_v57 }
 0x896   : > { %v1846_v10 = vmul.f32 1.442695, %v1835_v51  ;;  %v1897_v54 = vpop.permute.xlu1 %1896 }
 0x897   : > { %v1828_v60 = vpop.xlane.xlu0 %1827 }
 0x898   : > { %2946 = vpow2.f32 %v1846_v10  ;;  %v1838_v18 = vsub.f32 %v4140_v20, %v1828_v60 }
 0x89a   : > { %v2941_v35 = vpop.eup %2940  ;;  %v1852_v47 = vmul.f32 1.442695, %v1838_v18 }
 0x89b   : > { %v1822_v37 = vpop.xlane.xlu0 %1821  ;;  %v1862_v52 = vsel %vm756_vm2, %v2941_v35, 0.0 }
 0x89c   : > { %v1836_v15 = vsub.f32 %v4144_v36, %v1822_v37  ;;  %1863 = vadd.xlane.f32.xlu0 %v1862_v52  ;;  %v1518_v36 = vsel %vm756_vm2, %v4098_v23, 0.0 }
 0x89d   : > { %v2943_v44 = vpop.eup %2942 }
 0x89e   : > { %v2945_v22 = vpop.eup %2944  ;;  %v1848_v32 = vmul.f32 1.442695, %v1836_v15  ;;  %v1859_v9 = vsel %vm756_vm2, %v2943_v44, 0.0 }
 0x89f   : > { %v1893_v34 = vpop.permute.xlu0 %1892  ;;  %v1856_v17 = vsel %vm756_vm2, %v2945_v22, 0.0  ;;  %v1888_v53 = vpack.c.bf16 %v2943_v44, %v2945_v22 }
 0x8a0   : > { %2948 = vpow2.f32 %v1848_v32  ;;  %1857 = vadd.xlane.f32.xlu0 %v1856_v17  ;;  %2689 = vmatprep.subr.bf16.mxu1 %v1893_v34 }
 0x8a1   : > { %2690 = vmatpush3.bf16.msra.mxu1 %v1893_v34  ;;  %2697 = vmatprep.mubr.msk.bf16.mxu1 %vm756_vm2, %v1888_v53  ;;  %2950 = vpow2.f32 %v1852_v47  ;;  %v808_v47 = vsel %vm756_vm2, %v3871_v40, 0.0  ;;  %v814_v53 = vsel %vm756_vm2, %v3869_v39, 0.0  ;;  %v826_v40 = vsel %vm756_vm2, %v3894_v2, 0.0 }
 0x8a2   : > { %v2947_v20 = vpop.eup %2946  ;;  %2691 = vmatprep.subr.bf16.mxu1 %v1895_v33 }
 0x8a3   : > { %v1865_v45 = vsel %vm756_vm2, %v2947_v20, 0.0  ;;  %v1889_v1 = vpack.c.bf16 %v2947_v20, %v2941_v35 }
 0x8a4   : > { %1519 = vadd.xlane.f32.xlu0 %v1518_v36  ;;  %1866 = vadd.xlane.f32.xlu1 %v1865_v45  ;;  %v820_v36 = vsel %vm756_vm2, %v3896_v3, 0.0 }
 0x8a5   : > { %2692 = vmatpush3.bf16.msra.mxu1 %v1895_v33 }
 0x8a6   : > { %2693 = vmatprep.subr.bf16.mxu1 %v1897_v54 }
 0x8a8   : > { %1860 = vadd.xlane.f32.xlu1 %v1859_v9 }
 0x8a9   : > { %2694 = vmatpush3.bf16.msra.mxu1 %v1897_v54 }
 0x8aa   : > { %v2949_v56 = vpop.eup %2948 }
 0x8ab   : > { %v1868_v16 = vsel %vm756_vm2, %v2949_v56, 0.0  ;;  %v2951_v24 = vpop.eup %2950 }
 0x8ac   : > { %1522 = vadd.xlane.f32.xlu1 %v1521_v31  ;;  %1869 = vadd.xlane.f32.xlu0 %v1868_v16  ;;  %v1874_v23 = vsel %vm756_vm2, %v2951_v24, 0.0 }
 0x8b0   : > { %1875 = vadd.xlane.f32.xlu0 %v1874_v23 }
 0x8b4   : > { %806 = vadd.xlane.f32.xlu0 %v805_v42 }
 0x8b8   : > { %812 = vadd.xlane.f32.xlu0 %v811_v21 }
 0x8bc   : > { %818 = vadd.xlane.f32.xlu0 %v817_v59 }
 0x8c0   : > { %824 = vadd.xlane.f32.xlu0 %v823_v28 }
 0x8c7   : > { %v1831_v49 = vpop.xlane.xlu1 %1830 }
 0x8c8   : > { %v1839_v50 = vsub.f32 %v4153_v0, %v1831_v49 }
 0x8ca   : > { %v1854_v48 = vmul.f32 1.442695, %v1839_v50 }
 0x8cb   : > { %v1825_v12 = vpop.xlane.xlu1 %1824 }
 0x8cc   : > { %v1837_v38 = vsub.f32 %v4155_v14, %v1825_v12  ;;  %2952 = vpow2.f32 %v1854_v48 }
 0x8ce   : > { %v1850_v57 = vmul.f32 1.442695, %v1837_v38 }
 0x8cf   : > { %v1899_v51 = vpop.permute.xlu1 %1898 }
 0x8d0   : > { %2954 = vpow2.f32 %v1850_v57  ;;  %2695 = vmatprep.subr.bf16.mxu1 %v1899_v51  ;;  %v1146_v41 = vpop.xlane.xlu0 %1145 }
 0x8d1   : > { %2696 = vmatpush3.bf16.msra.mxu1 %v1899_v51 }
 0x8d4   : > { %2698 = vmatmul.mubr.msk.bf16.vlgmr.msra.gmra.mrb[24].mxu1 %vm756_vm2, %v1889_v1  ;;  %v1152_v10 = vpop.xlane.xlu0 %1151 }
 0x8d5   : > { %2956 = vrcp.f32 %v1152_v10 }
 0x8d6   : > { %v2953_v60 = vpop.eup %2952 }
 0x8d7   : > { %v1891_v52 = vpack.c.bf16 %v2953_v60, %v2951_v24  ;;  %v1877_v35 = vsel %vm756_vm2, %v2953_v60, 0.0 }
 0x8d8   : > { %v1155_v4 = vpop.xlane.xlu0 %1154 }
 0x8d9   : > { %2958 = vrcp.f32 %v1155_v4 }
 0x8da   : > { %v2955_v0 = vpop.eup %2954 }
 0x8db   : > { %v1871_v18 = vsel %vm756_vm2, %v2955_v0, 0.0  ;;  %v1890_v37 = vpack.c.bf16 %v2955_v0, %v2949_v56 }
 0x8dc   : > { %1872 = vadd.xlane.f32.xlu1 %v1871_v18  ;;  %v1502_v14 = vpop.xlane.xlu0 %1501 }
 0x8dd   : > { %2701 = vmatprep.mubr.msk.bf16.mxu1 %vm756_vm2, %v1890_v37 }
 0x8de   : > { %2702 = vmatmul.mubr.msk.bf16.gmra.mrb[28].mxu1 %vm756_vm2, %v1891_v52 }
 0x8df   : > { %v2957_v44 = vpop.eup %2956 }
 0x8e0   : > { %1878 = vadd.xlane.f32.xlu1 %v1877_v35  ;;  %v1508_v15 = vpop.xlane.xlu0 %1507  ;;  %v1271_v33 = vmul.f32 %v2957_v44, %v4014_v25 }
 0x8e3   : > { %v2959_v22 = vpop.eup %2958 }
 0x8e4   : > { %809 = vadd.xlane.f32.xlu1 %v808_v47  ;;  %v1158_v32 = vpop.xlane.xlu0 %1157  ;;  %v1272_v34 = vmul.f32 %v2959_v22, %v4018_v29 }
 0x8e6   : > { %v1278_v17 = vpack.c.bf16 %v1272_v34, %v1271_v33 }
 0x8e8   : > { %815 = vadd.xlane.f32.xlu1 %v814_v53  ;;  %v1164_v20 = vpop.xlane.xlu0 %1163 }
 0x8ec   : > { %821 = vadd.xlane.f32.xlu1 %v820_v36  ;;  %v1514_v45 = vpop.xlane.xlu0 %1513 }
 0x8ed   : > { %2960 = vrcp.f32 %v1514_v45 }
 0x8ee   : > { %2962 = vrcp.f32 %v1146_v41 }
 0x8f0   : > { %827 = vadd.xlane.f32.xlu1 %v826_v40 }
 0x8f7   : > { %v2961_v54 = vpop.eup %2960 }
 0x8f8   : > { %v4233_v25 = vmul.f32 %v2961_v54, %v4120_v7  ;;  %v2963_v9 = vpop.eup %2962 }
 0x8f9   : > { %v1269_v31 = vmul.f32 %v2963_v9, %v4016_v27 }
 0x900   : > { %v1149_v29 = vpop.xlane.xlu1 %1148 }
 0x901   : > { %2964 = vrcp.f32 %v1149_v29  ;;  %1287 = vrot.lane.b32.xlu1 %v1278_v17, %s3369_s26 }
 0x902   : > { %2966 = vrcp.f32 %v1502_v14  ;;  %v2890_v14 = vld [vmem:[#allocation13] sm:$0xff]  }
 0x903   : > { %2705 = vmatprep.subr.bf16.mxu1 %v2890_v14 }
 0x904   : > { %v1505_v39 = vpop.xlane.xlu1 %1504  ;;  %2706 = vmatpush3.bf16.msra.mxu1 %v2890_v14 }
 0x905   : > { %2968 = vrcp.f32 %v1505_v39 }
 0x906   : > { %2970 = vrcp.f32 %v1508_v15 }
 0x908   : > { %v1511_v3 = vpop.xlane.xlu1 %1510 }
 0x909   : > { %2972 = vrcp.f32 %v1511_v3 }
 0x90a   : > { %2974 = vrcp.f32 %v1158_v32 }
 0x90b   : > { %v2965_v56 = vpop.eup %2964 }
 0x90c   : > { %v1161_v2 = vpop.xlane.xlu1 %1160  ;;  %v1270_v7 = vmul.f32 %v2965_v56, %v4020_v26  ;;  %v2967_v16 = vpop.eup %2966 }
 0x90d   : > { %2976 = vrcp.f32 %v1161_v2  ;;  %v1625_v21 = vmul.f32 %v2967_v16, %v4112_v58 }
 0x90e   : > { %v1277_v24 = vpack.c.bf16 %v1270_v7, %v1269_v31  ;;  %2978 = vrcp.f32 %v1164_v20  ;;  %v4487_v31 = vld [vmem:[#allocation33_spill] sm:$0xff] }
 0x90f   : > { %v2969_v23 = vpop.eup %2968 }
 0x910   : > { %v1167_v42 = vpop.xlane.xlu1 %1166  ;;  %1285 = vrot.lane.b32.xlu0 %v1277_v24, %s3369_s26  ;;  %v1626_v59 = vmul.f32 %v2969_v23, %v4116_v5  ;;  %v2971_v28 = vpop.eup %2970 }
 0x911   : > { %2980 = vrcp.f32 %v1167_v42  ;;  %v1627_v27 = vmul.f32 %v2971_v28, %v4110_v55 }
 0x912   : > { %v1633_v49 = vpack.c.bf16 %v1626_v59, %v1625_v21  ;;  %v4489_v59 = vld [vmem:[#allocation37_spill] sm:$0xff] }
 0x913   : > { %v2973_v50 = vpop.eup %2972 }
 0x914   : > { %v1517_v48 = vpop.xlane.xlu1 %1516  ;;  %1641 = vrot.lane.b32.xlu1 %v1633_v49, %s3370_s21  ;;  %v1628_v26 = vmul.f32 %v2973_v50, %v4114_v63  ;;  %v2975_v12 = vpop.eup %2974 }
 0x915   : > { %2982 = vrcp.f32 %v1517_v48  ;;  %v1273_v58 = vmul.f32 %v2975_v12, %v4024_v62  ;;  %v4491_v12 = vld [vmem:[#allocation36_spill] sm:$0xff] }
 0x916   : > { %v1634_v38 = vpack.c.bf16 %v1628_v26, %v1627_v27  ;;  %v4490_v27 = vld [vmem:[#allocation34_spill] sm:$0xff] }
 0x917   : > { %v2977_v57 = vpop.eup %2976 }
 0x918   : > { %1643 = vrot.lane.b32.xlu1 %v1634_v38, %s3370_s21  ;;  %v1274_v5 = vmul.f32 %v2977_v57, %v4028_v30  ;;  %v2979_v51 = vpop.eup %2978 }
 0x919   : > { %v1275_v10 = vmul.f32 %v2979_v51, %v4022_v61 }
 0x91a   : > { %v1279_v41 = vpack.c.bf16 %v1274_v5, %v1273_v58 }
 0x91b   : > { %v2981_v1 = vpop.eup %2980 }
 0x91c   : > { %1289 = vrot.lane.b32.xlu0 %v1279_v41, %s3369_s26  ;;  %v1276_v55 = vmul.f32 %v2981_v1, %v4026_v6  ;;  %v2891_v41 = vld [vmem:[#allocation13 + $0x8] sm:$0xff]  }
 0x91d   : > { %2707 = vmatprep.subr.bf16.mxu1 %v2891_v41 }
 0x91e   : > { %v1280_v63 = vpack.c.bf16 %v1276_v55, %v1275_v10  ;;  %2708 = vmatpush3.bf16.msra.mxu1 %v2891_v41  ;;  %v2122_v41 = vld [vmem:[%s3756_s30 + $0x20] sm:$0xff] }
 0x91f   : > { %v2983_v4 = vpop.eup %2982 }
 0x920   : > { %1291 = vrot.lane.b32.xlu1 %v1280_v63, %s3369_s26  ;;  %v4252_v60 = vmul.f32 %v2983_v4, %v4124_v8 }
 0x922   : > { %v1635_v62 = vpack.c.bf16 %v4252_v60, %v4233_v25 }
 0x929   : > { %v4256_v30 = vpop.xlane.xlu0 %1863 }
 0x92d   : > { %v4258_v0 = vpop.xlane.xlu0 %1857 }
 0x931   : > { %v4260_v18 = vpop.xlane.xlu1 %1866  ;;  %v1520_v37 = vpop.xlane.xlu0 %1519 }
 0x932   : > { %2984 = vrcp.f32 %v1520_v37 }
 0x935   : > { %v4262_v61 = vpop.xlane.xlu1 %1860 }
 0x939   : > { %v1523_v6 = vpop.xlane.xlu1 %1522  ;;  %v4272_v22 = vpop.xlane.xlu0 %1869 }
 0x93a   : > { %2986 = vrcp.f32 %v1523_v6 }
 0x93c   : > { %v2985_v8 = vpop.eup %2984 }
 0x93d   : > { %v4265_v35 = vmul.f32 %v2985_v8, %v4118_v43  ;;  %v4274_v47 = vpop.xlane.xlu0 %1875 }
 0x941   : > { %v807_v32 = vpop.xlane.xlu0 %806 }
 0x942   : > { %2988 = vrcp.f32 %v807_v32 }
 0x944   : > { %v2987_v52 = vpop.eup %2986 }
 0x945   : > { %v4268_v15 = vmul.f32 %v2987_v52, %v4122_v46  ;;  %v813_v34 = vpop.xlane.xlu0 %812 }
 0x947   : > { %v1636_v44 = vpack.c.bf16 %v4268_v15, %v4265_v35 }
 0x949   : > { %v819_v43 = vpop.xlane.xlu0 %818 }
 0x94c   : > { %v2989_v45 = vpop.eup %2988 }
 0x94d   : > { %v825_v20 = vpop.xlane.xlu0 %824  ;;  %v930_v54 = vmul.f32 %v2989_v45, %v3916_v13 }
 0x969   : > { %v4276_v33 = vpop.xlane.xlu1 %1872 }
 0x96d   : > { %v4278_v17 = vpop.xlane.xlu1 %1878 }
 0x971   : > { %v810_v53 = vpop.xlane.xlu1 %809 }
 0x972   : > { %2990 = vrcp.f32 %v810_v53 }
 0x973   : > { %2992 = vrcp.f32 %v813_v34 }
 0x975   : > { %v816_v46 = vpop.xlane.xlu1 %815 }
 0x976   : > { %2994 = vrcp.f32 %v816_v46 }
 0x977   : > { %2996 = vrcp.f32 %v819_v43 }
 0x979   : > { %v822_v36 = vpop.xlane.xlu1 %821 }
 0x97a   : > { %2998 = vrcp.f32 %v822_v36 }
 0x97b   : > { %3000 = vrcp.f32 %v825_v20 }
 0x97c   : > { %v2991_v40 = vpop.eup %2990 }
 0x97d   : > { %v931_v29 = vmul.f32 %v2991_v40, %v3920_v19  ;;  %v828_v39 = vpop.xlane.xlu1 %827  ;;  %v2993_v3 = vpop.eup %2992  ;;  %v4488_v19 = vld [vmem:[#allocation35_spill] sm:$0xff] }
 0x97e   : > { %3002 = vrcp.f32 %v828_v39  ;;  %v932_v2 = vmul.f32 %v2993_v3, %v3914_v11 }
 0x97f   : > { %v938_v9 = vpack.c.bf16 %v931_v29, %v930_v54  ;;  %3004 = vrcp.f32 %v4256_v30 }
 0x980   : > { %v2995_v56 = vpop.eup %2994  ;;  %3006 = vrcp.f32 %v4258_v0 }
 0x981   : > { %v933_v7 = vmul.f32 %v2995_v56, %v4487_v31  ;;  %v1288_v16 = vpop.permute.xlu1 %1287  ;;  %942 = vst.msk [vmem:[#allocation3] sm:$0xff] %vm666_vm1, %v938_v9  ;;  %v2997_v24 = vpop.eup %2996  ;;  %3008 = vrcp.f32 %v4260_v18  ;;  %v2457_v56 = vld [vmem:[#allocation15] ss:$0 sm:$0xff]  ;;  %v2120_v31 = vld [vmem:[%s3756_s30 + $0x10] sm:$0xff] }
 0x982   : > { %v1286_v23 = vpop.permute.xlu0 %1285  ;;  %v934_v21 = vmul.f32 %v2997_v24, %v4488_v19  ;;  %3010 = vrcp.f32 %v4262_v61  ;;  %v2118_v24 = vld [vmem:[%s3756_s30] sm:$0xff] }
 0x983   : > { %v939_v42 = vpack.c.bf16 %v933_v7, %v932_v2  ;;  %1298 = vst.msk [vmem:[#allocation3] sm:$0xff] %vm1297_vm3, %v1286_v23  ;;  %3012 = vrcp.f32 %v4272_v22 }
 0x984   : > { %v2999_v13 = vpop.eup %2998  ;;  %3014 = vrcp.f32 %v4274_v47 }
 0x985   : > { %v935_v28 = vmul.f32 %v2999_v13, %v4489_v59  ;;  %943 = vst.msk [vmem:[#allocation3 + $0x8] sm:$0xff] %vm666_vm1, %v939_v42  ;;  %v3001_v49 = vpop.eup %3000  ;;  %3016 = vrcp.f32 %v4278_v17  ;;  %v2121_v13 = vld [vmem:[%s3756_s30 + $0x18] sm:$0xff] }
 0x986   : > { %1299 = vst.msk [vmem:[#allocation3 + $0x8] sm:$0xff] %vm1297_vm3, %v1288_v16  ;;  %v1642_v11 = vpop.permute.xlu1 %1641  ;;  %v936_v26 = vmul.f32 %v3001_v49, %v4490_v27  ;;  %3018 = vrcp.f32 %v4276_v33 }
 0x987   : > { %1654 = vst.msk [vmem:[#allocation3] sm:$0xff] %vm1653_vm4, %v1642_v11  ;;  %v940_v50 = vpack.c.bf16 %v935_v28, %v934_v21  ;;  %v2119_v28 = vld [vmem:[%s3756_s30 + $0x8] sm:$0xff] }
 0x988   : > { %v3003_v48 = vpop.eup %3002 }
 0x989   : > { %v937_v38 = vmul.f32 %v3003_v48, %v4491_v12  ;;  %944 = vst.msk [vmem:[#allocation3 + $0x10] sm:$0xff] %vm666_vm1, %v940_v50  ;;  %v3005_v1 = vpop.eup %3004 }
 0x98a   : > { %v1644_v57 = vpop.permute.xlu1 %1643  ;;  %v3007_v55 = vpop.eup %3006 }
 0x98b   : > { %1655 = vst.msk [vmem:[#allocation3 + $0x8] sm:$0xff] %vm1653_vm4, %v1644_v57  ;;  %v941_v58 = vpack.c.bf16 %v937_v38, %v936_v26  ;;  %v3009_v37 = vpop.eup %3008 }
 0x98c   : > { %v3011_v0 = vpop.eup %3010 }
 0x98d   : > { %945 = vst.msk [vmem:[#allocation3 + $0x18] sm:$0xff] %vm666_vm1, %v941_v58  ;;  %v3013_v22 = vpop.eup %3012  ;;  %v2124_v58 = vld [vmem:[%s3756_s30 + $0x30] sm:$0xff] }
 0x98e   : > { %v1290_v5 = vpop.permute.xlu0 %1289  ;;  %v3015_v32 = vpop.eup %3014 }
 0x98f   : > { %1300 = vst.msk [vmem:[#allocation3 + $0x10] sm:$0xff] %vm1297_vm3, %v1290_v5  ;;  %v3017_v17 = vpop.eup %3016 }
 0x990   : > { %v3019_v43 = vpop.eup %3018 }
 0x992   : > { %v1292_v51 = vpop.permute.xlu1 %1291 }
 0x993   : > { %1301 = vst.msk [vmem:[#allocation3 + $0x18] sm:$0xff] %vm1297_vm3, %v1292_v51 }
 0x9a7   : > { %v2699_v10 = vpop.f32.mrb[24].mxu1 }
 0x9a8   : > { %v1983_v63 = vmul.f32 %v3005_v1, %v2699_v10  ;;  %v1950_v4 = vpop.f32.mrb[25].mxu1 }
 0x9a9   : > { %v2700_v30 = vpop.f32.mrb[26].mxu1  ;;  %v1981_v6 = vmul.f32 %v3007_v55, %v1950_v4  ;;  %v2125_v55 = vld [vmem:[%s3756_s30 + $0x38] sm:$0xff] }
 0x9aa   : > { %v1984_v18 = vmul.f32 %v3009_v37, %v2700_v30  ;;  %v1953_v61 = vpop.f32.mrb[27].mxu1  ;;  %v2123_v30 = vld [vmem:[%s3756_s30 + $0x28] sm:$0xff]  ;;  %s2176_s30 = scalar_lea.sflag [#allocation6], %s3752_s29 }
 0x9ab   : > { %v1982_v14 = vmul.f32 %v3011_v0, %v1953_v61 }
 0x9ac   : > { %v1990_v8 = vpack.c.bf16 %v1984_v18, %v1983_v63 }
 0x9ad   : > { %v1989_v52 = vpack.c.bf16 %v1982_v14, %v1981_v6 }
 0x9ae   : > { %1999 = vrot.lane.b32.xlu1 %v1990_v8, %s3371_s14 }
 0x9af   : > { %1997 = vrot.lane.b32.xlu0 %v1989_v52, %s3371_s14 }
 0x9b1   : > { %v2703_v47 = vpop.f32.mrb[28].mxu1 }
 0x9b2   : > { %v1966_v34 = vpop.f32.mrb[29].mxu1  ;;  %1647 = vrot.lane.b32.xlu1 %v1636_v44, %s3370_s21  ;;  %v1987_v46 = vmul.f32 %v3015_v32, %v2703_v47 }
 0x9b3   : > { %v1985_v33 = vmul.f32 %v3013_v22, %v1966_v34  ;;  %v2704_v53 = vpop.f32.mrb[30].mxu1  ;;  %1645 = vrot.lane.b32.xlu0 %v1635_v62, %s3370_s21 }
 0x9b4   : > { %v1988_v20 = vmul.f32 %v3017_v17, %v2704_v53  ;;  %v1969_v36 = vpop.f32.mrb[31].mxu1 }
 0x9b5   : > { %v1986_v45 = vmul.f32 %v3019_v43, %v1969_v36 }
 0x9b6   : > { %v1992_v40 = vpack.c.bf16 %v1988_v20, %v1987_v46 }
 0x9b7   : > { %v1991_v54 = vpack.c.bf16 %v1986_v45, %v1985_v33 }
 0x9b8   : > { %2003 = vrot.lane.b32.xlu1 %v1992_v40, %s3371_s14 }
 0x9b9   : > { %2001 = vrot.lane.b32.xlu0 %v1991_v54, %s3371_s14 }
 0xa20   : > { %v2000_v35 = vpop.permute.xlu1 %1999 }
 0xa21   : > { %2011 = vst.msk [vmem:[#allocation3 + $0x8] sm:$0xff] %vm2009_vm5, %v2000_v35  ;;  %v1998_v15 = vpop.permute.xlu0 %1997 }
 0xa22   : > { %2010 = vst.msk [vmem:[#allocation3] sm:$0xff] %vm2009_vm5, %v1998_v15 }
 0xa24   : > { %v1648_v44 = vpop.permute.xlu1 %1647 }
 0xa25   : > { %1657 = vst.msk [vmem:[#allocation3 + $0x18] sm:$0xff] %vm1653_vm4, %v1648_v44  ;;  %v1646_v25 = vpop.permute.xlu0 %1645 }
 0xa26   : > { %1656 = vst.msk [vmem:[#allocation3 + $0x10] sm:$0xff] %vm1653_vm4, %v1646_v25 }
 0xa28   : > { %v2015_v29 = vld [vmem:[#allocation3 + $0x8] sm:$0xff] }
 0xa29   : > { %v2014_v60 = vld [vmem:[#allocation3] sm:$0xff] }
 0xa2a   : > { %v2004_v62 = vpop.permute.xlu1 %2003  ;;  %2709 = vmatprep.mubr.msk.bf16.mxu1 %vm540_vm0, %v2014_v60 }
 0xa2b   : > { %2013 = vst.msk [vmem:[#allocation3 + $0x18] sm:$0xff] %vm2009_vm5, %v2004_v62  ;;  %2710 = vmatmul.mubr.msk.bf16.vlgmr.msra.gmra.mrb[32].mxu1 %vm540_vm0, %v2015_v29  ;;  %v2002_v39 = vpop.permute.xlu0 %2001 }
 0xa2c   : > { %2012 = vst.msk [vmem:[#allocation3 + $0x10] sm:$0xff] %vm2009_vm5, %v2002_v39 }
 0xa32   : > { %v2017_v9 = vld [vmem:[#allocation3 + $0x18] sm:$0xff] }
 0xa33   : > { %v2016_v3 = vld [vmem:[#allocation3 + $0x10] sm:$0xff] }
 0xa34   : > { %2713 = vmatprep.mubr.msk.bf16.mxu1 %vm540_vm0, %v2016_v3 }
 0xa35   : > { %2714 = vmatmul.mubr.msk.bf16.gmra.mrb[36].mxu1 %vm540_vm0, %v2017_v9 }
 0xafe   : > { %v2711_v2 = vpop.f32.mrb[32].mxu1 }
 0xaff   : > { %v2096_v7 = vadd.f32 %v2711_v2, %v2457_v56  ;;  %v2087_v16 = vpop.f32.mrb[33].mxu1 }
 0xb00   : > { %v2088_v23 = vadd.f32 %v2457_v56, %v2087_v16  ;;  %v2712_v42 = vpop.f32.mrb[34].mxu1 }
 0xb01   : > { %v2128_v19 = vadd.f32 %v2120_v31, %v2096_v7  ;;  %v2099_v21 = vadd.f32 %v2712_v42, %v2457_v56  ;;  %v2090_v59 = vpop.f32.mrb[35].mxu1 }
 0xb02   : > { %v2126_v49 = vadd.f32 %v2118_v24, %v2088_v23  ;;  %v2091_v11 = vadd.f32 %v2457_v56, %v2090_v59 }
 0xb03   : > { %v2482_v50 = vpack.c.bf16 %v2128_v19, %v2128_v19  ;;  %v2129_v48 = vadd.f32 %v2121_v13, %v2099_v21 }
 0xb04   : > { %v2480_v27 = vpack.c.bf16 %v2126_v49, %v2126_v49  ;;  %v2127_v26 = vadd.f32 %v2119_v28, %v2091_v11 }
 0xb05   : > { %2169 = vst.msk [vmem:[%s4330_s3 + $0x8] sm:$0xf] %vm2166_vm6, %v2482_v50  ;;  %v2483_v12 = vpack.c.bf16 %v2129_v48, %v2129_v48 }
 0xb06   : > { %2167 = vst.msk [vmem:[%s4330_s3] sm:$0xf] %vm2166_vm6, %v2480_v27  ;;  %v2481_v38 = vpack.c.bf16 %v2127_v26, %v2127_v26 }
 0xb07   : > { %2170 = vst.msk [vmem:[%s4330_s3 + $0xc] sm:$0xf] %vm2166_vm6, %v2483_v12 }
 0xb08   : > { %2168 = vst.msk [vmem:[%s4330_s3 + $0x4] sm:$0xf] %vm2166_vm6, %v2481_v38  ;;  %v2715_v57 = vpop.f32.mrb[36].mxu1 }
 0xb09   : > { %v2112_v5 = vadd.f32 %v2715_v57, %v2457_v56  ;;  %v2103_v51 = vpop.f32.mrb[37].mxu1 }
 0xb0a   : > { %v2104_v1 = vadd.f32 %v2457_v56, %v2103_v51  ;;  %v2716_v10 = vpop.f32.mrb[38].mxu1 }
 0xb0b   : > { %v2132_v63 = vadd.f32 %v2124_v58, %v2112_v5  ;;  %v2115_v4 = vadd.f32 %v2716_v10, %v2457_v56  ;;  %v2106_v37 = vpop.f32.mrb[39].mxu1 }
 0xb0c   : > { %v2130_v0 = vadd.f32 %v2122_v41, %v2104_v1  ;;  %v2107_v18 = vadd.f32 %v2457_v56, %v2106_v37 }
 0xb0d   : > { %v2486_v61 = vpack.c.bf16 %v2132_v63, %v2132_v63  ;;  %v2133_v6 = vadd.f32 %v2125_v55, %v2115_v4 }
 0xb0e   : > { %v2484_v14 = vpack.c.bf16 %v2130_v0, %v2130_v0  ;;  %v2131_v8 = vadd.f32 %v2123_v30, %v2107_v18 }
 0xb0f   : > { %2173 = vst.msk [vmem:[%s4330_s3 + $0x18] sm:$0xf] %vm2166_vm6, %v2486_v61  ;;  %v2487_v52 = vpack.c.bf16 %v2133_v6, %v2133_v6 }
 0xb10   : > { %2171 = vst.msk [vmem:[%s4330_s3 + $0x10] sm:$0xf] %vm2166_vm6, %v2484_v14  ;;  %v2485_v22 = vpack.c.bf16 %v2131_v8, %v2131_v8 }
 0xb11   : > { %2174 = vst.msk [vmem:[%s4330_s3 + $0x1c] sm:$0xf] %vm2166_vm6, %v2487_v52 }
 0xb12   : > { %2172 = vst.msk [vmem:[%s4330_s3 + $0x14] sm:$0xf] %vm2166_vm6, %v2485_v22 }
 0xb13   : > { %3263 = shalt.err (!%p3260_p10)
}
 0xb14   : > { %s3264_s22 = scalar_lea.hbm %s4351_s12, 512  ;;  %s3268_s25 = scalar_lea.hbm %s4494_s13, 1024 }
 0xb15   : > { %p3265_p0 = scmp.ne.s32.totalorder %s4351_s12, %s3264_s22  ;;  %p3269_p2 = scmp.lt.u32.totalorder %s4351_s12, %s4494_s13 }
 0xb16   : > { %p3270_p6 = scmp.lt.u32.totalorder %s3268_s25, %s3264_s22  ;;  %p3272_p7 = scmp.lt.u32.totalorder %s3264_s22, %s4351_s12 }
 0xb17   : > { %p3266_p12 = pnand %p3265_p0, %p4495_p9 }
 0xb18   : > { %p3271_p4 = por %p3270_p6, %p3269_p2 }
 0xb19   : > { %p3267_p3 = pneg %p3266_p12 }
 0xb1a   : > { %p3273_p5 = por %p3272_p7, %p3271_p4 }
 0xb1c   : > { %p3274_p13 = pnand %p3273_p5, %p3267_p3 }
 0xb1e   : > { %3277 = shalt.err (!%p3274_p13)
}
 0xb1f   : > { %s3373_s26 = smov 64   ;;  %s3374_s21 = smov 4  }
 0xb20   : > { %2759 = dma.vmem_to_hbm [thread:$0]  (%p4495_p9), %s4353_s16, 512, %s4351_s12, %s2176_s30, %s3373_s26, %s3373_s26, %s3374_s21  }
 0xb21 PF: > { %s4496_s14 = sld [smem:[#allocation25_spill]]  ;;  %s4497_s3 = sld [smem:[#allocation32_spill]] }
 0xb22   : > { %s4498_s23 = sld [smem:[#allocation28_spill]] }
 0xb27   : > { %s2206_s27 = sand.u32 1, %s4496_s14   ;;  %p4499_p8 = scmp.ne.s32.totalorder %s4497_s3, 0 }
 0xb28   : > { %p4500_p11 = scmp.ge.s32.totalorder %s4498_s23, 2  ;;  %s2207_s15 = scalar_lea.sflag [#allocation6], %s2206_s27 }
 0xb2a   : > { %p2788_p1 = pnand %p4500_p11, %p4499_p8 }
 0xb2c   : > { %3323 = dma.done.wait (!%p2788_p1), %s2207_s15, 512  }
 0xb2d   : > { %3325 = vsyncadd (!%p2788_p1), %s2207_s15, 4294966784  ;;  %s30_s10 = sadd.s32 1, %s4498_s23   ;;  %s4501_s8 = sld [smem:[#allocation26_spill]] }
 0xb2e   : > { %p27_p10 = scmp.ge.s32.totalorder %s30_s10, 4   ;;  %s4502_s29 = sld [smem:[#allocation31_spill]] }
 0xb2f   : > { %s4503_s24 = sld [smem:[#allocation29_spill]]  ;;  %s4504_s27 = smov %s3332_s28 }
 0xb30   : > { %s4506_s30 = smov %s3344_s9  ;;  %29 = sbr.rel (!%p27_p10) target bundleno = 16 (0x10), region = 145 }
 0xb33   : > { %s4505_s28 = smov %s4501_s8 }
 0xb35   : > { %s4507_s9 = smov %s4503_s24 }
 0xb37   :  { %2212 = vsyncpa [#allocation5], 1 }
 0xb38   :  { %2214 = vsyncpa [#allocation5 + $0x1], 1 }
 0xb39   :  { %2215 = vsyncpa [#allocation8], 1 }
 0xb3a   :  { %2217 = vsyncpa [#allocation8 + $0x1], 1 }
 0xb3b   :  { %2218 = vsyncpa [#allocation11], 1 }
 0xb3c   :  { %2219 = vsyncpa [#allocation14], 1 }
 0xb3d   :  { %2220 = vsyncpa [#allocation17], 1 }
 0xb3e   :  { %2221 = vsyncpa [#allocation6], 1 }
 0xb3f   :  { %2223 = vsyncpa [#allocation6 + $0x1], 1 }

</bundles_post_ra>
